<compile_context>
chip_gen: v5e
topology: v5e:2x2
jax: 0.10.0
libtpu: 0.0.40
codegen_flags: <defaults>
</compile_context>

<pallas_src>
import jax
import jax.numpy as jnp
from jax import lax
from jax.experimental import pallas as pl
from jax.experimental.pallas import tpu as pltpu

_HI = lax.Precision.HIGHEST  # only for the tiny f32 group-norm matmuls


def make_resblocks_kernel(depth, channels, length, b_tile, eps=1e-5):
    C, L, B = channels, length, b_tile
    BL = B * L

    def kernel(wfg_ref, w1_ref, gmat2_ref, segr_ref, segb_ref, x_ref, out_ref, xs_ref):
        gmat2 = gmat2_ref[...]                                   # (2C, 2C) block-diag 1/cpg
        # Lane position within each batch segment (for the conv edge masks).
        pos = lax.broadcasted_iota(jnp.int32, (1, BL), 1) % L

        if B == 1:
            # Single batch element per step: pure lane reductions + ONE group matmul.
            def group_norm(v):                                   # v: (C, L) f32
                s = jnp.sum(v, axis=1, keepdims=True)            # (C, 1)
                sq = jnp.sum(v * v, axis=1, keepdims=True)       # (C, 1)
                st = jnp.concatenate([s, sq], axis=0) * (1.0 / L)        # (2C, 1)
                g = jnp.dot(gmat2, st, precision=_HI,
                            preferred_element_type=jnp.float32)          # (2C, 1)
                mean = g[:C]
                inv = lax.rsqrt(g[C:] - mean * mean + eps)
                return (v - mean) * inv
        else:
            # Batch fused on lanes: per-(channel,batch) moments via one segment matmul,
            # one group matmul, one broadcast matmul (segment columns are padded to 8
            # so no degenerate contraction dims hit the MXU).
            segr = segr_ref[...]                                 # (BL, Bp), 1/L entries
            segb = segb_ref[...]                                 # (Bp, BL), 0/1 entries

            def group_norm(v):                                   # v: (C, BL) f32
                stats = jnp.dot(jnp.concatenate([v, v * v], axis=0), segr,
                                precision=_HI, preferred_element_type=jnp.float32)  # (2C, Bp)
                g = jnp.dot(gmat2, stats, precision=_HI,
                            preferred_element_type=jnp.float32)                     # (2C, Bp)
                mean, msq = g[:C], g[C:]
                inv = lax.rsqrt(msq - mean * mean + eps)                             # (C, Bp)
                bc = jnp.dot(jnp.concatenate([mean, inv], axis=0), segb,
                             precision=_HI, preferred_element_type=jnp.float32)     # (2C, BL)
                return (v - bc[:C]) * bc[C:]

        x = x_ref[...].astype(jnp.float32)                       # (C, BL)
        res = x
        skip = jnp.zeros((C, BL), jnp.float32)

        for i in range(depth):                                   # static unroll (depth small)
            d = 2 ** i
            xb = x.astype(jnp.bfloat16)
            # x[:, j - d] and x[:, j + d] via XLU lane rotations; the iota masks zero
            # exactly the positions whose source would cross a batch-segment edge,
            # which reproduces the conv's zero padding.
            left = pltpu.roll(x, d, 1)                           # rolled[:, j] = x[:, j - d]
            right = pltpu.roll(x, BL - d, 1)                     # rolled[:, j] = x[:, j + d]
            xs_ref[:C] = jnp.where(pos >= d, left, 0.0).astype(jnp.bfloat16)
            xs_ref[C:2 * C] = xb
            xs_ref[2 * C:] = jnp.where(pos < L - d, right, 0.0).astype(jnp.bfloat16)

            # Fused filter+gate x 3-tap dilated conv: ONE native-bf16 MXU matmul.
            fg = jnp.dot(wfg_ref[i], xs_ref[...],
                         preferred_element_type=jnp.float32)     # (2C, BL) f32 acc
            # Gate rows were pre-scaled by 0.5, so sigmoid(g) == 0.5*tanh(fg_gate)+0.5.
            h = jnp.tanh(fg[:C]) * (0.5 * jnp.tanh(fg[C:]) + 0.5)

            y = jnp.dot(w1_ref[i], h.astype(jnp.bfloat16),
                        preferred_element_type=jnp.float32)      # 1x1 conv, bf16 MXU

            x = y
            res = group_norm(res + y)
            skip = skip + res

        out_ref[...] = group_norm(skip).astype(out_ref.dtype)

    return kernel


def _pick_b_tile(N, L, target_lanes=512):
    """Batch elements fused per grid step (onto the lane axis).

    Prefer enough fused lanes to fill the MXU N-dimension, but keep >= 2 parallel
    grid iterations when N >= 2 so both v7x TensorCores get work.
    """
    divisors = [b for b in range(1, N + 1) if N % b == 0]
    fill = [b for b in divisors if b * L <= target_lanes]
    b = max(fill) if fill else 1
    if N >= 2:
        two = [c for c in divisors if c <= b and N // c >= 2]
        if two:
            b = max(two)
    return b


def resblocks_pallas(x, wf, wg, w1, num_groups=8, b_tile=None):
    """x: (N, C, L) f32/bf16.  wf/wg: (depth, C, C, 3) PyTorch Conv1d (O, I, K) weights.
    w1: (depth, C, C) 1x1-conv weights."""
    N, C, L = x.shape
    depth = wf.shape[0]
    assert C % num_groups == 0 and C % 8 == 0
    assert 2 ** (depth - 1) < L
    assert L % 128 == 0, "sequence length must be a multiple of 128 (lane-aligned tiles)"

    B = b_tile if b_tile is not None else _pick_b_tile(N, L)
    assert N % B == 0
    BL = B * L
    Bp = ((B + 7) // 8) * 8                      # pad segment columns to a sublane multiple

    # Pack the gated-conv weights so each block is ONE (2C, 3C) @ (3C, BL) bf16 matmul:
    # column block k holds tap k, rows [0:C) = filter, [C:2C) = gate pre-scaled by 0.5
    # (exact in bf16) so the kernel uses the tanh identity for sigmoid without an extra mul.
    wf_cat = jnp.transpose(wf, (0, 1, 3, 2)).reshape(depth, C, 3 * C)
    wg_cat = jnp.transpose(wg, (0, 1, 3, 2)).reshape(depth, C, 3 * C)
    wfg = jnp.concatenate([wf_cat, 0.5 * wg_cat], axis=1).astype(jnp.bfloat16)  # (depth, 2C, 3C)
    w1_k = w1.astype(jnp.bfloat16)                                              # (depth, C, C)

    # Group-norm helper matrices (f32, exact):
    #   gmat2: block-diagonal per-group channel averaging (1/cpg) for [sum; sum_sq] stacks.
    #   segb : (Bp, BL) 0/1 batch-segment membership (broadcast matrix).
    #   segr : (BL, Bp) segment lane-averaging matrix (1/L entries).
    cpg = C // num_groups
    gidx = jnp.arange(C) // cpg
    gmat = (gidx[:, None] == gidx[None, :]).astype(jnp.float32) / float(cpg)
    gmat2 = jnp.kron(jnp.eye(2, dtype=jnp.float32), gmat)                       # (2C, 2C)
    bidx = jnp.arange(BL) // L
    segb = (jnp.arange(Bp)[:, None] == bidx[None, :]).astype(jnp.float32)       # (Bp, BL)
    segr = segb.T / float(L)                                                    # (BL, Bp)

    # Batch fused onto the lane axis (layout plumbing only; keep caller's dtype so
    # bf16 activations are DMA'd at bf16 width and upcast inside the kernel).
    x2d = jnp.reshape(jnp.transpose(x, (1, 0, 2)), (C, N * L))

    kernel = make_resblocks_kernel(depth, C, L, B)

    def build(single_buffer_weights):
        wkw = dict(pipeline_mode=pl.Buffered(1)) if single_buffer_weights else {}
        wbuf = 1 if single_buffer_weights else 2

        # VMEM estimate: weights (x buffer count) + double-buffered activation blocks
        # + bf16 tap-stack scratch + headroom for live f32 temporaries; capped at 75%
        # of physical VMEM (v5e/v6e: 128 MiB, v7x: 64 MiB per TensorCore).
        est = (wbuf * (wfg.size * 2 + w1_k.size * 2
                       + 4 * (gmat2.size + segr.size + segb.size))
               + 2 * C * BL * x2d.dtype.itemsize          # input block (double buffered)
               + 2 * C * BL * 4                           # output block (double buffered)
               + 3 * C * BL * 2                           # bf16 tap-stack scratch
               + 16 * C * BL * 4)                         # live f32 temporaries
        try:
            phys = pltpu.get_tpu_info().vmem_capacity_bytes
        except Exception:
            phys = 64 * 1024 * 1024                       # v7x per-core floor
        cap = (phys * 3) // 4
        vmem_limit = int(min(max(2 * est, 8 * 1024 * 1024), cap))

        return pl.pallas_call(
            kernel,
            out_shape=jax.ShapeDtypeStruct((C, N * L), jnp.float32),
            grid_spec=pltpu.PrefetchScalarGridSpec(
                num_scalar_prefetch=0,
                grid=(N // B,),
                in_specs=[
                    # Grid-invariant weights / constants: constant index maps.
                    pl.BlockSpec((depth, 2 * C, 3 * C), lambda n: (0, 0, 0), **wkw),
                    pl.BlockSpec((depth, C, C), lambda n: (0, 0, 0), **wkw),
                    pl.BlockSpec((2 * C, 2 * C), lambda n: (0, 0), **wkw),
                    pl.BlockSpec((BL, Bp), lambda n: (0, 0), **wkw),
                    pl.BlockSpec((Bp, BL), lambda n: (0, 0), **wkw),
                    # Lane-dense activation slab: B_TILE batch elements per step.
                    pl.BlockSpec((C, BL), lambda n: (0, n)),
                ],
                out_specs=pl.BlockSpec((C, BL), lambda n: (0, n)),
                scratch_shapes=[pltpu.VMEM((3 * C, BL), jnp.bfloat16)],
            ),
            compiler_params=pltpu.CompilerParams(
                dimension_semantics=("parallel",),
                vmem_limit_bytes=vmem_limit),
        )

    try:
        out2d = build(True)(wfg, w1_k, gmat2, segr, segb, x2d)
    except Exception:
        # Fallback if single-buffered (pl.Buffered(1)) weight specs are unsupported.
        out2d = build(False)(wfg, w1_k, gmat2, segr, segb, x2d)

    return jnp.transpose(out2d.reshape(C, N, L), (1, 0, 2))


# ----------------------------- pure-JAX reference -----------------------------
def _conv1d_ref(x, w, dilation):
    k = w.shape[-1]
    pad = dilation * (k - 1) // 2                 # "same" for k=3; 0 for the 1x1 conv
    return lax.conv_general_dilated(
        x, w, window_strides=(1,), padding=[(pad, pad)],
        rhs_dilation=(dilation,), dimension_numbers=("NCH", "OIH", "NCH"),
        precision=_HI)


def _group_norm_ref(x, groups=8, eps=1e-5):
    N, C, L = x.shape
    xg = x.reshape(N, groups, C // groups, L)
    mean = xg.mean(axis=(2, 3), keepdims=True)
    var = ((xg - mean) ** 2).mean(axis=(2, 3), keepdims=True)
    return ((xg - mean) / jnp.sqrt(var + eps)).reshape(N, C, L)


def resblocks_ref(x, wf, wg, w1):
    depth = wf.shape[0]
    res = x
    skip_sum = jnp.zeros_like(x)
    for i in range(depth):
        d = 2 ** i
        filt = _conv1d_ref(x, wf[i], d)
        gate = _conv1d_ref(x, wg[i], d)
        h = jnp.tanh(filt) * jax.nn.sigmoid(gate)
        y = _conv1d_ref(h, w1[i][:, :, None], 1)
        x = y
        res = _group_norm_ref(res + y, 8)
        skip_sum = skip_sum + res
    return _group_norm_ref(skip_sum, 8)


def _check(out, ref):
    err = float(jnp.max(jnp.abs(out - ref)))
    rel = float(jnp.linalg.norm(out - ref) / jnp.linalg.norm(ref))
    # Conv matmuls run with bf16 MXU operands, so the tolerance is bf16-scale.
    assert err < 0.12 and rel < 0.03, (err, rel)


if __name__ == "__main__":
    # Small shapes consistent with the module (channels must be divisible by 8).
    N, C, L, depth = 2, 16, 128, 3

    key = jax.random.PRNGKey(0)
    kx, kf, kg, k1 = jax.random.split(key, 4)
    x = jax.random.normal(kx, (N, C, L), dtype=jnp.float32)
    # PyTorch Conv1d weight layout: (out_channels, in_channels, kernel_size).
    wf = jax.random.normal(kf, (depth, C, C, 3), dtype=jnp.float32) * 0.15
    wg = jax.random.normal(kg, (depth, C, C, 3), dtype=jnp.float32) * 0.15
    w1 = jax.random.normal(k1, (depth, C, C), dtype=jnp.float32) * 0.15

    ref = jax.block_until_ready(resblocks_ref(x, wf, wg, w1))

    # Default tiling: keeps >= 2 parallel grid steps (v7x megacore path).
    out = jax.block_until_ready(resblocks_pallas(x, wf, wg, w1))
    assert out.shape == (N, C, L)
    _check(out, ref)

    # Batch-fused tiling: both batch elements on the lane axis (256-lane MXU RHS).
    out2 = jax.block_until_ready(resblocks_pallas(x, wf, wg, w1, b_tile=2))
    _check(out2, ref)

    print("KERNEL_OK")
</pallas_src>

<mosaic_0001>
module attributes {stable_mosaic.version = 11 : i64} {
  func.func @kernel(%arg0: i32, %arg1: memref<3x32x48xbf16, #tpu.memory_space<vmem>>, %arg2: memref<3x16x16xbf16, #tpu.memory_space<vmem>>, %arg3: memref<32x32xf32, #tpu.memory_space<vmem>>, %arg4: memref<128x8xf32, #tpu.memory_space<vmem>>, %arg5: memref<8x128xf32, #tpu.memory_space<vmem>>, %arg6: memref<16x128xf32, #tpu.memory_space<vmem>>, %arg7: memref<16x128xf32, #tpu.memory_space<vmem>>, %arg8: memref<48x128xbf16, #tpu.memory_space<vmem>>) attributes {dimension_semantics = [#tpu.dimension_semantics<parallel>], iteration_bounds = array<i64: 2>, scalar_prefetch = 0 : i64, scratch_operands = 1 : i64, tpu.core_type = #tpu.core_type<tc>, window_params = [{pipeline_mode = #tpu.pipeline_mode<synchronous>, transform_indices = @transform_0, window_bounds = array<i64: 3, 32, 48>}, {pipeline_mode = #tpu.pipeline_mode<synchronous>, transform_indices = @transform_1, window_bounds = array<i64: 3, 16, 16>}, {pipeline_mode = #tpu.pipeline_mode<synchronous>, transform_indices = @transform_2, window_bounds = array<i64: 32, 32>}, {pipeline_mode = #tpu.pipeline_mode<synchronous>, transform_indices = @transform_3, window_bounds = array<i64: 128, 8>}, {pipeline_mode = #tpu.pipeline_mode<synchronous>, transform_indices = @transform_4, window_bounds = array<i64: 8, 128>}, {transform_indices = @transform_5, window_bounds = array<i64: 16, 128>}, {transform_indices = @transform_6, window_bounds = array<i64: 16, 128>}]} {
    %c0 = arith.constant 0 : index
    %c0_0 = arith.constant 0 : index
    %0 = vector.load %arg3[%c0, %c0_0] : memref<32x32xf32, #tpu.memory_space<vmem>>, vector<32x32xf32>
    %1 = tpu.iota {dimensions = array<i32: 1>} : vector<1x128xi32>
    %c128_i32 = arith.constant 128 : i32
    %c0_i32 = arith.constant 0 : i32
    %2 = arith.cmpi eq, %c128_i32, %c0_i32 : i32
    %c1_i32 = arith.constant 1 : i32
    %3 = arith.select %2, %c1_i32, %c128_i32 : i32
    %4 = vector.broadcast %3 : i32 to vector<1x128xi32>
    %5 = arith.remsi %1, %4 : vector<1x128xi32>
    %c0_i32_1 = arith.constant 0 : i32
    %6 = vector.broadcast %c0_i32_1 : i32 to vector<1x128xi32>
    %7 = arith.cmpi ne, %5, %6 : vector<1x128xi32>
    %c0_i32_2 = arith.constant 0 : i32
    %8 = vector.broadcast %c0_i32_2 : i32 to vector<1x128xi32>
    %9 = arith.cmpi slt, %5, %8 : vector<1x128xi32>
    %c0_i32_3 = arith.constant 0 : i32
    %10 = arith.cmpi slt, %3, %c0_i32_3 : i32
    %11 = vector.broadcast %10 : i1 to vector<1x128xi1>
    %12 = vector.broadcast %11 : vector<1x128xi1> to vector<1x128xi1>
    %13 = arith.xori %9, %12 : vector<1x128xi1>
    %14 = arith.andi %13, %7 : vector<1x128xi1>
    %15 = vector.broadcast %3 : i32 to vector<1x128xi32>
    %16 = arith.addi %5, %15 : vector<1x128xi32>
    %17 = arith.select %14, %16, %5 : vector<1x128xi1>, vector<1x128xi32>
    %c0_4 = arith.constant 0 : index
    %c0_5 = arith.constant 0 : index
    %18 = vector.load %arg6[%c0_4, %c0_5] : memref<16x128xf32, #tpu.memory_space<vmem>>, vector<16x128xf32>
    %cst = arith.constant 0.000000e+00 : f32
    %19 = vector.broadcast %cst : f32 to vector<16x128xf32>
    %20 = arith.truncf %18 : vector<16x128xf32> to vector<16x128xbf16>
    %c1_i32_6 = arith.constant 1 : i32
    %21 = tpu.dynamic_rotate %18 by %c1_i32_6 dim 1 : vector<16x128xf32>, i32 -> vector<16x128xf32>
    %c127_i32 = arith.constant 127 : i32
    %22 = tpu.dynamic_rotate %18 by %c127_i32 dim 1 : vector<16x128xf32>, i32 -> vector<16x128xf32>
    %c1_i32_7 = arith.constant 1 : i32
    %23 = vector.broadcast %c1_i32_7 : i32 to vector<1x128xi32>
    %24 = arith.cmpi sge, %17, %23 : vector<1x128xi32>
    %cst_8 = arith.constant 0.000000e+00 : f32
    %25 = vector.shape_cast %24 : vector<1x128xi1> to vector<1x128xi1>
    %26 = vector.broadcast %25 : vector<1x128xi1> to vector<16x128xi1>
    %27 = vector.broadcast %cst_8 : f32 to vector<16x128xf32>
    %28 = arith.select %26, %21, %27 : vector<16x128xi1>, vector<16x128xf32>
    %29 = arith.truncf %28 : vector<16x128xf32> to vector<16x128xbf16>
    %c0_9 = arith.constant 0 : index
    %c0_10 = arith.constant 0 : index
    %30 = vector.load %arg8[%c0_9, %c0_10] : memref<48x128xbf16, #tpu.memory_space<vmem>>, vector<16x128xbf16>
    tpu.vector_store %arg8[%c0_9, %c0_10], %29 {strides = array<i32>} : memref<48x128xbf16, #tpu.memory_space<vmem>>, vector<16x128xbf16>,
    %c16 = arith.constant 16 : index
    %c0_11 = arith.constant 0 : index
    %31 = vector.load %arg8[%c16, %c0_11] : memref<48x128xbf16, #tpu.memory_space<vmem>>, vector<16x128xbf16>
    tpu.vector_store %arg8[%c16, %c0_11], %20 {strides = array<i32>} : memref<48x128xbf16, #tpu.memory_space<vmem>>, vector<16x128xbf16>,
    %c127_i32_12 = arith.constant 127 : i32
    %32 = vector.broadcast %c127_i32_12 : i32 to vector<1x128xi32>
    %33 = arith.cmpi slt, %17, %32 : vector<1x128xi32>
    %cst_13 = arith.constant 0.000000e+00 : f32
    %34 = vector.shape_cast %33 : vector<1x128xi1> to vector<1x128xi1>
    %35 = vector.broadcast %34 : vector<1x128xi1> to vector<16x128xi1>
    %36 = vector.broadcast %cst_13 : f32 to vector<16x128xf32>
    %37 = arith.select %35, %22, %36 : vector<16x128xi1>, vector<16x128xf32>
    %38 = arith.truncf %37 : vector<16x128xf32> to vector<16x128xbf16>
    %c32 = arith.constant 32 : index
    %c0_14 = arith.constant 0 : index
    %39 = vector.load %arg8[%c32, %c0_14] : memref<48x128xbf16, #tpu.memory_space<vmem>>, vector<16x128xbf16>
    tpu.vector_store %arg8[%c32, %c0_14], %38 {strides = array<i32>} : memref<48x128xbf16, #tpu.memory_space<vmem>>, vector<16x128xbf16>,
    %c0_15 = arith.constant 0 : index
    %c0_16 = arith.constant 0 : index
    %c0_17 = arith.constant 0 : index
    %40 = vector.load %arg1[%c0_15, %c0_16, %c0_17] : memref<3x32x48xbf16, #tpu.memory_space<vmem>>, vector<1x32x48xbf16>
    %41 = vector.shape_cast %40 : vector<1x32x48xbf16> to vector<32x48xbf16>
    %c0_18 = arith.constant 0 : index
    %c0_19 = arith.constant 0 : index
    %42 = vector.load %arg8[%c0_18, %c0_19] : memref<48x128xbf16, #tpu.memory_space<vmem>>, vector<48x128xbf16>
    %cst_20 = arith.constant dense<0.000000e+00> : vector<32x128xf32>
    %43 = tpu.matmul %41, %42, %cst_20 {dimension_numbers = #tpu.dot_dimension_numbers<[1], [0], [0], [1], [0, 0, 1, 1], [], []>} : vector<32x48xbf16>, vector<48x128xbf16>, vector<32x128xf32> -> vector<32x128xf32>
    %44 = vector.extract_strided_slice %43 {offsets = [0, 0], sizes = [16, 128], strides = [1, 1]} : vector<32x128xf32> to vector<16x128xf32>
    %45 = math.tanh %44 : vector<16x128xf32>
    %46 = vector.extract_strided_slice %43 {offsets = [16, 0], sizes = [16, 128], strides = [1, 1]} : vector<32x128xf32> to vector<16x128xf32>
    %47 = math.tanh %46 : vector<16x128xf32>
    %cst_21 = arith.constant 5.000000e-01 : f32
    %48 = vector.broadcast %cst_21 : f32 to vector<16x128xf32>
    %49 = arith.mulf %48, %47 : vector<16x128xf32>
    %cst_22 = arith.constant 5.000000e-01 : f32
    %50 = vector.broadcast %cst_22 : f32 to vector<16x128xf32>
    %51 = arith.addf %49, %50 : vector<16x128xf32>
    %52 = arith.mulf %45, %51 : vector<16x128xf32>
    %c0_23 = arith.constant 0 : index
    %c0_24 = arith.constant 0 : index
    %c0_25 = arith.constant 0 : index
    %53 = vector.load %arg2[%c0_23, %c0_24, %c0_25] : memref<3x16x16xbf16, #tpu.memory_space<vmem>>, vector<1x16x16xbf16>
    %54 = vector.shape_cast %53 : vector<1x16x16xbf16> to vector<16x16xbf16>
    %55 = arith.truncf %52 : vector<16x128xf32> to vector<16x128xbf16>
    %cst_26 = arith.constant dense<0.000000e+00> : vector<16x128xf32>
    %56 = tpu.matmul %54, %55, %cst_26 {dimension_numbers = #tpu.dot_dimension_numbers<[1], [0], [0], [1], [0, 0, 1, 1], [], []>} : vector<16x16xbf16>, vector<16x128xbf16>, vector<16x128xf32> -> vector<16x128xf32>
    %57 = arith.addf %18, %56 : vector<16x128xf32>
    %cst_27 = arith.constant dense<0.000000e+00> : vector<16xf32>
    %58 = vector.multi_reduction <add>, %57, %cst_27 [1] : vector<16x128xf32> to vector<16xf32>
    %59 = vector.shape_cast %58 : vector<16xf32> to vector<16x1xf32>
    %60 = arith.mulf %57, %57 : vector<16x128xf32>
    %cst_28 = arith.constant dense<0.000000e+00> : vector<16xf32>
    %61 = vector.multi_reduction <add>, %60, %cst_28 [1] : vector<16x128xf32> to vector<16xf32>
    %62 = vector.shape_cast %61 : vector<16xf32> to vector<16x1xf32>
    %63 = tpu.concatenate %59, %62 in 0 : vector<16x1xf32>, vector<16x1xf32> -> vector<32x1xf32>
    %cst_29 = arith.constant 7.812500e-03 : f32
    %64 = vector.broadcast %cst_29 : f32 to vector<32x1xf32>
    %65 = arith.mulf %63, %64 : vector<32x1xf32>
    %cst_30 = arith.constant dense<0.000000e+00> : vector<32x1xf32>
    %66 = tpu.matmul %0, %65, %cst_30 {dimension_numbers = #tpu.dot_dimension_numbers<[1], [0], [0], [1], [0, 0, 1, 1], [], []>, precision = #tpu.contract_precision<fp32>} : vector<32x32xf32>, vector<32x1xf32>, vector<32x1xf32> -> vector<32x1xf32>
    %67 = vector.extract_strided_slice %66 {offsets = [0, 0], sizes = [16, 1], strides = [1, 1]} : vector<32x1xf32> to vector<16x1xf32>
    %68 = vector.extract_strided_slice %66 {offsets = [16, 0], sizes = [16, 1], strides = [1, 1]} : vector<32x1xf32> to vector<16x1xf32>
    %69 = arith.mulf %67, %67 : vector<16x1xf32>
    %70 = arith.subf %68, %69 : vector<16x1xf32>
    %cst_31 = arith.constant 9.99999974E-6 : f32
    %71 = vector.broadcast %cst_31 : f32 to vector<16x1xf32>
    %72 = arith.addf %70, %71 : vector<16x1xf32>
    %73 = math.rsqrt %72 : vector<16x1xf32>
    %74 = vector.broadcast %67 : vector<16x1xf32> to vector<16x128xf32>
    %75 = arith.subf %57, %74 : vector<16x128xf32>
    %76 = vector.broadcast %73 : vector<16x1xf32> to vector<16x128xf32>
    %77 = arith.mulf %75, %76 : vector<16x128xf32>
    %78 = arith.addf %19, %77 : vector<16x128xf32>
    %79 = arith.truncf %56 : vector<16x128xf32> to vector<16x128xbf16>
    %c2_i32 = arith.constant 2 : i32
    %80 = tpu.dynamic_rotate %56 by %c2_i32 dim 1 : vector<16x128xf32>, i32 -> vector<16x128xf32>
    %c126_i32 = arith.constant 126 : i32
    %81 = tpu.dynamic_rotate %56 by %c126_i32 dim 1 : vector<16x128xf32>, i32 -> vector<16x128xf32>
    %c2_i32_32 = arith.constant 2 : i32
    %82 = vector.broadcast %c2_i32_32 : i32 to vector<1x128xi32>
    %83 = arith.cmpi sge, %17, %82 : vector<1x128xi32>
    %cst_33 = arith.constant 0.000000e+00 : f32
    %84 = vector.shape_cast %83 : vector<1x128xi1> to vector<1x128xi1>
    %85 = vector.broadcast %84 : vector<1x128xi1> to vector<16x128xi1>
    %86 = vector.broadcast %cst_33 : f32 to vector<16x128xf32>
    %87 = arith.select %85, %80, %86 : vector<16x128xi1>, vector<16x128xf32>
    %88 = arith.truncf %87 : vector<16x128xf32> to vector<16x128xbf16>
    %c0_34 = arith.constant 0 : index
    %c0_35 = arith.constant 0 : index
    %89 = vector.load %arg8[%c0_34, %c0_35] : memref<48x128xbf16, #tpu.memory_space<vmem>>, vector<16x128xbf16>
    tpu.vector_store %arg8[%c0_34, %c0_35], %88 {strides = array<i32>} : memref<48x128xbf16, #tpu.memory_space<vmem>>, vector<16x128xbf16>,
    %c16_36 = arith.constant 16 : index
    %c0_37 = arith.constant 0 : index
    %90 = vector.load %arg8[%c16_36, %c0_37] : memref<48x128xbf16, #tpu.memory_space<vmem>>, vector<16x128xbf16>
    tpu.vector_store %arg8[%c16_36, %c0_37], %79 {strides = array<i32>} : memref<48x128xbf16, #tpu.memory_space<vmem>>, vector<16x128xbf16>,
    %c126_i32_38 = arith.constant 126 : i32
    %91 = vector.broadcast %c126_i32_38 : i32 to vector<1x128xi32>
    %92 = arith.cmpi slt, %17, %91 : vector<1x128xi32>
    %cst_39 = arith.constant 0.000000e+00 : f32
    %93 = vector.shape_cast %92 : vector<1x128xi1> to vector<1x128xi1>
    %94 = vector.broadcast %93 : vector<1x128xi1> to vector<16x128xi1>
    %95 = vector.broadcast %cst_39 : f32 to vector<16x128xf32>
    %96 = arith.select %94, %81, %95 : vector<16x128xi1>, vector<16x128xf32>
    %97 = arith.truncf %96 : vector<16x128xf32> to vector<16x128xbf16>
    %c32_40 = arith.constant 32 : index
    %c0_41 = arith.constant 0 : index
    %98 = vector.load %arg8[%c32_40, %c0_41] : memref<48x128xbf16, #tpu.memory_space<vmem>>, vector<16x128xbf16>
    tpu.vector_store %arg8[%c32_40, %c0_41], %97 {strides = array<i32>} : memref<48x128xbf16, #tpu.memory_space<vmem>>, vector<16x128xbf16>,
    %c1 = arith.constant 1 : index
    %c0_42 = arith.constant 0 : index
    %c0_43 = arith.constant 0 : index
    %99 = vector.load %arg1[%c1, %c0_42, %c0_43] : memref<3x32x48xbf16, #tpu.memory_space<vmem>>, vector<1x32x48xbf16>
    %100 = vector.shape_cast %99 : vector<1x32x48xbf16> to vector<32x48xbf16>
    %c0_44 = arith.constant 0 : index
    %c0_45 = arith.constant 0 : index
    %101 = vector.load %arg8[%c0_44, %c0_45] : memref<48x128xbf16, #tpu.memory_space<vmem>>, vector<48x128xbf16>
    %cst_46 = arith.constant dense<0.000000e+00> : vector<32x128xf32>
    %102 = tpu.matmul %100, %101, %cst_46 {dimension_numbers = #tpu.dot_dimension_numbers<[1], [0], [0], [1], [0, 0, 1, 1], [], []>} : vector<32x48xbf16>, vector<48x128xbf16>, vector<32x128xf32> -> vector<32x128xf32>
    %103 = vector.extract_strided_slice %102 {offsets = [0, 0], sizes = [16, 128], strides = [1, 1]} : vector<32x128xf32> to vector<16x128xf32>
    %104 = math.tanh %103 : vector<16x128xf32>
    %105 = vector.extract_strided_slice %102 {offsets = [16, 0], sizes = [16, 128], strides = [1, 1]} : vector<32x128xf32> to vector<16x128xf32>
    %106 = math.tanh %105 : vector<16x128xf32>
    %cst_47 = arith.constant 5.000000e-01 : f32
    %107 = vector.broadcast %cst_47 : f32 to vector<16x128xf32>
    %108 = arith.mulf %107, %106 : vector<16x128xf32>
    %cst_48 = arith.constant 5.000000e-01 : f32
    %109 = vector.broadcast %cst_48 : f32 to vector<16x128xf32>
    %110 = arith.addf %108, %109 : vector<16x128xf32>
    %111 = arith.mulf %104, %110 : vector<16x128xf32>
    %c1_49 = arith.constant 1 : index
    %c0_50 = arith.constant 0 : index
    %c0_51 = arith.constant 0 : index
    %112 = vector.load %arg2[%c1_49, %c0_50, %c0_51] : memref<3x16x16xbf16, #tpu.memory_space<vmem>>, vector<1x16x16xbf16>
    %113 = vector.shape_cast %112 : vector<1x16x16xbf16> to vector<16x16xbf16>
    %114 = arith.truncf %111 : vector<16x128xf32> to vector<16x128xbf16>
    %cst_52 = arith.constant dense<0.000000e+00> : vector<16x128xf32>
    %115 = tpu.matmul %113, %114, %cst_52 {dimension_numbers = #tpu.dot_dimension_numbers<[1], [0], [0], [1], [0, 0, 1, 1], [], []>} : vector<16x16xbf16>, vector<16x128xbf16>, vector<16x128xf32> -> vector<16x128xf32>
    %116 = arith.addf %77, %115 : vector<16x128xf32>
    %cst_53 = arith.constant dense<0.000000e+00> : vector<16xf32>
    %117 = vector.multi_reduction <add>, %116, %cst_53 [1] : vector<16x128xf32> to vector<16xf32>
    %118 = vector.shape_cast %117 : vector<16xf32> to vector<16x1xf32>
    %119 = arith.mulf %116, %116 : vector<16x128xf32>
    %cst_54 = arith.constant dense<0.000000e+00> : vector<16xf32>
    %120 = vector.multi_reduction <add>, %119, %cst_54 [1] : vector<16x128xf32> to vector<16xf32>
    %121 = vector.shape_cast %120 : vector<16xf32> to vector<16x1xf32>
    %122 = tpu.concatenate %118, %121 in 0 : vector<16x1xf32>, vector<16x1xf32> -> vector<32x1xf32>
    %cst_55 = arith.constant 7.812500e-03 : f32
    %123 = vector.broadcast %cst_55 : f32 to vector<32x1xf32>
    %124 = arith.mulf %122, %123 : vector<32x1xf32>
    %cst_56 = arith.constant dense<0.000000e+00> : vector<32x1xf32>
    %125 = tpu.matmul %0, %124, %cst_56 {dimension_numbers = #tpu.dot_dimension_numbers<[1], [0], [0], [1], [0, 0, 1, 1], [], []>, precision = #tpu.contract_precision<fp32>} : vector<32x32xf32>, vector<32x1xf32>, vector<32x1xf32> -> vector<32x1xf32>
    %126 = vector.extract_strided_slice %125 {offsets = [0, 0], sizes = [16, 1], strides = [1, 1]} : vector<32x1xf32> to vector<16x1xf32>
    %127 = vector.extract_strided_slice %125 {offsets = [16, 0], sizes = [16, 1], strides = [1, 1]} : vector<32x1xf32> to vector<16x1xf32>
    %128 = arith.mulf %126, %126 : vector<16x1xf32>
    %129 = arith.subf %127, %128 : vector<16x1xf32>
    %cst_57 = arith.constant 9.99999974E-6 : f32
    %130 = vector.broadcast %cst_57 : f32 to vector<16x1xf32>
    %131 = arith.addf %129, %130 : vector<16x1xf32>
    %132 = math.rsqrt %131 : vector<16x1xf32>
    %133 = vector.broadcast %126 : vector<16x1xf32> to vector<16x128xf32>
    %134 = arith.subf %116, %133 : vector<16x128xf32>
    %135 = vector.broadcast %132 : vector<16x1xf32> to vector<16x128xf32>
    %136 = arith.mulf %134, %135 : vector<16x128xf32>
    %137 = arith.addf %78, %136 : vector<16x128xf32>
    %138 = arith.truncf %115 : vector<16x128xf32> to vector<16x128xbf16>
    %c4_i32 = arith.constant 4 : i32
    %139 = tpu.dynamic_rotate %115 by %c4_i32 dim 1 : vector<16x128xf32>, i32 -> vector<16x128xf32>
    %c124_i32 = arith.constant 124 : i32
    %140 = tpu.dynamic_rotate %115 by %c124_i32 dim 1 : vector<16x128xf32>, i32 -> vector<16x128xf32>
    %c4_i32_58 = arith.constant 4 : i32
    %141 = vector.broadcast %c4_i32_58 : i32 to vector<1x128xi32>
    %142 = arith.cmpi sge, %17, %141 : vector<1x128xi32>
    %cst_59 = arith.constant 0.000000e+00 : f32
    %143 = vector.shape_cast %142 : vector<1x128xi1> to vector<1x128xi1>
    %144 = vector.broadcast %143 : vector<1x128xi1> to vector<16x128xi1>
    %145 = vector.broadcast %cst_59 : f32 to vector<16x128xf32>
    %146 = arith.select %144, %139, %145 : vector<16x128xi1>, vector<16x128xf32>
    %147 = arith.truncf %146 : vector<16x128xf32> to vector<16x128xbf16>
    %c0_60 = arith.constant 0 : index
    %c0_61 = arith.constant 0 : index
    %148 = vector.load %arg8[%c0_60, %c0_61] : memref<48x128xbf16, #tpu.memory_space<vmem>>, vector<16x128xbf16>
    tpu.vector_store %arg8[%c0_60, %c0_61], %147 {strides = array<i32>} : memref<48x128xbf16, #tpu.memory_space<vmem>>, vector<16x128xbf16>,
    %c16_62 = arith.constant 16 : index
    %c0_63 = arith.constant 0 : index
    %149 = vector.load %arg8[%c16_62, %c0_63] : memref<48x128xbf16, #tpu.memory_space<vmem>>, vector<16x128xbf16>
    tpu.vector_store %arg8[%c16_62, %c0_63], %138 {strides = array<i32>} : memref<48x128xbf16, #tpu.memory_space<vmem>>, vector<16x128xbf16>,
    %c124_i32_64 = arith.constant 124 : i32
    %150 = vector.broadcast %c124_i32_64 : i32 to vector<1x128xi32>
    %151 = arith.cmpi slt, %17, %150 : vector<1x128xi32>
    %cst_65 = arith.constant 0.000000e+00 : f32
    %152 = vector.shape_cast %151 : vector<1x128xi1> to vector<1x128xi1>
    %153 = vector.broadcast %152 : vector<1x128xi1> to vector<16x128xi1>
    %154 = vector.broadcast %cst_65 : f32 to vector<16x128xf32>
    %155 = arith.select %153, %140, %154 : vector<16x128xi1>, vector<16x128xf32>
    %156 = arith.truncf %155 : vector<16x128xf32> to vector<16x128xbf16>
    %c32_66 = arith.constant 32 : index
    %c0_67 = arith.constant 0 : index
    %157 = vector.load %arg8[%c32_66, %c0_67] : memref<48x128xbf16, #tpu.memory_space<vmem>>, vector<16x128xbf16>
    tpu.vector_store %arg8[%c32_66, %c0_67], %156 {strides = array<i32>} : memref<48x128xbf16, #tpu.memory_space<vmem>>, vector<16x128xbf16>,
    %c2 = arith.constant 2 : index
    %c0_68 = arith.constant 0 : index
    %c0_69 = arith.constant 0 : index
    %158 = vector.load %arg1[%c2, %c0_68, %c0_69] : memref<3x32x48xbf16, #tpu.memory_space<vmem>>, vector<1x32x48xbf16>
    %159 = vector.shape_cast %158 : vector<1x32x48xbf16> to vector<32x48xbf16>
    %c0_70 = arith.constant 0 : index
    %c0_71 = arith.constant 0 : index
    %160 = vector.load %arg8[%c0_70, %c0_71] : memref<48x128xbf16, #tpu.memory_space<vmem>>, vector<48x128xbf16>
    %cst_72 = arith.constant dense<0.000000e+00> : vector<32x128xf32>
    %161 = tpu.matmul %159, %160, %cst_72 {dimension_numbers = #tpu.dot_dimension_numbers<[1], [0], [0], [1], [0, 0, 1, 1], [], []>} : vector<32x48xbf16>, vector<48x128xbf16>, vector<32x128xf32> -> vector<32x128xf32>
    %162 = vector.extract_strided_slice %161 {offsets = [0, 0], sizes = [16, 128], strides = [1, 1]} : vector<32x128xf32> to vector<16x128xf32>
    %163 = math.tanh %162 : vector<16x128xf32>
    %164 = vector.extract_strided_slice %161 {offsets = [16, 0], sizes = [16, 128], strides = [1, 1]} : vector<32x128xf32> to vector<16x128xf32>
    %165 = math.tanh %164 : vector<16x128xf32>
    %cst_73 = arith.constant 5.000000e-01 : f32
    %166 = vector.broadcast %cst_73 : f32 to vector<16x128xf32>
    %167 = arith.mulf %166, %165 : vector<16x128xf32>
    %cst_74 = arith.constant 5.000000e-01 : f32
    %168 = vector.broadcast %cst_74 : f32 to vector<16x128xf32>
    %169 = arith.addf %167, %168 : vector<16x128xf32>
    %170 = arith.mulf %163, %169 : vector<16x128xf32>
    %c2_75 = arith.constant 2 : index
    %c0_76 = arith.constant 0 : index
    %c0_77 = arith.constant 0 : index
    %171 = vector.load %arg2[%c2_75, %c0_76, %c0_77] : memref<3x16x16xbf16, #tpu.memory_space<vmem>>, vector<1x16x16xbf16>
    %172 = vector.shape_cast %171 : vector<1x16x16xbf16> to vector<16x16xbf16>
    %173 = arith.truncf %170 : vector<16x128xf32> to vector<16x128xbf16>
    %cst_78 = arith.constant dense<0.000000e+00> : vector<16x128xf32>
    %174 = tpu.matmul %172, %173, %cst_78 {dimension_numbers = #tpu.dot_dimension_numbers<[1], [0], [0], [1], [0, 0, 1, 1], [], []>} : vector<16x16xbf16>, vector<16x128xbf16>, vector<16x128xf32> -> vector<16x128xf32>
    %175 = arith.addf %136, %174 : vector<16x128xf32>
    %cst_79 = arith.constant dense<0.000000e+00> : vector<16xf32>
    %176 = vector.multi_reduction <add>, %175, %cst_79 [1] : vector<16x128xf32> to vector<16xf32>
    %177 = vector.shape_cast %176 : vector<16xf32> to vector<16x1xf32>
    %178 = arith.mulf %175, %175 : vector<16x128xf32>
    %cst_80 = arith.constant dense<0.000000e+00> : vector<16xf32>
    %179 = vector.multi_reduction <add>, %178, %cst_80 [1] : vector<16x128xf32> to vector<16xf32>
    %180 = vector.shape_cast %179 : vector<16xf32> to vector<16x1xf32>
    %181 = tpu.concatenate %177, %180 in 0 : vector<16x1xf32>, vector<16x1xf32> -> vector<32x1xf32>
    %cst_81 = arith.constant 7.812500e-03 : f32
    %182 = vector.broadcast %cst_81 : f32 to vector<32x1xf32>
    %183 = arith.mulf %181, %182 : vector<32x1xf32>
    %cst_82 = arith.constant dense<0.000000e+00> : vector<32x1xf32>
    %184 = tpu.matmul %0, %183, %cst_82 {dimension_numbers = #tpu.dot_dimension_numbers<[1], [0], [0], [1], [0, 0, 1, 1], [], []>, precision = #tpu.contract_precision<fp32>} : vector<32x32xf32>, vector<32x1xf32>, vector<32x1xf32> -> vector<32x1xf32>
    %185 = vector.extract_strided_slice %184 {offsets = [0, 0], sizes = [16, 1], strides = [1, 1]} : vector<32x1xf32> to vector<16x1xf32>
    %186 = vector.extract_strided_slice %184 {offsets = [16, 0], sizes = [16, 1], strides = [1, 1]} : vector<32x1xf32> to vector<16x1xf32>
    %187 = arith.mulf %185, %185 : vector<16x1xf32>
    %188 = arith.subf %186, %187 : vector<16x1xf32>
    %cst_83 = arith.constant 9.99999974E-6 : f32
    %189 = vector.broadcast %cst_83 : f32 to vector<16x1xf32>
    %190 = arith.addf %188, %189 : vector<16x1xf32>
    %191 = math.rsqrt %190 : vector<16x1xf32>
    %192 = vector.broadcast %185 : vector<16x1xf32> to vector<16x128xf32>
    %193 = arith.subf %175, %192 : vector<16x128xf32>
    %194 = vector.broadcast %191 : vector<16x1xf32> to vector<16x128xf32>
    %195 = arith.mulf %193, %194 : vector<16x128xf32>
    %196 = arith.addf %137, %195 : vector<16x128xf32>
    %cst_84 = arith.constant dense<0.000000e+00> : vector<16xf32>
    %197 = vector.multi_reduction <add>, %196, %cst_84 [1] : vector<16x128xf32> to vector<16xf32>
    %198 = vector.shape_cast %197 : vector<16xf32> to vector<16x1xf32>
    %199 = arith.mulf %196, %196 : vector<16x128xf32>
    %cst_85 = arith.constant dense<0.000000e+00> : vector<16xf32>
    %200 = vector.multi_reduction <add>, %199, %cst_85 [1] : vector<16x128xf32> to vector<16xf32>
    %201 = vector.shape_cast %200 : vector<16xf32> to vector<16x1xf32>
    %202 = tpu.concatenate %198, %201 in 0 : vector<16x1xf32>, vector<16x1xf32> -> vector<32x1xf32>
    %cst_86 = arith.constant 7.812500e-03 : f32
    %203 = vector.broadcast %cst_86 : f32 to vector<32x1xf32>
    %204 = arith.mulf %202, %203 : vector<32x1xf32>
    %cst_87 = arith.constant dense<0.000000e+00> : vector<32x1xf32>
    %205 = tpu.matmul %0, %204, %cst_87 {dimension_numbers = #tpu.dot_dimension_numbers<[1], [0], [0], [1], [0, 0, 1, 1], [], []>, precision = #tpu.contract_precision<fp32>} : vector<32x32xf32>, vector<32x1xf32>, vector<32x1xf32> -> vector<32x1xf32>
    %206 = vector.extract_strided_slice %205 {offsets = [0, 0], sizes = [16, 1], strides = [1, 1]} : vector<32x1xf32> to vector<16x1xf32>
    %207 = vector.extract_strided_slice %205 {offsets = [16, 0], sizes = [16, 1], strides = [1, 1]} : vector<32x1xf32> to vector<16x1xf32>
    %208 = arith.mulf %206, %206 : vector<16x1xf32>
    %209 = arith.subf %207, %208 : vector<16x1xf32>
    %cst_88 = arith.constant 9.99999974E-6 : f32
    %210 = vector.broadcast %cst_88 : f32 to vector<16x1xf32>
    %211 = arith.addf %209, %210 : vector<16x1xf32>
    %212 = math.rsqrt %211 : vector<16x1xf32>
    %213 = vector.broadcast %206 : vector<16x1xf32> to vector<16x128xf32>
    %214 = arith.subf %196, %213 : vector<16x128xf32>
    %215 = vector.broadcast %212 : vector<16x1xf32> to vector<16x128xf32>
    %216 = arith.mulf %214, %215 : vector<16x128xf32>
    %c0_89 = arith.constant 0 : index
    %c0_90 = arith.constant 0 : index
    %217 = vector.load %arg7[%c0_89, %c0_90] : memref<16x128xf32, #tpu.memory_space<vmem>>, vector<16x128xf32>
    tpu.vector_store %arg7[%c0_89, %c0_90], %216 {strides = array<i32>} : memref<16x128xf32, #tpu.memory_space<vmem>>, vector<16x128xf32>,
    return
  }
  func.func @transform_0(%arg0: i32) -> (i32, i32, i32) {
    %c0_i32 = arith.constant 0 : i32
    %c0_i32_0 = arith.constant 0 : i32
    %c0_i32_1 = arith.constant 0 : i32
    %c0_i32_2 = arith.constant 0 : i32
    return %c0_i32, %c0_i32_0, %c0_i32_1 : i32, i32, i32
  }
  func.func @transform_1(%arg0: i32) -> (i32, i32, i32) {
    %c0_i32 = arith.constant 0 : i32
    %c0_i32_0 = arith.constant 0 : i32
    %c0_i32_1 = arith.constant 0 : i32
    %c0_i32_2 = arith.constant 0 : i32
    return %c0_i32, %c0_i32_0, %c0_i32_1 : i32, i32, i32
  }
  func.func @transform_2(%arg0: i32) -> (i32, i32) {
    %c0_i32 = arith.constant 0 : i32
    %c0_i32_0 = arith.constant 0 : i32
    %c0_i32_1 = arith.constant 0 : i32
    return %c0_i32, %c0_i32_0 : i32, i32
  }
  func.func @transform_3(%arg0: i32) -> (i32, i32) {
    %c0_i32 = arith.constant 0 : i32
    %c0_i32_0 = arith.constant 0 : i32
    %c0_i32_1 = arith.constant 0 : i32
    return %c0_i32, %c0_i32_0 : i32, i32
  }
  func.func @transform_4(%arg0: i32) -> (i32, i32) {
    %c0_i32 = arith.constant 0 : i32
    %c0_i32_0 = arith.constant 0 : i32
    %c0_i32_1 = arith.constant 0 : i32
    return %c0_i32, %c0_i32_0 : i32, i32
  }
  func.func @transform_5(%arg0: i32) -> (i32, i32) {
    %c0_i32 = arith.constant 0 : i32
    %c0_i32_0 = arith.constant 0 : i32
    return %c0_i32, %arg0 : i32, i32
  }
  func.func @transform_6(%arg0: i32) -> (i32, i32) {
    %c0_i32 = arith.constant 0 : i32
    %c0_i32_0 = arith.constant 0 : i32
    return %c0_i32, %arg0 : i32, i32
  }
}

module attributes {stable_mosaic.version = 11 : i64} {
  func.func @kernel(%arg0: i32, %arg1: memref<3x32x48xbf16, #tpu.memory_space<vmem>>, %arg2: memref<3x16x16xbf16, #tpu.memory_space<vmem>>, %arg3: memref<32x32xf32, #tpu.memory_space<vmem>>, %arg4: memref<128x8xf32, #tpu.memory_space<vmem>>, %arg5: memref<8x128xf32, #tpu.memory_space<vmem>>, %arg6: memref<16x128xf32, #tpu.memory_space<vmem>>, %arg7: memref<16x128xf32, #tpu.memory_space<vmem>>, %arg8: memref<48x128xbf16, #tpu.memory_space<vmem>>) attributes {dimension_semantics = [#tpu.dimension_semantics<parallel>], iteration_bounds = array<i64: 2>, scalar_prefetch = 0 : i64, scratch_operands = 1 : i64, tpu.core_type = #tpu.core_type<tc>, window_params = [{pipeline_mode = #tpu.pipeline_mode<synchronous>, transform_indices = @transform_0, window_bounds = array<i64: 3, 32, 48>}, {pipeline_mode = #tpu.pipeline_mode<synchronous>, transform_indices = @transform_1, window_bounds = array<i64: 3, 16, 16>}, {pipeline_mode = #tpu.pipeline_mode<synchronous>, transform_indices = @transform_2, window_bounds = array<i64: 32, 32>}, {pipeline_mode = #tpu.pipeline_mode<synchronous>, transform_indices = @transform_3, window_bounds = array<i64: 128, 8>}, {pipeline_mode = #tpu.pipeline_mode<synchronous>, transform_indices = @transform_4, window_bounds = array<i64: 8, 128>}, {transform_indices = @transform_5, window_bounds = array<i64: 16, 128>}, {transform_indices = @transform_6, window_bounds = array<i64: 16, 128>}]} {
    %c0 = arith.constant 0 : index
    %c0_0 = arith.constant 0 : index
    %0 = vector.load %arg3[%c0, %c0_0] : memref<32x32xf32, #tpu.memory_space<vmem>>, vector<32x32xf32>
    %1 = tpu.iota {dimensions = array<i32: 1>} : vector<1x128xi32>
    %c128_i32 = arith.constant 128 : i32
    %c0_i32 = arith.constant 0 : i32
    %2 = arith.cmpi eq, %c128_i32, %c0_i32 : i32
    %c1_i32 = arith.constant 1 : i32
    %3 = arith.select %2, %c1_i32, %c128_i32 : i32
    %4 = vector.broadcast %3 : i32 to vector<1x128xi32>
    %5 = arith.remsi %1, %4 : vector<1x128xi32>
    %c0_i32_1 = arith.constant 0 : i32
    %6 = vector.broadcast %c0_i32_1 : i32 to vector<1x128xi32>
    %7 = arith.cmpi ne, %5, %6 : vector<1x128xi32>
    %c0_i32_2 = arith.constant 0 : i32
    %8 = vector.broadcast %c0_i32_2 : i32 to vector<1x128xi32>
    %9 = arith.cmpi slt, %5, %8 : vector<1x128xi32>
    %c0_i32_3 = arith.constant 0 : i32
    %10 = arith.cmpi slt, %3, %c0_i32_3 : i32
    %11 = vector.broadcast %10 : i1 to vector<1x128xi1>
    %12 = vector.broadcast %11 : vector<1x128xi1> to vector<1x128xi1>
    %13 = arith.xori %9, %12 : vector<1x128xi1>
    %14 = arith.andi %13, %7 : vector<1x128xi1>
    %15 = vector.broadcast %3 : i32 to vector<1x128xi32>
    %16 = arith.addi %5, %15 : vector<1x128xi32>
    %17 = arith.select %14, %16, %5 : vector<1x128xi1>, vector<1x128xi32>
    %c0_4 = arith.constant 0 : index
    %c0_5 = arith.constant 0 : index
    %18 = vector.load %arg6[%c0_4, %c0_5] : memref<16x128xf32, #tpu.memory_space<vmem>>, vector<16x128xf32>
    %cst = arith.constant 0.000000e+00 : f32
    %19 = vector.broadcast %cst : f32 to vector<16x128xf32>
    %20 = arith.truncf %18 : vector<16x128xf32> to vector<16x128xbf16>
    %c1_i32_6 = arith.constant 1 : i32
    %21 = tpu.dynamic_rotate %18 by %c1_i32_6 dim 1 : vector<16x128xf32>, i32 -> vector<16x128xf32>
    %c127_i32 = arith.constant 127 : i32
    %22 = tpu.dynamic_rotate %18 by %c127_i32 dim 1 : vector<16x128xf32>, i32 -> vector<16x128xf32>
    %c1_i32_7 = arith.constant 1 : i32
    %23 = vector.broadcast %c1_i32_7 : i32 to vector<1x128xi32>
    %24 = arith.cmpi sge, %17, %23 : vector<1x128xi32>
    %cst_8 = arith.constant 0.000000e+00 : f32
    %25 = vector.shape_cast %24 : vector<1x128xi1> to vector<1x128xi1>
    %26 = vector.broadcast %25 : vector<1x128xi1> to vector<16x128xi1>
    %27 = vector.broadcast %cst_8 : f32 to vector<16x128xf32>
    %28 = arith.select %26, %21, %27 : vector<16x128xi1>, vector<16x128xf32>
    %29 = arith.truncf %28 : vector<16x128xf32> to vector<16x128xbf16>
    %c0_9 = arith.constant 0 : index
    %c0_10 = arith.constant 0 : index
    %30 = vector.load %arg8[%c0_9, %c0_10] : memref<48x128xbf16, #tpu.memory_space<vmem>>, vector<16x128xbf16>
    tpu.vector_store %arg8[%c0_9, %c0_10], %29 {strides = array<i32>} : memref<48x128xbf16, #tpu.memory_space<vmem>>, vector<16x128xbf16>,
    %c16 = arith.constant 16 : index
    %c0_11 = arith.constant 0 : index
    %31 = vector.load %arg8[%c16, %c0_11] : memref<48x128xbf16, #tpu.memory_space<vmem>>, vector<16x128xbf16>
    tpu.vector_store %arg8[%c16, %c0_11], %20 {strides = array<i32>} : memref<48x128xbf16, #tpu.memory_space<vmem>>, vector<16x128xbf16>,
    %c127_i32_12 = arith.constant 127 : i32
    %32 = vector.broadcast %c127_i32_12 : i32 to vector<1x128xi32>
    %33 = arith.cmpi slt, %17, %32 : vector<1x128xi32>
    %cst_13 = arith.constant 0.000000e+00 : f32
    %34 = vector.shape_cast %33 : vector<1x128xi1> to vector<1x128xi1>
    %35 = vector.broadcast %34 : vector<1x128xi1> to vector<16x128xi1>
    %36 = vector.broadcast %cst_13 : f32 to vector<16x128xf32>
    %37 = arith.select %35, %22, %36 : vector<16x128xi1>, vector<16x128xf32>
    %38 = arith.truncf %37 : vector<16x128xf32> to vector<16x128xbf16>
    %c32 = arith.constant 32 : index
    %c0_14 = arith.constant 0 : index
    %39 = vector.load %arg8[%c32, %c0_14] : memref<48x128xbf16, #tpu.memory_space<vmem>>, vector<16x128xbf16>
    tpu.vector_store %arg8[%c32, %c0_14], %38 {strides = array<i32>} : memref<48x128xbf16, #tpu.memory_space<vmem>>, vector<16x128xbf16>,
    %c0_15 = arith.constant 0 : index
    %c0_16 = arith.constant 0 : index
    %c0_17 = arith.constant 0 : index
    %40 = vector.load %arg1[%c0_15, %c0_16, %c0_17] : memref<3x32x48xbf16, #tpu.memory_space<vmem>>, vector<1x32x48xbf16>
    %41 = vector.shape_cast %40 : vector<1x32x48xbf16> to vector<32x48xbf16>
    %c0_18 = arith.constant 0 : index
    %c0_19 = arith.constant 0 : index
    %42 = vector.load %arg8[%c0_18, %c0_19] : memref<48x128xbf16, #tpu.memory_space<vmem>>, vector<48x128xbf16>
    %cst_20 = arith.constant dense<0.000000e+00> : vector<32x128xf32>
    %43 = tpu.matmul %41, %42, %cst_20 {dimension_numbers = #tpu.dot_dimension_numbers<[1], [0], [0], [1], [0, 0, 1, 1], [], []>} : vector<32x48xbf16>, vector<48x128xbf16>, vector<32x128xf32> -> vector<32x128xf32>
    %44 = vector.extract_strided_slice %43 {offsets = [0, 0], sizes = [16, 128], strides = [1, 1]} : vector<32x128xf32> to vector<16x128xf32>
    %45 = math.tanh %44 : vector<16x128xf32>
    %46 = vector.extract_strided_slice %43 {offsets = [16, 0], sizes = [16, 128], strides = [1, 1]} : vector<32x128xf32> to vector<16x128xf32>
    %47 = math.tanh %46 : vector<16x128xf32>
    %cst_21 = arith.constant 5.000000e-01 : f32
    %48 = vector.broadcast %cst_21 : f32 to vector<16x128xf32>
    %49 = arith.mulf %48, %47 : vector<16x128xf32>
    %cst_22 = arith.constant 5.000000e-01 : f32
    %50 = vector.broadcast %cst_22 : f32 to vector<16x128xf32>
    %51 = arith.addf %49, %50 : vector<16x128xf32>
    %52 = arith.mulf %45, %51 : vector<16x128xf32>
    %c0_23 = arith.constant 0 : index
    %c0_24 = arith.constant 0 : index
    %c0_25 = arith.constant 0 : index
    %53 = vector.load %arg2[%c0_23, %c0_24, %c0_25] : memref<3x16x16xbf16, #tpu.memory_space<vmem>>, vector<1x16x16xbf16>
    %54 = vector.shape_cast %53 : vector<1x16x16xbf16> to vector<16x16xbf16>
    %55 = arith.truncf %52 : vector<16x128xf32> to vector<16x128xbf16>
    %cst_26 = arith.constant dense<0.000000e+00> : vector<16x128xf32>
    %56 = tpu.matmul %54, %55, %cst_26 {dimension_numbers = #tpu.dot_dimension_numbers<[1], [0], [0], [1], [0, 0, 1, 1], [], []>} : vector<16x16xbf16>, vector<16x128xbf16>, vector<16x128xf32> -> vector<16x128xf32>
    %57 = arith.addf %18, %56 : vector<16x128xf32>
    %cst_27 = arith.constant dense<0.000000e+00> : vector<16xf32>
    %58 = vector.multi_reduction <add>, %57, %cst_27 [1] : vector<16x128xf32> to vector<16xf32>
    %59 = vector.shape_cast %58 : vector<16xf32> to vector<16x1xf32>
    %60 = arith.mulf %57, %57 : vector<16x128xf32>
    %cst_28 = arith.constant dense<0.000000e+00> : vector<16xf32>
    %61 = vector.multi_reduction <add>, %60, %cst_28 [1] : vector<16x128xf32> to vector<16xf32>
    %62 = vector.shape_cast %61 : vector<16xf32> to vector<16x1xf32>
    %63 = tpu.concatenate %59, %62 in 0 : vector<16x1xf32>, vector<16x1xf32> -> vector<32x1xf32>
    %cst_29 = arith.constant 7.812500e-03 : f32
    %64 = vector.broadcast %cst_29 : f32 to vector<32x1xf32>
    %65 = arith.mulf %63, %64 : vector<32x1xf32>
    %cst_30 = arith.constant dense<0.000000e+00> : vector<32x1xf32>
    %66 = tpu.matmul %0, %65, %cst_30 {dimension_numbers = #tpu.dot_dimension_numbers<[1], [0], [0], [1], [0, 0, 1, 1], [], []>, precision = #tpu.contract_precision<fp32>} : vector<32x32xf32>, vector<32x1xf32>, vector<32x1xf32> -> vector<32x1xf32>
    %67 = vector.extract_strided_slice %66 {offsets = [0, 0], sizes = [16, 1], strides = [1, 1]} : vector<32x1xf32> to vector<16x1xf32>
    %68 = vector.extract_strided_slice %66 {offsets = [16, 0], sizes = [16, 1], strides = [1, 1]} : vector<32x1xf32> to vector<16x1xf32>
    %69 = arith.mulf %67, %67 : vector<16x1xf32>
    %70 = arith.subf %68, %69 : vector<16x1xf32>
    %cst_31 = arith.constant 9.99999974E-6 : f32
    %71 = vector.broadcast %cst_31 : f32 to vector<16x1xf32>
    %72 = arith.addf %70, %71 : vector<16x1xf32>
    %73 = math.rsqrt %72 : vector<16x1xf32>
    %74 = vector.broadcast %67 : vector<16x1xf32> to vector<16x128xf32>
    %75 = arith.subf %57, %74 : vector<16x128xf32>
    %76 = vector.broadcast %73 : vector<16x1xf32> to vector<16x128xf32>
    %77 = arith.mulf %75, %76 : vector<16x128xf32>
    %78 = arith.addf %19, %77 : vector<16x128xf32>
    %79 = arith.truncf %56 : vector<16x128xf32> to vector<16x128xbf16>
    %c2_i32 = arith.constant 2 : i32
    %80 = tpu.dynamic_rotate %56 by %c2_i32 dim 1 : vector<16x128xf32>, i32 -> vector<16x128xf32>
    %c126_i32 = arith.constant 126 : i32
    %81 = tpu.dynamic_rotate %56 by %c126_i32 dim 1 : vector<16x128xf32>, i32 -> vector<16x128xf32>
    %c2_i32_32 = arith.constant 2 : i32
    %82 = vector.broadcast %c2_i32_32 : i32 to vector<1x128xi32>
    %83 = arith.cmpi sge, %17, %82 : vector<1x128xi32>
    %cst_33 = arith.constant 0.000000e+00 : f32
    %84 = vector.shape_cast %83 : vector<1x128xi1> to vector<1x128xi1>
    %85 = vector.broadcast %84 : vector<1x128xi1> to vector<16x128xi1>
    %86 = vector.broadcast %cst_33 : f32 to vector<16x128xf32>
    %87 = arith.select %85, %80, %86 : vector<16x128xi1>, vector<16x128xf32>
    %88 = arith.truncf %87 : vector<16x128xf32> to vector<16x128xbf16>
    %c0_34 = arith.constant 0 : index
    %c0_35 = arith.constant 0 : index
    %89 = vector.load %arg8[%c0_34, %c0_35] : memref<48x128xbf16, #tpu.memory_space<vmem>>, vector<16x128xbf16>
    tpu.vector_store %arg8[%c0_34, %c0_35], %88 {strides = array<i32>} : memref<48x128xbf16, #tpu.memory_space<vmem>>, vector<16x128xbf16>,
    %c16_36 = arith.constant 16 : index
    %c0_37 = arith.constant 0 : index
    %90 = vector.load %arg8[%c16_36, %c0_37] : memref<48x128xbf16, #tpu.memory_space<vmem>>, vector<16x128xbf16>
    tpu.vector_store %arg8[%c16_36, %c0_37], %79 {strides = array<i32>} : memref<48x128xbf16, #tpu.memory_space<vmem>>, vector<16x128xbf16>,
    %c126_i32_38 = arith.constant 126 : i32
    %91 = vector.broadcast %c126_i32_38 : i32 to vector<1x128xi32>
    %92 = arith.cmpi slt, %17, %91 : vector<1x128xi32>
    %cst_39 = arith.constant 0.000000e+00 : f32
    %93 = vector.shape_cast %92 : vector<1x128xi1> to vector<1x128xi1>
    %94 = vector.broadcast %93 : vector<1x128xi1> to vector<16x128xi1>
    %95 = vector.broadcast %cst_39 : f32 to vector<16x128xf32>
    %96 = arith.select %94, %81, %95 : vector<16x128xi1>, vector<16x128xf32>
    %97 = arith.truncf %96 : vector<16x128xf32> to vector<16x128xbf16>
    %c32_40 = arith.constant 32 : index
    %c0_41 = arith.constant 0 : index
    %98 = vector.load %arg8[%c32_40, %c0_41] : memref<48x128xbf16, #tpu.memory_space<vmem>>, vector<16x128xbf16>
    tpu.vector_store %arg8[%c32_40, %c0_41], %97 {strides = array<i32>} : memref<48x128xbf16, #tpu.memory_space<vmem>>, vector<16x128xbf16>,
    %c1 = arith.constant 1 : index
    %c0_42 = arith.constant 0 : index
    %c0_43 = arith.constant 0 : index
    %99 = vector.load %arg1[%c1, %c0_42, %c0_43] : memref<3x32x48xbf16, #tpu.memory_space<vmem>>, vector<1x32x48xbf16>
    %100 = vector.shape_cast %99 : vector<1x32x48xbf16> to vector<32x48xbf16>
    %c0_44 = arith.constant 0 : index
    %c0_45 = arith.constant 0 : index
    %101 = vector.load %arg8[%c0_44, %c0_45] : memref<48x128xbf16, #tpu.memory_space<vmem>>, vector<48x128xbf16>
    %cst_46 = arith.constant dense<0.000000e+00> : vector<32x128xf32>
    %102 = tpu.matmul %100, %101, %cst_46 {dimension_numbers = #tpu.dot_dimension_numbers<[1], [0], [0], [1], [0, 0, 1, 1], [], []>} : vector<32x48xbf16>, vector<48x128xbf16>, vector<32x128xf32> -> vector<32x128xf32>
    %103 = vector.extract_strided_slice %102 {offsets = [0, 0], sizes = [16, 128], strides = [1, 1]} : vector<32x128xf32> to vector<16x128xf32>
    %104 = math.tanh %103 : vector<16x128xf32>
    %105 = vector.extract_strided_slice %102 {offsets = [16, 0], sizes = [16, 128], strides = [1, 1]} : vector<32x128xf32> to vector<16x128xf32>
    %106 = math.tanh %105 : vector<16x128xf32>
    %cst_47 = arith.constant 5.000000e-01 : f32
    %107 = vector.broadcast %cst_47 : f32 to vector<16x128xf32>
    %108 = arith.mulf %107, %106 : vector<16x128xf32>
    %cst_48 = arith.constant 5.000000e-01 : f32
    %109 = vector.broadcast %cst_48 : f32 to vector<16x128xf32>
    %110 = arith.addf %108, %109 : vector<16x128xf32>
    %111 = arith.mulf %104, %110 : vector<16x128xf32>
    %c1_49 = arith.constant 1 : index
    %c0_50 = arith.constant 0 : index
    %c0_51 = arith.constant 0 : index
    %112 = vector.load %arg2[%c1_49, %c0_50, %c0_51] : memref<3x16x16xbf16, #tpu.memory_space<vmem>>, vector<1x16x16xbf16>
    %113 = vector.shape_cast %112 : vector<1x16x16xbf16> to vector<16x16xbf16>
    %114 = arith.truncf %111 : vector<16x128xf32> to vector<16x128xbf16>
    %cst_52 = arith.constant dense<0.000000e+00> : vector<16x128xf32>
    %115 = tpu.matmul %113, %114, %cst_52 {dimension_numbers = #tpu.dot_dimension_numbers<[1], [0], [0], [1], [0, 0, 1, 1], [], []>} : vector<16x16xbf16>, vector<16x128xbf16>, vector<16x128xf32> -> vector<16x128xf32>
    %116 = arith.addf %77, %115 : vector<16x128xf32>
    %cst_53 = arith.constant dense<0.000000e+00> : vector<16xf32>
    %117 = vector.multi_reduction <add>, %116, %cst_53 [1] : vector<16x128xf32> to vector<16xf32>
    %118 = vector.shape_cast %117 : vector<16xf32> to vector<16x1xf32>
    %119 = arith.mulf %116, %116 : vector<16x128xf32>
    %cst_54 = arith.constant dense<0.000000e+00> : vector<16xf32>
    %120 = vector.multi_reduction <add>, %119, %cst_54 [1] : vector<16x128xf32> to vector<16xf32>
    %121 = vector.shape_cast %120 : vector<16xf32> to vector<16x1xf32>
    %122 = tpu.concatenate %118, %121 in 0 : vector<16x1xf32>, vector<16x1xf32> -> vector<32x1xf32>
    %cst_55 = arith.constant 7.812500e-03 : f32
    %123 = vector.broadcast %cst_55 : f32 to vector<32x1xf32>
    %124 = arith.mulf %122, %123 : vector<32x1xf32>
    %cst_56 = arith.constant dense<0.000000e+00> : vector<32x1xf32>
    %125 = tpu.matmul %0, %124, %cst_56 {dimension_numbers = #tpu.dot_dimension_numbers<[1], [0], [0], [1], [0, 0, 1, 1], [], []>, precision = #tpu.contract_precision<fp32>} : vector<32x32xf32>, vector<32x1xf32>, vector<32x1xf32> -> vector<32x1xf32>
    %126 = vector.extract_strided_slice %125 {offsets = [0, 0], sizes = [16, 1], strides = [1, 1]} : vector<32x1xf32> to vector<16x1xf32>
    %127 = vector.extract_strided_slice %125 {offsets = [16, 0], sizes = [16, 1], strides = [1, 1]} : vector<32x1xf32> to vector<16x1xf32>
    %128 = arith.mulf %126, %126 : vector<16x1xf32>
    %129 = arith.subf %127, %128 : vector<16x1xf32>
    %cst_57 = arith.constant 9.99999974E-6 : f32
    %130 = vector.broadcast %cst_57 : f32 to vector<16x1xf32>
    %131 = arith.addf %129, %130 : vector<16x1xf32>
    %132 = math.rsqrt %131 : vector<16x1xf32>
    %133 = vector.broadcast %126 : vector<16x1xf32> to vector<16x128xf32>
    %134 = arith.subf %116, %133 : vector<16x128xf32>
    %135 = vector.broadcast %132 : vector<16x1xf32> to vector<16x128xf32>
    %136 = arith.mulf %134, %135 : vector<16x128xf32>
    %137 = arith.addf %78, %136 : vector<16x128xf32>
    %138 = arith.truncf %115 : vector<16x128xf32> to vector<16x128xbf16>
    %c4_i32 = arith.constant 4 : i32
    %139 = tpu.dynamic_rotate %115 by %c4_i32 dim 1 : vector<16x128xf32>, i32 -> vector<16x128xf32>
    %c124_i32 = arith.constant 124 : i32
    %140 = tpu.dynamic_rotate %115 by %c124_i32 dim 1 : vector<16x128xf32>, i32 -> vector<16x128xf32>
    %c4_i32_58 = arith.constant 4 : i32
    %141 = vector.broadcast %c4_i32_58 : i32 to vector<1x128xi32>
    %142 = arith.cmpi sge, %17, %141 : vector<1x128xi32>
    %cst_59 = arith.constant 0.000000e+00 : f32
    %143 = vector.shape_cast %142 : vector<1x128xi1> to vector<1x128xi1>
    %144 = vector.broadcast %143 : vector<1x128xi1> to vector<16x128xi1>
    %145 = vector.broadcast %cst_59 : f32 to vector<16x128xf32>
    %146 = arith.select %144, %139, %145 : vector<16x128xi1>, vector<16x128xf32>
    %147 = arith.truncf %146 : vector<16x128xf32> to vector<16x128xbf16>
    %c0_60 = arith.constant 0 : index
    %c0_61 = arith.constant 0 : index
    %148 = vector.load %arg8[%c0_60, %c0_61] : memref<48x128xbf16, #tpu.memory_space<vmem>>, vector<16x128xbf16>
    tpu.vector_store %arg8[%c0_60, %c0_61], %147 {strides = array<i32>} : memref<48x128xbf16, #tpu.memory_space<vmem>>, vector<16x128xbf16>,
    %c16_62 = arith.constant 16 : index
    %c0_63 = arith.constant 0 : index
    %149 = vector.load %arg8[%c16_62, %c0_63] : memref<48x128xbf16, #tpu.memory_space<vmem>>, vector<16x128xbf16>
    tpu.vector_store %arg8[%c16_62, %c0_63], %138 {strides = array<i32>} : memref<48x128xbf16, #tpu.memory_space<vmem>>, vector<16x128xbf16>,
    %c124_i32_64 = arith.constant 124 : i32
    %150 = vector.broadcast %c124_i32_64 : i32 to vector<1x128xi32>
    %151 = arith.cmpi slt, %17, %150 : vector<1x128xi32>
    %cst_65 = arith.constant 0.000000e+00 : f32
    %152 = vector.shape_cast %151 : vector<1x128xi1> to vector<1x128xi1>
    %153 = vector.broadcast %152 : vector<1x128xi1> to vector<16x128xi1>
    %154 = vector.broadcast %cst_65 : f32 to vector<16x128xf32>
    %155 = arith.select %153, %140, %154 : vector<16x128xi1>, vector<16x128xf32>
    %156 = arith.truncf %155 : vector<16x128xf32> to vector<16x128xbf16>
    %c32_66 = arith.constant 32 : index
    %c0_67 = arith.constant 0 : index
    %157 = vector.load %arg8[%c32_66, %c0_67] : memref<48x128xbf16, #tpu.memory_space<vmem>>, vector<16x128xbf16>
    tpu.vector_store %arg8[%c32_66, %c0_67], %156 {strides = array<i32>} : memref<48x128xbf16, #tpu.memory_space<vmem>>, vector<16x128xbf16>,
    %c2 = arith.constant 2 : index
    %c0_68 = arith.constant 0 : index
    %c0_69 = arith.constant 0 : index
    %158 = vector.load %arg1[%c2, %c0_68, %c0_69] : memref<3x32x48xbf16, #tpu.memory_space<vmem>>, vector<1x32x48xbf16>
    %159 = vector.shape_cast %158 : vector<1x32x48xbf16> to vector<32x48xbf16>
    %c0_70 = arith.constant 0 : index
    %c0_71 = arith.constant 0 : index
    %160 = vector.load %arg8[%c0_70, %c0_71] : memref<48x128xbf16, #tpu.memory_space<vmem>>, vector<48x128xbf16>
    %cst_72 = arith.constant dense<0.000000e+00> : vector<32x128xf32>
    %161 = tpu.matmul %159, %160, %cst_72 {dimension_numbers = #tpu.dot_dimension_numbers<[1], [0], [0], [1], [0, 0, 1, 1], [], []>} : vector<32x48xbf16>, vector<48x128xbf16>, vector<32x128xf32> -> vector<32x128xf32>
    %162 = vector.extract_strided_slice %161 {offsets = [0, 0], sizes = [16, 128], strides = [1, 1]} : vector<32x128xf32> to vector<16x128xf32>
    %163 = math.tanh %162 : vector<16x128xf32>
    %164 = vector.extract_strided_slice %161 {offsets = [16, 0], sizes = [16, 128], strides = [1, 1]} : vector<32x128xf32> to vector<16x128xf32>
    %165 = math.tanh %164 : vector<16x128xf32>
    %cst_73 = arith.constant 5.000000e-01 : f32
    %166 = vector.broadcast %cst_73 : f32 to vector<16x128xf32>
    %167 = arith.mulf %166, %165 : vector<16x128xf32>
    %cst_74 = arith.constant 5.000000e-01 : f32
    %168 = vector.broadcast %cst_74 : f32 to vector<16x128xf32>
    %169 = arith.addf %167, %168 : vector<16x128xf32>
    %170 = arith.mulf %163, %169 : vector<16x128xf32>
    %c2_75 = arith.constant 2 : index
    %c0_76 = arith.constant 0 : index
    %c0_77 = arith.constant 0 : index
    %171 = vector.load %arg2[%c2_75, %c0_76, %c0_77] : memref<3x16x16xbf16, #tpu.memory_space<vmem>>, vector<1x16x16xbf16>
    %172 = vector.shape_cast %171 : vector<1x16x16xbf16> to vector<16x16xbf16>
    %173 = arith.truncf %170 : vector<16x128xf32> to vector<16x128xbf16>
    %cst_78 = arith.constant dense<0.000000e+00> : vector<16x128xf32>
    %174 = tpu.matmul %172, %173, %cst_78 {dimension_numbers = #tpu.dot_dimension_numbers<[1], [0], [0], [1], [0, 0, 1, 1], [], []>} : vector<16x16xbf16>, vector<16x128xbf16>, vector<16x128xf32> -> vector<16x128xf32>
    %175 = arith.addf %136, %174 : vector<16x128xf32>
    %cst_79 = arith.constant dense<0.000000e+00> : vector<16xf32>
    %176 = vector.multi_reduction <add>, %175, %cst_79 [1] : vector<16x128xf32> to vector<16xf32>
    %177 = vector.shape_cast %176 : vector<16xf32> to vector<16x1xf32>
    %178 = arith.mulf %175, %175 : vector<16x128xf32>
    %cst_80 = arith.constant dense<0.000000e+00> : vector<16xf32>
    %179 = vector.multi_reduction <add>, %178, %cst_80 [1] : vector<16x128xf32> to vector<16xf32>
    %180 = vector.shape_cast %179 : vector<16xf32> to vector<16x1xf32>
    %181 = tpu.concatenate %177, %180 in 0 : vector<16x1xf32>, vector<16x1xf32> -> vector<32x1xf32>
    %cst_81 = arith.constant 7.812500e-03 : f32
    %182 = vector.broadcast %cst_81 : f32 to vector<32x1xf32>
    %183 = arith.mulf %181, %182 : vector<32x1xf32>
    %cst_82 = arith.constant dense<0.000000e+00> : vector<32x1xf32>
    %184 = tpu.matmul %0, %183, %cst_82 {dimension_numbers = #tpu.dot_dimension_numbers<[1], [0], [0], [1], [0, 0, 1, 1], [], []>, precision = #tpu.contract_precision<fp32>} : vector<32x32xf32>, vector<32x1xf32>, vector<32x1xf32> -> vector<32x1xf32>
    %185 = vector.extract_strided_slice %184 {offsets = [0, 0], sizes = [16, 1], strides = [1, 1]} : vector<32x1xf32> to vector<16x1xf32>
    %186 = vector.extract_strided_slice %184 {offsets = [16, 0], sizes = [16, 1], strides = [1, 1]} : vector<32x1xf32> to vector<16x1xf32>
    %187 = arith.mulf %185, %185 : vector<16x1xf32>
    %188 = arith.subf %186, %187 : vector<16x1xf32>
    %cst_83 = arith.constant 9.99999974E-6 : f32
    %189 = vector.broadcast %cst_83 : f32 to vector<16x1xf32>
    %190 = arith.addf %188, %189 : vector<16x1xf32>
    %191 = math.rsqrt %190 : vector<16x1xf32>
    %192 = vector.broadcast %185 : vector<16x1xf32> to vector<16x128xf32>
    %193 = arith.subf %175, %192 : vector<16x128xf32>
    %194 = vector.broadcast %191 : vector<16x1xf32> to vector<16x128xf32>
    %195 = arith.mulf %193, %194 : vector<16x128xf32>
    %196 = arith.addf %137, %195 : vector<16x128xf32>
    %cst_84 = arith.constant dense<0.000000e+00> : vector<16xf32>
    %197 = vector.multi_reduction <add>, %196, %cst_84 [1] : vector<16x128xf32> to vector<16xf32>
    %198 = vector.shape_cast %197 : vector<16xf32> to vector<16x1xf32>
    %199 = arith.mulf %196, %196 : vector<16x128xf32>
    %cst_85 = arith.constant dense<0.000000e+00> : vector<16xf32>
    %200 = vector.multi_reduction <add>, %199, %cst_85 [1] : vector<16x128xf32> to vector<16xf32>
    %201 = vector.shape_cast %200 : vector<16xf32> to vector<16x1xf32>
    %202 = tpu.concatenate %198, %201 in 0 : vector<16x1xf32>, vector<16x1xf32> -> vector<32x1xf32>
    %cst_86 = arith.constant 7.812500e-03 : f32
    %203 = vector.broadcast %cst_86 : f32 to vector<32x1xf32>
    %204 = arith.mulf %202, %203 : vector<32x1xf32>
    %cst_87 = arith.constant dense<0.000000e+00> : vector<32x1xf32>
    %205 = tpu.matmul %0, %204, %cst_87 {dimension_numbers = #tpu.dot_dimension_numbers<[1], [0], [0], [1], [0, 0, 1, 1], [], []>, precision = #tpu.contract_precision<fp32>} : vector<32x32xf32>, vector<32x1xf32>, vector<32x1xf32> -> vector<32x1xf32>
    %206 = vector.extract_strided_slice %205 {offsets = [0, 0], sizes = [16, 1], strides = [1, 1]} : vector<32x1xf32> to vector<16x1xf32>
    %207 = vector.extract_strided_slice %205 {offsets = [16, 0], sizes = [16, 1], strides = [1, 1]} : vector<32x1xf32> to vector<16x1xf32>
    %208 = arith.mulf %206, %206 : vector<16x1xf32>
    %209 = arith.subf %207, %208 : vector<16x1xf32>
    %cst_88 = arith.constant 9.99999974E-6 : f32
    %210 = vector.broadcast %cst_88 : f32 to vector<16x1xf32>
    %211 = arith.addf %209, %210 : vector<16x1xf32>
    %212 = math.rsqrt %211 : vector<16x1xf32>
    %213 = vector.broadcast %206 : vector<16x1xf32> to vector<16x128xf32>
    %214 = arith.subf %196, %213 : vector<16x128xf32>
    %215 = vector.broadcast %212 : vector<16x1xf32> to vector<16x128xf32>
    %216 = arith.mulf %214, %215 : vector<16x128xf32>
    %c0_89 = arith.constant 0 : index
    %c0_90 = arith.constant 0 : index
    %217 = vector.load %arg7[%c0_89, %c0_90] : memref<16x128xf32, #tpu.memory_space<vmem>>, vector<16x128xf32>
    tpu.vector_store %arg7[%c0_89, %c0_90], %216 {strides = array<i32>} : memref<16x128xf32, #tpu.memory_space<vmem>>, vector<16x128xf32>,
    return
  }
  func.func @transform_0(%arg0: i32) -> (i32, i32, i32) {
    %c0_i32 = arith.constant 0 : i32
    %c0_i32_0 = arith.constant 0 : i32
    %c0_i32_1 = arith.constant 0 : i32
    %c0_i32_2 = arith.constant 0 : i32
    return %c0_i32, %c0_i32_0, %c0_i32_1 : i32, i32, i32
  }
  func.func @transform_1(%arg0: i32) -> (i32, i32, i32) {
    %c0_i32 = arith.constant 0 : i32
    %c0_i32_0 = arith.constant 0 : i32
    %c0_i32_1 = arith.constant 0 : i32
    %c0_i32_2 = arith.constant 0 : i32
    return %c0_i32, %c0_i32_0, %c0_i32_1 : i32, i32, i32
  }
  func.func @transform_2(%arg0: i32) -> (i32, i32) {
    %c0_i32 = arith.constant 0 : i32
    %c0_i32_0 = arith.constant 0 : i32
    %c0_i32_1 = arith.constant 0 : i32
    return %c0_i32, %c0_i32_0 : i32, i32
  }
  func.func @transform_3(%arg0: i32) -> (i32, i32) {
    %c0_i32 = arith.constant 0 : i32
    %c0_i32_0 = arith.constant 0 : i32
    %c0_i32_1 = arith.constant 0 : i32
    return %c0_i32, %c0_i32_0 : i32, i32
  }
  func.func @transform_4(%arg0: i32) -> (i32, i32) {
    %c0_i32 = arith.constant 0 : i32
    %c0_i32_0 = arith.constant 0 : i32
    %c0_i32_1 = arith.constant 0 : i32
    return %c0_i32, %c0_i32_0 : i32, i32
  }
  func.func @transform_5(%arg0: i32) -> (i32, i32) {
    %c0_i32 = arith.constant 0 : i32
    %c0_i32_0 = arith.constant 0 : i32
    return %c0_i32, %arg0 : i32, i32
  }
  func.func @transform_6(%arg0: i32) -> (i32, i32) {
    %c0_i32 = arith.constant 0 : i32
    %c0_i32_0 = arith.constant 0 : i32
    return %c0_i32, %arg0 : i32, i32
  }
}

</mosaic_0001>

<bundles_post_ra>
// kernel: tpu_custom_call.1
= control target key start
LH: loop header
LB: loop body
LE: loop exit
PB: predicated region body
PF: predicated region fallthrough
CT: control target
= control target key end

     0   :  { %11 = vsyncpa [#allocation4], 0  ;;  %s3101_s0 = inlined_call_operand.vmem [shape: bf16[3,32,48], index: 0, kind: input, shape index: {}]   ;;  %s3102_s1 = inlined_call_operand.vmem [shape: bf16[3,16,16], index: 1, kind: input, shape index: {}]   ;;  %s3103_s2 = inlined_call_operand.vmem [shape: f32[32,32], index: 2, kind: input, shape index: {}]   ;;  %s3104_s3 = inlined_call_operand.vmem [shape: f32[128,8], index: 3, kind: input, shape index: {}]   ;;  %s3105_s4 = inlined_call_operand.hbm [shape: f32[8,128], index: 4, kind: input, shape index: {}]   ;;  %s3106_s5 = inlined_call_operand.vmem [shape: f32[16,256], index: 5, kind: input, shape index: {}]   ;;  %s3107_s6 = inlined_call_operand.hbm [shape: f32[16,256], index: 6, kind: output, shape index: {}]  }
   0x1   :  { %12 = vsyncpa [#allocation5], 0 }
   0x2   :  { %14 = vsyncpa [#allocation5 + $0x1], 0  ;;  %s2662_s21 = smov 0   ;;  %s2664_s22 = smov 0  }
   0x3   :  { %s2666_s23 = smov 0   ;;  %s2668_s24 = smov 0  }
   0x4 LB: > { %s2683_s3 = sadd.s32 4294967295, %s2614_s24   ;;  %s2205_s25 = sadd.s32 4294967294, %s2614_s24   ;;  %s2614_s24 = sphi %s2668_s24, %s3115_s24   ;;  %s2610_s23 = sphi %s2666_s23, %s3114_s23   ;;  %s2606_s22 = sphi %s2664_s22, %s3113_s22   ;;  %s2602_s21 = sphi %s2662_s21, %s3112_s21  }
   0x5   : > { %s2687_s26 = sadd.s32 1, %s2614_s24   ;;  %s132_s27 = sadd.s32 1, %s2610_s23 }
   0x6   : > { %s129_s28 = ssub.s32 %s2614_s24, %s2687_s26  ;;  %p139_p0 = scmp.ne.s32.totalorder %s2610_s23, %s2606_s22 }
   0x7   : > { %p130_p1 = scmp.eq.s32.totalorder %s129_s28, 0  ;;  %p140_p2 = scmp.eq.s32.totalorder %s2614_s24, 0 }
   0x8   : > { %p169_p3 = scmp.eq.s32.totalorder %s2683_s3, 1  ;;  %p174_p4 = scmp.ne.s32.totalorder %s2606_s22, %s2602_s21 }
   0x9   : > { %s2699_s29 = scalar_select %p130_p1, %s2610_s23, %s132_s27  }
   0xa   : > { %p2701_p5 = por %p140_p2, %p139_p0  ;;  %p2705_p6 = por %p169_p3, %p139_p0 }
   0xb   : > { %p175_p7 = scmp.eq.s32.totalorder %s2205_s25, 1  ;;  %p2206_p8 = scmp.ge.s32.totalorder %s2614_s24, 1 }
   0xc   : > { %p182_p9 = scmp.lt.s32.totalorder %s2614_s24, 3  ;;  %p2399_p11 = scmp.eq.s32.totalorder %s2683_s3, 0 }
   0xd   : > { %p2711_p10 = por %p175_p7, %p174_p4  ;;  %s206_s12 = sshll.u32 %s3105_s4, 4  ;;  %s207_s12 = int_to_ptr.hbm [resolvable:$true] %s206_s12 }
   0xe   : > { %p2716_p12 = pnand %p2206_p8, %p182_p9  ;;  %s2616_s13 = smov [#allocation3]  }
   0xf   : > { %s208_s14 = sshll.u32 %s2616_s13, 4  ;;  %p2208_p1 = scmp.ge.s32.totalorder %s2614_s24, 2  ;;  %s209_s14 = int_to_ptr.vmem [resolvable:$true] %s208_s14 }
  0x10   : > { %p2391_p13 = pneg %p2716_p12 }
  0x11   : > { %215 = sbr.rel (%p2208_p1) target bundleno = 28 (0x1c), region = 36 }
  0x12   : > { %p2392_p0 = pnand %p2399_p11, %p2391_p13 }
  0x14   : > { %2394 = dma.hbm_to_vmem [thread:$0]  (!%p2392_p0), %s207_s12, 128, %s209_s14, [#allocation4]  }
  0x16   : > { %218 = sbr.rel (!%p2701_p5) target bundleno = 28 (0x1c), region = 40  ;;  %s220_s15 = sand.u32 (%p2701_p5), 1, %s2610_s23  }
  0x17   : > { %s2210_s16 = sshll.u32 (%p2701_p5), %s2614_s24, 3  ;;  %s2209_s17 = sshll.u32 (%p2701_p5), %s220_s15, 4 }
  0x18   : > { %s224_s20 = scalar_lea.vmem (%p2701_p5), %s3106_s5, %s2210_s16  ;;  %s222_s25 = scalar_lea.vmem (%p2701_p5), [#allocation6], %s2209_s17 }
  0x19   : > { %v255_v0 = vld [vmem:[%s224_s20] sm:$0xff] (%p2701_p5)  ;;  %v257_v1 = vld [vmem:[%s224_s20 + $0x10] sm:$0xff] (%p2701_p5) }
  0x1a   : > { %256 = vst [vmem:[%s222_s25] sm:$0xff] (%p2701_p5), %v255_v0 }
  0x1b   : > { %258 = vst [vmem:[%s222_s25 + $0x8] sm:$0xff] %v257_v1 }
  0x1c PF: > { %267 = sbr.rel (%p2716_p12) target bundleno = 2370 (0x942), region = 78 }
  0x21   : > { %2593 = dma.done.wait (%p2399_p11), [#allocation4], 128  }
  0x22   : > { %2595 = vsyncadd (%p2399_p11), [#allocation4], 4294967168  ;;  %s275_s27 = sand.u32 1, %s2606_s22   ;;  %s2617_s9 = smov 127   ;;  %v309_v6 = vlaneseq  ;;  %v2312_v23 = vld [vmem:[%s3101_s0] sm:$0xff]  ;;  %vm393_vm2 = vcmask 392192  }
  0x23   : > { %s2746_s28 = sshll.u32 %s275_s27, 4  ;;  %s2618_s10 = smov 1   ;;  %v2313_v24 = vld [vmem:[%s3101_s0 + $0x8] sm:$0xff]  ;;  %v2317_v40 = vld [vmem:[%s3102_s1] sm:$0xff]  ;;  %vm437_vm3 = vcmask 130048   ;;  %vm471_vm4 = vcmask 261120  }
  0x24   : > { %s277_s30 = scalar_lea.vmem [#allocation6], %s2746_s28  ;;  %v2753_v7 = vand.u32 127, %v309_v6  ;;  %s2619_s17 = smov 126   ;;  %v305_v49 = vld [vmem:[%s3103_s2] sm:$0xff]  ;;  %v306_v54 = vld [vmem:[%s3103_s2 + $0x8] sm:$0xff] }
  0x25   : > { %v323_v2 = vld [vmem:[%s277_s30] sm:$0xff]  ;;  %v2749_v3 = vld [vmem:[%s277_s30 + $0x8] sm:$0xff]  ;;  %s2620_s18 = smov 2   ;;  %v473_v50 = vsel %vm471_vm4, %v305_v49, 0  ;;  %v476_v61 = vsel %vm471_vm4, %v306_v54, 0  ;;  %s2622_s19 = smov 4  }
  0x26   : > { %v2445_v4 = vpack.i.bf16 %v2749_v3, %v323_v2  ;;  %v2338_v5 = vpack.c.bf16 %v2749_v3, %v323_v2  ;;  %vm346_vm0 = vcmp.lt.s32.totalorder %v2753_v7, 127  ;;  %vm335_vm1 = vcmp.ge.s32.totalorder %v2753_v7, 1  ;;  %s2623_s20 = smov 124   ;;  %s2309_s13 = sshll.u32 %s2683_s3, 3 }
  0x27   : > { %v2784_v52 = vand.u32 4294901760, %v473_v50  ;;  %vm835_vm5 = vcmp.lt.s32.totalorder %v2753_v7, 126  ;;  %v2801_v6 = vand.u32 4294901760, %v476_v61  ;;  %vm824_vm6 = vcmp.ge.s32.totalorder %v2753_v7, 2  ;;  %s303_s14 = scalar_lea.vmem [#allocation7], %s2746_s28  ;;  %s2111_s3 = scalar_lea.sflag [#allocation5], %s275_s27 }
  0x28   : > { %2446 = vrot.lane.b32.xlu0 %v2445_v4, %s2617_s9  ;;  %2375 = vst [vmem:[#allocation2] sm:$0xff] %v2338_v5   ;;  %vm1311_vm13 = vcmp.lt.s32.totalorder %v2753_v7, 124  ;;  %vm1300_vm14 = vcmp.ge.s32.totalorder %v2753_v7, 4  ;;  %s2568_s9 = scalar_lea.hbm %s3107_s6, 32 }
  0x29   : > { %v2790_v55 = vsub.f32 %v473_v50, %v2784_v52 }
  0x2f   : > { %v2315_v21 = vld [vmem:[#allocation2] sm:$0xff] }
  0x30   : > { %2451 = vrot.lane.b32.xlu0 %v2445_v4, %s2618_s10 }
  0x9a   : > { %v2447_v8 = vpop.permute.xlu0 %2446 }
  0x9b   : > { %v2449_v9 = vunpack.i.h.bf16 %v2447_v8  ;;  %v2448_v10 = vunpack.i.l.bf16 %v2447_v8 }
  0x9d   : > { %v350_v11 = vsel %vm346_vm0, %v2449_v9, 0.0  ;;  %v349_v12 = vsel %vm346_vm0, %v2448_v10, 0.0  ;;  %v307_v10 = vld [vmem:[%s3103_s2 + $0x10] sm:$0xff] }
  0x9e   : > { %v2343_v13 = vpack.c.bf16 %v350_v11, %v349_v12 }
  0xa0   : > { %2376 = vst [vmem:[#allocation2 + $0x8] sm:$0xff] %v2343_v13  }
  0xa2   : > { %v2452_v14 = vpop.permute.xlu0 %2451 }
  0xa3   : > { %v2454_v15 = vunpack.i.h.bf16 %v2452_v14  ;;  %v2453_v16 = vunpack.i.l.bf16 %v2452_v14  ;;  %v2815_v14 = vsub.f32 %v476_v61, %v2801_v6  ;;  %v2318_v61 = vld [vmem:[%s3101_s0 + $0x10] sm:$0xff] }
  0xa5   : > { %v339_v17 = vsel %vm335_vm1, %v2454_v15, 0.0  ;;  %v338_v18 = vsel %vm335_vm1, %v2453_v16, 0.0 }
  0xa6   : > { %v2333_v19 = vpack.c.bf16 %v339_v17, %v338_v18  ;;  %v479_v17 = vsel %vm471_vm4, %v307_v10, 0 }
  0xa7   : > { %v2316_v20 = vld [vmem:[#allocation2 + $0x8] sm:$0xff] }
  0xa8   : > { %2334 = vst [vmem:[#allocation2 + $0x10] sm:$0xff] %v2333_v19   ;;  %405 = vmatpush.bf16.msra.mxu0 %v2316_v20 }
  0xac   : > { %406 = vmatpush.bf16.msra.mxu0 %v2315_v21 }
  0xaf   : > { %v2314_v22 = vld [vmem:[#allocation2 + $0x10] sm:$0xff] }
  0xb0   : > { %407 = vmatpush.bf16.msra.mxu0 %v2314_v22 }
  0xb3   : > { %2235 = vmatmul.msk.bf16.vlgmr.msra.gmra.mxu0 %vm393_vm2, %v2312_v23 }
  0xc3   : > { %2236 = vmatmul.msk.bf16.gmra.mxu0 %vm393_vm2, %v2313_v24  ;;  %v2827_v24 = vand.u32 4294901760, %v2815_v14 }
 0x130   : > { %v409_v25 = vpop.f32.mrf.mxu0 }
 0x138   : > { %v411_v26 = vpop.f32.mrf.mxu0 }
 0x140   : > { %v414_v27 = vpop.f32.mrf.mxu0 }
 0x141   : > { %2478 = vtanh.f32 %v414_v27 }
 0x147   : > { %v2479_v29 = vpop.eup %2478 }
 0x148   : > { %v416_v28 = vpop.f32.mrf.mxu0  ;;  %v423_v30 = vmul.f32 0.5, %v2479_v29  ;;  %v308_v29 = vld [vmem:[%s3103_s2 + $0x18] sm:$0xff] }
 0x149   : > { %2480 = vtanh.f32 %v416_v28 }
 0x14a   : > { %2482 = vtanh.f32 %v409_v25  ;;  %v425_v33 = vadd.f32 0.5, %v423_v30  ;;  %v2829_v25 = vand.u32 4294901760, %v479_v17 }
 0x14b   : > { %2484 = vtanh.f32 %v411_v26 }
 0x14f   : > { %v2481_v31 = vpop.eup %2480 }
 0x150   : > { %v424_v32 = vmul.f32 0.5, %v2481_v31  ;;  %v2483_v34 = vpop.eup %2482 }
 0x151   : > { %v2485_v36 = vpop.eup %2484  ;;  %v427_v37 = vmul.f32 %v2483_v34, %v425_v33  ;;  %v515_v33 = vsub.f32 %v2815_v14, %v2827_v24  ;;  %v2842_v34 = vsub.f32 %v479_v17, %v2829_v25 }
 0x152   : > { %v426_v35 = vadd.f32 0.5, %v424_v32 }
 0x154   : > { %v428_v38 = vmul.f32 %v2485_v36, %v426_v35  ;;  %v482_v36 = vsel %vm471_vm4, %v308_v29, 0 }
 0x156   : > { %v431_v39 = vpack.c.bf16 %v428_v38, %v427_v37 }
 0x158   : > { %448 = vmatpush.bf16.msra.mxu1 %v431_v39 }
 0x15b   : > { %2241 = vmatmul.msk.bf16.vlgmr.msra.gmra.mxu1 %vm437_vm3, %v2317_v40 }
 0x1d8   : > { %v450_v41 = vpop.f32.mrf.mxu1 }
 0x1d9   : > { %v2769_v42 = vadd.f32 %v450_v41, %v323_v2  ;;  %v2797_v2 = vand.u32 4294901760, %v2790_v55 }
 0x1db   : > { %v461_v43 = vmul.f32 %v2769_v42, %v2769_v42  ;;  %v507_v12 = vsub.f32 %v2790_v55, %v2797_v2 }
 0x1dd   : > { %463 = vadd.xlane.f32.xlu1 %v461_v43  ;;  %v2821_v20 = vand.u32 4294901760, %v507_v12  ;;  %v2852_v43 = vand.u32 4294901760, %v2842_v34 }
 0x1e0   : > { %v452_v44 = vpop.f32.mrf.mxu1 }
 0x1e1   : > { %v2353_v45 = vpack.c.bf16 %v452_v44, %v450_v41  ;;  %v2455_v46 = vpack.i.bf16 %v452_v44, %v450_v41  ;;  %v2774_v47 = vadd.f32 %v452_v44, %v2749_v3  ;;  %v2849_v41 = vand.u32 4294901760, %v515_v33 }
 0x1e2   : > { %v2854_v44 = vand.u32 4294901760, %v482_v36 }
 0x1e3   : > { %2377 = vst [vmem:[#allocation2] sm:$0xff] %v2353_v45   ;;  %2456 = vrot.lane.b32.xlu0 %v2455_v46, %s2619_s17  ;;  %459 = vadd.xlane.f32.xlu2 %v2774_v47  ;;  %v462_v48 = vmul.f32 %v2774_v47, %v2774_v47  ;;  %v523_v45 = vsub.f32 %v2842_v34, %v2852_v43  ;;  %s2121_s17 = scalar_lea.hbm %s3107_s6, %s2309_s13 }
 0x1e5   : > { %465 = vadd.xlane.f32.xlu1 %v462_v48 }
 0x1ea   : > { %v2321_v39 = vld [vmem:[#allocation2] sm:$0xff] }
 0x1eb   : > { %457 = vadd.xlane.f32.xlu2 %v2769_v42 }
 0x1fe   : > { %2461 = vrot.lane.b32.xlu1 %v2455_v46, %s2620_s18  ;;  %v2861_v46 = vsub.f32 %v482_v36, %v2854_v44  ;;  %s2122_s18 = sshll.u32 %s303_s14, 4  ;;  %s2123_s18 = int_to_ptr.vmem [resolvable:$true] %s2122_s18 }
 0x250   : > { %v464_v51 = vpop.xlane.xlu1 %463 }
 0x251   : > { %v469_v53 = vmul.f32 0.0078125, %v464_v51  ;;  %v2868_v51 = vand.u32 4294901760, %v523_v45 }
 0x253   : > { %v2793_v57 = vand.u32 4294901760, %v469_v53 }
 0x255   : > { %v2457_v56 = vpop.permute.xlu0 %2456  ;;  %v2804_v8 = vsub.f32 %v469_v53, %v2793_v57  ;;  %v2871_v53 = vand.u32 4294901760, %v2861_v46 }
 0x256   : > { %v2459_v58 = vunpack.i.h.bf16 %v2457_v56  ;;  %v2458_v59 = vunpack.i.l.bf16 %v2457_v56  ;;  %v460_v60 = vpop.xlane.xlu2 %459 }
 0x257   : > { %v468_v62 = vmul.f32 0.0078125, %v460_v60  ;;  %v557_v16 = vand.u32 4294901760, %v2804_v8 }
 0x258   : > { %v839_v63 = vsel %vm835_vm5, %v2459_v58, 0.0  ;;  %v838_v0 = vsel %vm835_vm5, %v2458_v59, 0.0  ;;  %v466_v1 = vpop.xlane.xlu1 %465  ;;  %v531_v58 = vsub.f32 %v2861_v46, %v2871_v53 }
 0x259   : > { %v2358_v3 = vpack.c.bf16 %v839_v63, %v838_v0  ;;  %v2799_v4 = vand.u32 4294901760, %v468_v62  ;;  %v470_v5 = vmul.f32 0.0078125, %v466_v1  ;;  %v558_v26 = vsub.f32 %v2804_v8, %v557_v16 }
 0x25a   : > { %v2879_v59 = vand.u32 4294901760, %v531_v58 }
 0x25b   : > { %2378 = vst [vmem:[#allocation2 + $0x8] sm:$0xff] %v2358_v3   ;;  %v496_v9 = vand.u32 4294901760, %v470_v5  ;;  %v2810_v11 = vsub.f32 %v468_v62, %v2799_v4  ;;  %v559_v35 = vand.u32 4294901760, %v558_v26  ;;  %v2319_v62 = vld [vmem:[%s3101_s0 + $0x18] sm:$0xff] }
 0x25d   : > { %v550_v13 = vsub.f32 %v470_v5, %v496_v9  ;;  %497 = vmatpush.msra.mxu2 %v496_v9  ;;  %738 = vmatpush.msrb.mxu0 %v496_v9  ;;  %v563_v21 = vand.u32 4294901760, %v2810_v11 }
 0x25e   : > { %v458_v15 = vpop.xlane.xlu2 %457 }
 0x25f   : > { %v467_v18 = vmul.f32 0.0078125, %v458_v15  ;;  %499 = vmatpush.msra.mxu2 %v2793_v57  ;;  %604 = vmatpush.msrb.mxu1 %v550_v13  ;;  %v551_v19 = vand.u32 4294901760, %v550_v13  ;;  %v564_v30 = vsub.f32 %v2810_v11, %v563_v21 }
 0x260   : > { %740 = vmatpush.msrb.mxu0 %v2793_v57 }
 0x261   : > { %v502_v22 = vand.u32 4294901760, %v467_v18  ;;  %501 = vmatpush.msra.mxu2 %v2799_v4  ;;  %607 = vmatpush.msrb.mxu1 %v2804_v8  ;;  %v552_v23 = vsub.f32 %v550_v13, %v551_v19  ;;  %v565_v38 = vand.u32 4294901760, %v564_v30 }
 0x262   : > { %742 = vmatpush.msrb.mxu0 %v2799_v4  ;;  %v2322_v31 = vld [vmem:[#allocation2 + $0x8] sm:$0xff] }
 0x263   : > { %v568_v27 = vsub.f32 %v467_v18, %v502_v22  ;;  %503 = vmatpush.msra.mxu2 %v502_v22  ;;  %610 = vmatpush.msrb.mxu1 %v2810_v11  ;;  %v553_v28 = vand.u32 4294901760, %v552_v23 }
 0x264   : > { %744 = vmatpush.msrb.mxu0 %v502_v22  ;;  %509 = vmatmul.f32.vlgmr.msra.gmra.mxu2 %v2821_v20 }
 0x265   : > { %2381 = vmatpush.msrb.mxu2 %v550_v13  ;;  %554 = vmatpush.msra.mxu3 %v553_v28  ;;  %v569_v32 = vand.u32 4294901760, %v568_v27 }
 0x266   : > { %613 = vmatpush.msrb.mxu1 %v568_v27  ;;  %746 = vmatmul.f32.vlgmr.msrb.gmra.mxu0 %v2784_v52 }
 0x267   : > { %2382 = vmatpush.msrb.mxu2 %v2804_v8  ;;  %v570_v37 = vsub.f32 %v568_v27, %v569_v32  ;;  %560 = vmatpush.msra.mxu3 %v559_v35  ;;  %v2621_v8 = vmov 0  }
 0x268   : > { %894 = vmatpush.bf16.msra.mxu1 %v2322_v31  ;;  %2465 = vset.pattern.permute.xlu0 %v2621_v8 }
 0x269   : > { %616 = vmatmul.f32.vlgmr.msrb.gmra.mxu1 %v2790_v55  ;;  %2383 = vmatpush.msrb.mxu2 %v2810_v11  ;;  %v571_v40 = vand.u32 4294901760, %v570_v37 }
 0x26a   : > { %566 = vmatpush.msra.mxu3 %v565_v38  ;;  %2466 = vset.pattern.permute.xlu2 %v2621_v8 }
 0x26b   : > { %2384 = vmatpush.msrb.mxu2 %v568_v27  ;;  %2477 = vset.pattern.permute.xlu1 %v2621_v8 }
 0x26c   : > { %895 = vmatpush.bf16.msra.mxu1 %v2321_v39  ;;  %572 = vmatpush.msra.mxu3 %v571_v40 }
 0x26d   : > { %648 = vmatpush.msra.mxu2 %v496_v9  ;;  %574 = vmatmul.f32.vlgmr.msra.gmra.mxu3 %v2784_v52 }
 0x26e   : > { %517 = vmatmul.f32.gmra.mxu2 %v2849_v41  ;;  %695 = vmatpush.msrb.mxu3 %v551_v19 }
 0x26f   : > { %650 = vmatpush.msra.mxu2 %v2793_v57  ;;  %750 = vmatmul.f32.gmra.mxu0 %v2801_v6 }
 0x270   : > { %699 = vmatpush.msrb.mxu3 %v557_v16  ;;  %v2462_v48 = vpop.permute.xlu1 %2461 }
 0x271   : > { %652 = vmatpush.msra.mxu2 %v2799_v4  ;;  %v2464_v49 = vunpack.i.h.bf16 %v2462_v48  ;;  %v2463_v50 = vunpack.i.l.bf16 %v2462_v48  ;;  %621 = vmatmul.f32.gmra.mxu1 %v2815_v14 }
 0x272   : > { %703 = vmatpush.msrb.mxu3 %v563_v21 }
 0x273   : > { %654 = vmatpush.msra.mxu2 %v502_v22  ;;  %v828_v54 = vsel %vm824_vm6, %v2464_v49, 0.0  ;;  %v827_v56 = vsel %vm824_vm6, %v2463_v50, 0.0 }
 0x274   : > { %v2348_v57 = vpack.c.bf16 %v828_v54, %v827_v56  ;;  %707 = vmatpush.msrb.mxu3 %v569_v32 }
 0x275   : > { %578 = vmatmul.f32.gmra.mxu3 %v2801_v6 }
 0x276   : > { %525 = vmatmul.f32.gmra.mxu2 %v2868_v51  ;;  %2349 = vst [vmem:[#allocation2 + $0x10] sm:$0xff] %v2348_v57  }
 0x277   : > { %754 = vmatmul.f32.gmra.mxu0 %v2829_v25 }
 0x279   : > { %626 = vmatmul.f32.gmra.mxu1 %v2842_v34 }
 0x27d   : > { %582 = vmatmul.f32.gmra.mxu3 %v2829_v25  ;;  %v2320_v60 = vld [vmem:[#allocation2 + $0x10] sm:$0xff] }
 0x27e   : > { %533 = vmatmul.f32.gmra.mxu2 %v2879_v59  ;;  %896 = vmatpush.bf16.msra.mxu1 %v2320_v60 }
 0x27f   : > { %758 = vmatmul.f32.gmra.mxu0 %v2854_v44 }
 0x281   : > { %2266 = vmatmul.msk.bf16.vlgmr.msra.gmra.mxu1 %vm393_vm2, %v2318_v61 }
 0x285   : > { %586 = vmatmul.f32.gmra.mxu3 %v2854_v44 }
 0x286   : > { %631 = vmatmul.f32.vlgmr.msrb.gmra.mxu2 %v2861_v46 }
 0x28d   : > { %709 = vmatmul.f32.vlgmr.msrb.gmra.mxu3 %v2784_v52 }
 0x28e   : > { %658 = vmatmul.f32.vlgmr.msra.gmra.mxu2 %v2797_v2 }
 0x291   : > { %2267 = vmatmul.msk.bf16.gmra.mxu1 %vm393_vm2, %v2319_v62 }
 0x295   : > { %713 = vmatmul.f32.gmra.mxu3 %v2801_v6 }
 0x296   : > { %664 = vmatmul.f32.gmra.mxu2 %v2827_v24 }
 0x29d   : > { %717 = vmatmul.f32.gmra.mxu3 %v2829_v25 }
 0x29e   : > { %670 = vmatmul.f32.gmra.mxu2 %v2852_v43 }
 0x2a5   : > { %721 = vmatmul.f32.gmra.mxu3 %v2854_v44 }
 0x2a6   : > { %676 = vmatmul.f32.gmra.mxu2 %v2871_v53 }
 0x2e3   : > { %v747_v19 = vpop.f32.mrf.mxu0 }
 0x2e6   : > { %v617_v63 = vpop.f32.mrf.mxu1 }
 0x2e7   : > { %v510_v0 = vpop.f32.mrf.mxu2 }
 0x2ec   : > { %v751_v31 = vpop.f32.mrf.mxu0 }
 0x2ee   : > { %v622_v1 = vpop.f32.mrf.mxu1 }
 0x2f0   : > { %v575_v4 = vpop.f32.mrf.mxu3 }
 0x2f1   : > { %v518_v3 = vpop.f32.mrf.mxu2  ;;  %v576_v18 = vadd.f32 %v575_v4, %v510_v0 }
 0x2f3   : > { %v618_v21 = vadd.f32 %v617_v63, %v576_v18 }
 0x2f4   : > { %v755_v57 = vpop.f32.mrf.mxu0 }
 0x2f6   : > { %v627_v5 = vpop.f32.mrf.mxu1 }
 0x2f8   : > { %v579_v10 = vpop.f32.mrf.mxu3 }
 0x2f9   : > { %v526_v9 = vpop.f32.mrf.mxu2  ;;  %v580_v28 = vadd.f32 %v579_v10, %v518_v3 }
 0x2fb   : > { %v623_v32 = vadd.f32 %v622_v1, %v580_v28 }
 0x2fe   : > { %v898_v11 = vpop.f32.mrf.mxu1 }
 0x300   : > { %v583_v13 = vpop.f32.mrf.mxu3 }
 0x301   : > { %v534_v12 = vpop.f32.mrf.mxu2  ;;  %v584_v39 = vadd.f32 %v583_v13, %v526_v9  ;;  %v2323_v13 = vld [vmem:[%s3102_s1 + $0x8] sm:$0xff] }
 0x303   : > { %v628_v56 = vadd.f32 %v627_v5, %v584_v39 }
 0x306   : > { %v900_v15 = vpop.f32.mrf.mxu1 }
 0x308   : > { %v587_v16 = vpop.f32.mrf.mxu3 }
 0x309   : > { %v632_v17 = vpop.f32.mrf.mxu2  ;;  %v588_v1 = vadd.f32 %v587_v16, %v534_v12 }
 0x30e   : > { %v903_v22 = vpop.f32.mrf.mxu1 }
 0x30f   : > { %2486 = vtanh.f32 %v903_v22 }
 0x310   : > { %v710_v26 = vpop.f32.mrf.mxu3 }
 0x311   : > { %v659_v23 = vpop.f32.mrf.mxu2 }
 0x312   : > { %v660_v27 = vadd.f32 %v659_v23, %v618_v21  ;;  %v759_v23 = vpop.f32.mrf.mxu0 }
 0x314   : > { %v711_v29 = vadd.f32 %v710_v26, %v660_v27 }
 0x315   : > { %v2487_v35 = vpop.eup %2486 }
 0x316   : > { %v748_v30 = vadd.f32 %v747_v19, %v711_v29  ;;  %v905_v33 = vpop.f32.mrf.mxu1  ;;  %v912_v40 = vmul.f32 0.5, %v2487_v35 }
 0x317   : > { %2488 = vtanh.f32 %v905_v33 }
 0x318   : > { %790 = vperm.xlu0 %2465, %v748_v30   ;;  %v714_v37 = vpop.f32.mrf.mxu3  ;;  %2490 = vtanh.f32 %v898_v11  ;;  %v914_v50 = vadd.f32 0.5, %v912_v40  ;;  %v762_v9 = vmul.f32 %v748_v30, %v748_v30 }
 0x319   : > { %v665_v36 = vpop.f32.mrf.mxu2  ;;  %2492 = vtanh.f32 %v900_v15  ;;  %v633_v15 = vadd.f32 %v632_v17, %v588_v1 }
 0x31a   : > { %v666_v38 = vadd.f32 %v665_v36, %v623_v32 }
 0x31c   : > { %v715_v45 = vadd.f32 %v714_v37, %v666_v38 }
 0x31d   : > { %v2489_v49 = vpop.eup %2488 }
 0x31e   : > { %v752_v48 = vadd.f32 %v751_v31, %v715_v45  ;;  %v913_v54 = vmul.f32 0.5, %v2489_v49  ;;  %v2491_v61 = vpop.eup %2490 }
 0x31f   : > { %v2493_v0 = vpop.eup %2492  ;;  %v916_v3 = vmul.f32 %v2491_v61, %v914_v50 }
 0x320   : > { %795 = vperm.xlu2 %2466, %v752_v48   ;;  %v718_v60 = vpop.f32.mrf.mxu3  ;;  %v915_v62 = vadd.f32 0.5, %v913_v54  ;;  %v763_v16 = vmul.f32 %v752_v48, %v752_v48 }
 0x321   : > { %v671_v58 = vpop.f32.mrf.mxu2 }
 0x322   : > { %v672_v63 = vadd.f32 %v671_v58, %v628_v56  ;;  %v917_v4 = vmul.f32 %v2493_v0, %v915_v62 }
 0x324   : > { %v719_v8 = vadd.f32 %v718_v60, %v672_v63  ;;  %v921_v10 = vpack.c.bf16 %v917_v4, %v916_v3 }
 0x326   : > { %v756_v11 = vadd.f32 %v755_v57, %v719_v8  ;;  %937 = vmatpush.bf16.msrb.mxu2 %v921_v10 }
 0x328   : > { %v764_v5 = vsub.f32 %v756_v11, %v762_v9  ;;  %v722_v19 = vpop.f32.mrf.mxu3 }
 0x329   : > { %v677_v18 = vpop.f32.mrf.mxu2  ;;  %2274 = vmatmul.msk.bf16.vlgmr.msrb.gmra.mxu2 %vm437_vm3, %v2323_v13 }
 0x32a   : > { %v766_v21 = vadd.f32 1e-05, %v764_v5  ;;  %v678_v22 = vadd.f32 %v677_v18, %v633_v15 }
 0x32c   : > { %2494 = vrsqrt.f32 %v766_v21  ;;  %v723_v12 = vadd.f32 %v722_v19, %v678_v22  ;;  %vm774_vm8 = vweird.f32 %v766_v21 }
 0x32e   : > { %v760_v26 = vadd.f32 %v759_v23, %v723_v12 }
 0x330   : > { %v765_v27 = vsub.f32 %v760_v26, %v763_v16 }
 0x332   : > { %v2495_v28 = vpop.eup %2494  ;;  %v767_v29 = vadd.f32 1e-05, %v765_v27 }
 0x333   : > { %v769_v30 = vmul.f32 %v2495_v28, %v766_v21  ;;  %vm775_vm7 = vweird.f32 %v2495_v28 }
 0x334   : > { %2496 = vrsqrt.f32 %v767_v29  ;;  %vm776_vm9 = vmor %vm774_vm8, %vm775_vm7  ;;  %vm784_vm11 = vweird.f32 %v767_v29 }
 0x335   : > { %v770_v31 = vmul.f32 %v2495_v28, %v769_v30 }
 0x337   : > { %v771_v17 = vmul.f32 0.5, %v770_v31 }
 0x339   : > { %v772_v32 = vsub.f32 1.5, %v771_v17 }
 0x33a   : > { %v2497_v33 = vpop.eup %2496 }
 0x33b   : > { %v779_v35 = vmul.f32 %v2497_v33, %v767_v29  ;;  %v773_v36 = vmul.f32 %v2495_v28, %v772_v32  ;;  %vm785_vm10 = vweird.f32 %v2497_v33 }
 0x33c   : > { %vm786_vm12 = vmor %vm784_vm11, %vm785_vm10 }
 0x33d   : > { %v777_v37 = vsel %vm776_vm9, %v2495_v28, %v773_v36  ;;  %v780_v38 = vmul.f32 %v2497_v33, %v779_v35 }
 0x33e   : > { %802 = vperm.xlu2 %2466, %v777_v37  }
 0x33f   : > { %v781_v39 = vmul.f32 0.5, %v780_v38 }
 0x341   : > { %v782_v40 = vsub.f32 1.5, %v781_v39 }
 0x343   : > { %v783_v45 = vmul.f32 %v2497_v33, %v782_v40 }
 0x345   : > { %v787_v48 = vsel %vm786_vm12, %v2497_v33, %v783_v45 }
 0x346   : > { %807 = vperm.xlu0 %2465, %v787_v48  }
 0x37a   : > { %v796_v49 = vpop.permute.xlu2 %795 }
 0x37b   : > { %v799_v63 = vsub.f32 %v2774_v47, %v796_v49 }
 0x38a   : > { %v791_v50 = vpop.permute.xlu0 %790 }
 0x38b   : > { %v798_v56 = vsub.f32 %v2769_v42, %v791_v50 }
 0x398   : > { %v803_v54 = vpop.permute.xlu2 %802 }
 0x399   : > { %v2907_v57 = vmul.f32 %v803_v54, %v798_v56 }
 0x3ac   : > { %v939_v58 = vpop.f32.mrf.mxu2 }
 0x3ad   : > { %v2910_v60 = vadd.f32 %v939_v58, %v2907_v57 }
 0x3af   : > { %v950_v61 = vmul.f32 %v2910_v60, %v2910_v60 }
 0x3b1   : > { %952 = vadd.xlane.f32.xlu0 %v950_v61 }
 0x3b4   : > { %v941_v62 = vpop.f32.mrf.mxu2 }
 0x3b5   : > { %v2368_v0 = vpack.c.bf16 %v941_v62, %v939_v58  ;;  %v2472_v8 = vpack.i.bf16 %v941_v62, %v939_v58 }
 0x3b7   : > { %2379 = vst [vmem:[#allocation2] sm:$0xff] %v2368_v0  }
 0x3b8   : > { %v808_v1 = vpop.permute.xlu0 %807 }
 0x3b9   : > { %v2915_v3 = vmul.f32 %v808_v1, %v799_v63 }
 0x3bb   : > { %v2918_v42 = vadd.f32 %v941_v62, %v2915_v3 }
 0x3bd   : > { %948 = vadd.xlane.f32.xlu2 %v2918_v42  ;;  %v951_v4 = vmul.f32 %v2918_v42, %v2918_v42 }
 0x3be   : > { %v2327_v1 = vld [vmem:[#allocation2] sm:$0xff] }
 0x3bf   : > { %954 = vadd.xlane.f32.xlu1 %v951_v4 }
 0x3c5   : > { %2473 = vrot.lane.b32.xlu0 %v2472_v8, %s2622_s19  ;;  %s2124_s19 = sshll.u32 %s2121_s17, 4  ;;  %s2125_s19 = int_to_ptr.hbm [resolvable:$true] %s2124_s19 }
 0x3c7   : > { %946 = vadd.xlane.f32.xlu1 %v2910_v60 }
 0x3d5   : > { %2468 = vrot.lane.b32.xlu2 %v2472_v8, %s2623_s20  ;;  %v2324_v8 = vld [vmem:[%s3101_s0 + $0x20] sm:$0xff]  ;;  %s2562_s20 = sshra.s32 %s2125_s19, 4  ;;  %s2563_s20 = int_to_ptr.hbm [resolvable:$true] %s2562_s20 }
 0x3d6   : > { %s2564_s28 = scalar_lea.hbm %s2563_s20, 16  ;;  %p2569_p5 = scmp.lt.s32.totalorder %s2563_s20, %s3107_s6 }
 0x3d7   : > { %p2565_p2 = scmp.ne.s32.totalorder %s2563_s20, %s2564_s28  ;;  %p2570_p7 = scmp.lt.s32.totalorder %s2568_s9, %s2564_s28 }
 0x3d9   : > { %p2566_p3 = pnand %p2565_p2, %p2705_p6  ;;  %p2571_p8 = por %p2570_p7, %p2569_p5 }
 0x3db   : > { %p2567_p4 = pneg %p2566_p3 }
 0x3dd   : > { %p2572_p9 = pnand %p2571_p8, %p2567_p4 }
 0x424   : > { %v953_v47 = vpop.xlane.xlu0 %952 }
 0x425   : > { %v958_v9 = vmul.f32 0.0078125, %v953_v47  ;;  %v2325_v47 = vld [vmem:[%s3101_s0 + $0x28] sm:$0xff] }
 0x427   : > { %v2924_v10 = vand.u32 4294901760, %v958_v9 }
 0x429   : > { %v1032_v15 = vsub.f32 %v958_v9, %v2924_v10 }
 0x42b   : > { %v1033_v23 = vand.u32 4294901760, %v1032_v15 }
 0x42d   : > { %v1034_v32 = vsub.f32 %v1032_v15, %v1033_v23 }
 0x42f   : > { %v1035_v58 = vand.u32 4294901760, %v1034_v32 }
 0x430   : > { %v949_v11 = vpop.xlane.xlu2 %948 }
 0x431   : > { %v957_v13 = vmul.f32 0.0078125, %v949_v11 }
 0x432   : > { %v955_v5 = vpop.xlane.xlu1 %954 }
 0x433   : > { %v2927_v18 = vand.u32 4294901760, %v957_v13  ;;  %v959_v19 = vmul.f32 0.0078125, %v955_v5 }
 0x435   : > { %v972_v21 = vand.u32 4294901760, %v959_v19  ;;  %v1038_v22 = vsub.f32 %v957_v13, %v2927_v18 }
 0x437   : > { %v1026_v12 = vsub.f32 %v959_v19, %v972_v21  ;;  %973 = vmatpush.msra.mxu3 %v972_v21  ;;  %1124 = vmatpush.msra.mxu2 %v972_v21  ;;  %v2474_v29 = vpop.permute.xlu0 %2473  ;;  %v1039_v33 = vand.u32 4294901760, %v1038_v22 }
 0x438   : > { %v2469_v16 = vpop.permute.xlu2 %2468  ;;  %v2476_v31 = vunpack.i.h.bf16 %v2474_v29  ;;  %v2475_v17 = vunpack.i.l.bf16 %v2474_v29 }
 0x439   : > { %v1027_v26 = vand.u32 4294901760, %v1026_v12  ;;  %v2471_v27 = vunpack.i.h.bf16 %v2469_v16  ;;  %v2470_v28 = vunpack.i.l.bf16 %v2469_v16  ;;  %975 = vmatpush.msra.mxu3 %v2924_v10  ;;  %1080 = vmatpush.msrb.mxu1 %v1026_v12  ;;  %v1040_v54 = vsub.f32 %v1038_v22, %v1039_v33 }
 0x43a   : > { %1126 = vmatpush.msra.mxu2 %v2924_v10  ;;  %v947_v30 = vpop.xlane.xlu1 %946  ;;  %v1304_v40 = vsel %vm1300_vm14, %v2476_v31, 0.0  ;;  %v1303_v45 = vsel %vm1300_vm14, %v2475_v17, 0.0 }
 0x43b   : > { %v1028_v35 = vsub.f32 %v1026_v12, %v1027_v26  ;;  %v1315_v36 = vsel %vm1311_vm13, %v2471_v27, 0.0  ;;  %v1314_v37 = vsel %vm1311_vm13, %v2470_v28, 0.0  ;;  %v956_v38 = vmul.f32 0.0078125, %v947_v30  ;;  %977 = vmatpush.msra.mxu3 %v2927_v18  ;;  %1083 = vmatpush.msrb.mxu1 %v1032_v15 }
 0x43c   : > { %v2373_v39 = vpack.c.bf16 %v1315_v36, %v1314_v37  ;;  %1128 = vmatpush.msra.mxu2 %v2927_v18  ;;  %v2363_v49 = vpack.c.bf16 %v1304_v40, %v1303_v45  ;;  %v1041_v7 = vand.u32 4294901760, %v1040_v54 }
 0x43d   : > { %v978_v48 = vand.u32 4294901760, %v956_v38  ;;  %1086 = vmatpush.msrb.mxu1 %v1038_v22  ;;  %v1029_v50 = vand.u32 4294901760, %v1028_v35 }
 0x43e   : > { %2380 = vst [vmem:[#allocation2 + $0x8] sm:$0xff] %v2373_v39  }
 0x43f   : > { %v1044_v56 = vsub.f32 %v956_v38, %v978_v48  ;;  %2364 = vst [vmem:[#allocation2 + $0x10] sm:$0xff] %v2363_v49   ;;  %979 = vmatpush.msra.mxu3 %v978_v48  ;;  %1030 = vmatpush.msra.mxu0 %v1029_v50 }
 0x440   : > { %1130 = vmatpush.msra.mxu2 %v978_v48  ;;  %985 = vmatmul.f32.vlgmr.msra.gmra.mxu3 %v2821_v20 }
 0x441   : > { %1171 = vmatpush.msrb.mxu3 %v1027_v26  ;;  %1036 = vmatpush.msra.mxu0 %v1035_v58  ;;  %v1045_v61 = vand.u32 4294901760, %v1044_v56 }
 0x442   : > { %1089 = vmatpush.msrb.mxu1 %v1044_v56  ;;  %1134 = vmatmul.f32.vlgmr.msra.gmra.mxu2 %v2797_v2 }
 0x443   : > { %1092 = vmatmul.f32.vlgmr.msrb.gmra.mxu1 %v2790_v55  ;;  %1175 = vmatpush.msrb.mxu3 %v1033_v23  ;;  %v1046_v62 = vsub.f32 %v1044_v56, %v1045_v61 }
 0x444   : > { %1042 = vmatpush.msra.mxu0 %v1041_v7 }
 0x445   : > { %1179 = vmatpush.msrb.mxu3 %v1039_v33  ;;  %v1047_v63 = vand.u32 4294901760, %v1046_v62  ;;  %v2328_v0 = vld [vmem:[#allocation2 + $0x8] sm:$0xff] }
 0x446   : > { %1370 = vmatpush.bf16.msra.mxu1 %v2328_v0  ;;  %v2326_v4 = vld [vmem:[#allocation2 + $0x10] sm:$0xff] }
 0x447   : > { %1183 = vmatpush.msrb.mxu3 %v1045_v61  ;;  %1048 = vmatpush.msra.mxu0 %v1047_v63 }
 0x448   : > { %993 = vmatmul.f32.gmra.mxu3 %v2849_v41  ;;  %1050 = vmatmul.f32.vlgmr.msra.gmra.mxu0 %v2784_v52 }
 0x449   : > { %1214 = vmatpush.msrb.mxu0 %v972_v21 }
 0x44a   : > { %1140 = vmatmul.f32.gmra.mxu2 %v2827_v24  ;;  %1371 = vmatpush.bf16.msra.mxu1 %v2327_v1 }
 0x44b   : > { %1097 = vmatmul.f32.gmra.mxu1 %v2815_v14  ;;  %1216 = vmatpush.msrb.mxu0 %v2924_v10 }
 0x44d   : > { %1218 = vmatpush.msrb.mxu0 %v2927_v18 }
 0x44e   : > { %1372 = vmatpush.bf16.msra.mxu1 %v2326_v4 }
 0x44f   : > { %1220 = vmatpush.msrb.mxu0 %v978_v48 }
 0x450   : > { %1001 = vmatmul.f32.gmra.mxu3 %v2868_v51  ;;  %1054 = vmatmul.f32.gmra.mxu0 %v2801_v6 }
 0x452   : > { %1146 = vmatmul.f32.gmra.mxu2 %v2852_v43 }
 0x453   : > { %1102 = vmatmul.f32.gmra.mxu1 %v2842_v34 }
 0x458   : > { %1009 = vmatmul.f32.gmra.mxu3 %v2879_v59  ;;  %1058 = vmatmul.f32.gmra.mxu0 %v2829_v25 }
 0x45a   : > { %1152 = vmatmul.f32.gmra.mxu2 %v2871_v53 }
 0x45b   : > { %1107 = vmatmul.f32.gmra.mxu1 %v2861_v46 }
 0x460   : > { %1062 = vmatmul.f32.gmra.mxu0 %v2854_v44  ;;  %1185 = vmatmul.f32.vlgmr.msrb.gmra.mxu3 %v2784_v52 }
 0x463   : > { %2299 = vmatmul.msk.bf16.vlgmr.msra.gmra.mxu1 %vm393_vm2, %v2324_v8 }
 0x468   : > { %1189 = vmatmul.f32.gmra.mxu3 %v2801_v6  ;;  %1222 = vmatmul.f32.vlgmr.msrb.gmra.mxu0 %v2784_v52 }
 0x470   : > { %1193 = vmatmul.f32.gmra.mxu3 %v2829_v25  ;;  %1226 = vmatmul.f32.gmra.mxu0 %v2801_v6 }
 0x473   : > { %2300 = vmatmul.msk.bf16.gmra.mxu1 %vm393_vm2, %v2325_v47 }
 0x478   : > { %1197 = vmatmul.f32.gmra.mxu3 %v2854_v44  ;;  %1230 = vmatmul.f32.gmra.mxu0 %v2829_v25 }
 0x480   : > { %1234 = vmatmul.f32.gmra.mxu0 %v2854_v44 }
 0x4c0   : > { %v1093_v9 = vpop.f32.mrf.mxu1 }
 0x4c3   : > { %v986_v10 = vpop.f32.mrf.mxu3 }
 0x4c5   : > { %v1051_v11 = vpop.f32.mrf.mxu0  ;;  %v1135_v23 = vpop.f32.mrf.mxu2 }
 0x4c6   : > { %v1052_v12 = vadd.f32 %v1051_v11, %v986_v10 }
 0x4c8   : > { %v1098_v13 = vpop.f32.mrf.mxu1  ;;  %v1094_v27 = vadd.f32 %v1093_v9, %v1052_v12 }
 0x4ca   : > { %v1136_v29 = vadd.f32 %v1135_v23, %v1094_v27 }
 0x4cb   : > { %v994_v15 = vpop.f32.mrf.mxu3 }
 0x4cd   : > { %v1055_v5 = vpop.f32.mrf.mxu0  ;;  %v1141_v31 = vpop.f32.mrf.mxu2 }
 0x4ce   : > { %v1056_v30 = vadd.f32 %v1055_v5, %v994_v15 }
 0x4d0   : > { %v1103_v18 = vpop.f32.mrf.mxu1  ;;  %v1099_v35 = vadd.f32 %v1098_v13, %v1056_v30 }
 0x4d2   : > { %v1142_v38 = vadd.f32 %v1141_v31, %v1099_v35 }
 0x4d3   : > { %v1002_v19 = vpop.f32.mrf.mxu3 }
 0x4d5   : > { %v1059_v21 = vpop.f32.mrf.mxu0  ;;  %v1147_v48 = vpop.f32.mrf.mxu2 }
 0x4d6   : > { %v1060_v39 = vadd.f32 %v1059_v21, %v1002_v19 }
 0x4d8   : > { %v1108_v22 = vpop.f32.mrf.mxu1  ;;  %v1104_v50 = vadd.f32 %v1103_v18, %v1060_v39 }
 0x4da   : > { %v1148_v58 = vadd.f32 %v1147_v48, %v1104_v50 }
 0x4db   : > { %v1010_v16 = vpop.f32.mrf.mxu3 }
 0x4dd   : > { %v1063_v26 = vpop.f32.mrf.mxu0  ;;  %v1153_v8 = vpop.f32.mrf.mxu2 }
 0x4de   : > { %v1064_v61 = vadd.f32 %v1063_v26, %v1010_v16 }
 0x4e0   : > { %v1374_v28 = vpop.f32.mrf.mxu1  ;;  %v1109_v0 = vadd.f32 %v1108_v22, %v1064_v61 }
 0x4e2   : > { %v1154_v11 = vadd.f32 %v1153_v8, %v1109_v0 }
 0x4e3   : > { %v1186_v17 = vpop.f32.mrf.mxu3 }
 0x4e4   : > { %v1187_v32 = vadd.f32 %v1186_v17, %v1136_v29 }
 0x4e5   : > { %v1223_v33 = vpop.f32.mrf.mxu0 }
 0x4e6   : > { %v1224_v36 = vadd.f32 %v1223_v33, %v1187_v32 }
 0x4e8   : > { %v1376_v37 = vpop.f32.mrf.mxu1  ;;  %1266 = vperm.xlu0 %2465, %v1224_v36   ;;  %v1238_v1 = vmul.f32 %v1224_v36, %v1224_v36 }
 0x4eb   : > { %v1190_v40 = vpop.f32.mrf.mxu3 }
 0x4ec   : > { %v1191_v45 = vadd.f32 %v1190_v40, %v1142_v38 }
 0x4ed   : > { %v1227_v49 = vpop.f32.mrf.mxu0 }
 0x4ee   : > { %v1228_v54 = vadd.f32 %v1227_v49, %v1191_v45 }
 0x4f0   : > { %v1379_v56 = vpop.f32.mrf.mxu1  ;;  %1271 = vperm.xlu1 %2477, %v1228_v54   ;;  %v1239_v21 = vmul.f32 %v1228_v54, %v1228_v54 }
 0x4f1   : > { %2498 = vtanh.f32 %v1379_v56 }
 0x4f3   : > { %v1194_v7 = vpop.f32.mrf.mxu3 }
 0x4f4   : > { %v1195_v62 = vadd.f32 %v1194_v7, %v1148_v58 }
 0x4f5   : > { %v1231_v63 = vpop.f32.mrf.mxu0 }
 0x4f6   : > { %v1232_v4 = vadd.f32 %v1231_v63, %v1195_v62 }
 0x4f7   : > { %v2499_v10 = vpop.eup %2498 }
 0x4f8   : > { %v1240_v47 = vsub.f32 %v1232_v4, %v1238_v1  ;;  %v1381_v9 = vpop.f32.mrf.mxu1  ;;  %v1388_v5 = vmul.f32 0.5, %v2499_v10 }
 0x4f9   : > { %2500 = vtanh.f32 %v1381_v9 }
 0x4fa   : > { %v1242_v13 = vadd.f32 1e-05, %v1240_v47  ;;  %2502 = vtanh.f32 %v1374_v28  ;;  %v1390_v22 = vadd.f32 0.5, %v1388_v5 }
 0x4fb   : > { %v1198_v15 = vpop.f32.mrf.mxu3 }
 0x4fc   : > { %2504 = vrsqrt.f32 %v1242_v13  ;;  %v1199_v18 = vadd.f32 %v1198_v15, %v1154_v11  ;;  %vm1250_vm0 = vweird.f32 %v1242_v13 }
 0x4fd   : > { %2506 = vtanh.f32 %v1376_v37  ;;  %v1235_v19 = vpop.f32.mrf.mxu0  ;;  %v2329_v37 = vld [vmem:[%s3102_s1 + $0x10] sm:$0xff] }
 0x4fe   : > { %v1236_v23 = vadd.f32 %v1235_v19, %v1199_v18 }
 0x4ff   : > { %v2501_v12 = vpop.eup %2500 }
 0x500   : > { %v1389_v16 = vmul.f32 0.5, %v2501_v12  ;;  %v1241_v26 = vsub.f32 %v1236_v23, %v1239_v21  ;;  %v2503_v27 = vpop.eup %2502 }
 0x501   : > { %v1392_v33 = vmul.f32 %v2503_v27, %v1390_v22 }
 0x502   : > { %v2505_v29 = vpop.eup %2504  ;;  %v1391_v30 = vadd.f32 0.5, %v1389_v16  ;;  %v1243_v31 = vadd.f32 1e-05, %v1241_v26 }
 0x503   : > { %v2507_v17 = vpop.eup %2506  ;;  %v1245_v32 = vmul.f32 %v2505_v29, %v1242_v13  ;;  %vm1251_vm15 = vweird.f32 %v2505_v29 }
 0x504   : > { %v1393_v28 = vmul.f32 %v2507_v17, %v1391_v30  ;;  %2508 = vrsqrt.f32 %v1243_v31  ;;  %vm1252_vm1 = vmor %vm1250_vm0, %vm1251_vm15  ;;  %vm1260_vm4 = vweird.f32 %v1243_v31 }
 0x505   : > { %v1246_v35 = vmul.f32 %v2505_v29, %v1245_v32 }
 0x506   : > { %v1397_v36 = vpack.c.bf16 %v1393_v28, %v1392_v33 }
 0x507   : > { %v1247_v38 = vmul.f32 0.5, %v1246_v35 }
 0x508   : > { %1413 = vmatpush.bf16.msrb.mxu2 %v1397_v36 }
 0x509   : > { %v1248_v39 = vsub.f32 1.5, %v1247_v38 }
 0x50a   : > { %v2509_v40 = vpop.eup %2508 }
 0x50b   : > { %v1255_v45 = vmul.f32 %v2509_v40, %v1243_v31  ;;  %2307 = vmatmul.msk.bf16.vlgmr.msrb.gmra.mxu2 %vm437_vm3, %v2329_v37  ;;  %v1249_v48 = vmul.f32 %v2505_v29, %v1248_v39  ;;  %vm1261_vm2 = vweird.f32 %v2509_v40 }
 0x50c   : > { %vm1262_vm5 = vmor %vm1260_vm4, %vm1261_vm2 }
 0x50d   : > { %v1253_v49 = vsel %vm1252_vm1, %v2505_v29, %v1249_v48  ;;  %v1256_v50 = vmul.f32 %v2509_v40, %v1255_v45 }
 0x50e   : > { %1278 = vperm.xlu1 %2477, %v1253_v49  }
 0x50f   : > { %v1257_v54 = vmul.f32 0.5, %v1256_v50 }
 0x511   : > { %v1258_v56 = vsub.f32 1.5, %v1257_v54 }
 0x513   : > { %v1259_v58 = vmul.f32 %v2509_v40, %v1258_v56 }
 0x515   : > { %v1263_v61 = vsel %vm1262_vm5, %v2509_v40, %v1259_v58 }
 0x516   : > { %1283 = vperm.xlu2 %2466, %v1263_v61  }
 0x55a   : > { %v1267_v62 = vpop.permute.xlu0 %1266 }
 0x55b   : > { %v1274_v0 = vsub.f32 %v2910_v60, %v1267_v62 }
 0x562   : > { %v1272_v7 = vpop.permute.xlu1 %1271 }
 0x563   : > { %v1275_v10 = vsub.f32 %v2918_v42, %v1272_v7 }
 0x570   : > { %v1284_v9 = vpop.permute.xlu2 %1283 }
 0x571   : > { %v2991_v11 = vmul.f32 %v1284_v9, %v1275_v10 }
 0x580   : > { %v1279_v63 = vpop.permute.xlu1 %1278 }
 0x581   : > { %v2983_v1 = vmul.f32 %v1279_v63, %v1274_v0 }
 0x58e   : > { %v1415_v4 = vpop.f32.mrf.mxu2 }
 0x58f   : > { %v2986_v8 = vadd.f32 %v1415_v4, %v2983_v1 }
 0x591   : > { %v1426_v47 = vmul.f32 %v2986_v8, %v2986_v8 }
 0x593   : > { %1428 = vadd.xlane.f32.xlu2 %v1426_v47 }
 0x596   : > { %v1417_v13 = vpop.f32.mrf.mxu2 }
 0x597   : > { %v2994_v15 = vadd.f32 %v1417_v13, %v2991_v11 }
 0x599   : > { %1424 = vadd.xlane.f32.xlu1 %v2994_v15  ;;  %v1427_v60 = vmul.f32 %v2994_v15, %v2994_v15 }
 0x59b   : > { %1430 = vadd.xlane.f32.xlu0 %v1427_v60 }
 0x5a3   : > { %1422 = vadd.xlane.f32.xlu0 %v2986_v8 }
 0x606   : > { %v1429_v5 = vpop.xlane.xlu2 %1428 }
 0x607   : > { %v1434_v18 = vmul.f32 0.0078125, %v1429_v5 }
 0x609   : > { %v1450_v19 = vand.u32 4294901760, %v1434_v18 }
 0x60b   : > { %v1508_v12 = vsub.f32 %v1434_v18, %v1450_v19 }
 0x60c   : > { %v1425_v21 = vpop.xlane.xlu1 %1424 }
 0x60d   : > { %v1433_v42 = vmul.f32 0.0078125, %v1425_v21  ;;  %v1509_v30 = vand.u32 4294901760, %v1508_v12 }
 0x60e   : > { %v1431_v23 = vpop.xlane.xlu0 %1430 }
 0x60f   : > { %v1452_v22 = vand.u32 4294901760, %v1433_v42  ;;  %v1435_v16 = vmul.f32 0.0078125, %v1431_v23  ;;  %v1510_v35 = vsub.f32 %v1508_v12, %v1509_v30 }
 0x611   : > { %v1514_v26 = vsub.f32 %v1433_v42, %v1452_v22  ;;  %v1448_v27 = vand.u32 4294901760, %v1435_v16  ;;  %v1511_v40 = vand.u32 4294901760, %v1510_v35 }
 0x613   : > { %v1502_v29 = vsub.f32 %v1435_v16, %v1448_v27  ;;  %1449 = vmatpush.msra.mxu2 %v1448_v27  ;;  %1600 = vmatpush.msrb.mxu1 %v1448_v27  ;;  %v1515_v17 = vand.u32 4294901760, %v1514_v26 }
 0x615   : > { %v1503_v31 = vand.u32 4294901760, %v1502_v29  ;;  %1451 = vmatpush.msra.mxu2 %v1450_v19  ;;  %1556 = vmatpush.msra.mxu0 %v1502_v29  ;;  %v1516_v38 = vsub.f32 %v1514_v26, %v1515_v17 }
 0x616   : > { %1602 = vmatpush.msrb.mxu1 %v1450_v19  ;;  %v1423_v32 = vpop.xlane.xlu0 %1422 }
 0x617   : > { %v1504_v33 = vsub.f32 %v1502_v29, %v1503_v31  ;;  %v1432_v28 = vmul.f32 0.0078125, %v1423_v32  ;;  %1453 = vmatpush.msra.mxu2 %v1452_v22  ;;  %1559 = vmatpush.msra.mxu0 %v1508_v12  ;;  %v1517_v45 = vand.u32 4294901760, %v1516_v38 }
 0x618   : > { %1604 = vmatpush.msrb.mxu1 %v1452_v22 }
 0x619   : > { %v1454_v36 = vand.u32 4294901760, %v1432_v28  ;;  %1562 = vmatpush.msra.mxu0 %v1514_v26  ;;  %v1505_v37 = vand.u32 4294901760, %v1504_v33 }
 0x61b   : > { %v1520_v39 = vsub.f32 %v1432_v28, %v1454_v36  ;;  %1455 = vmatpush.msra.mxu2 %v1454_v36  ;;  %1506 = vmatpush.msra.mxu3 %v1505_v37 }
 0x61c   : > { %1606 = vmatpush.msrb.mxu1 %v1454_v36  ;;  %1461 = vmatmul.f32.vlgmr.msra.gmra.mxu2 %v2821_v20 }
 0x61d   : > { %1647 = vmatpush.msrb.mxu2 %v1503_v31  ;;  %1512 = vmatpush.msra.mxu3 %v1511_v40  ;;  %v1521_v48 = vand.u32 4294901760, %v1520_v39 }
 0x61e   : > { %1565 = vmatpush.msra.mxu0 %v1520_v39  ;;  %1610 = vmatmul.f32.vlgmr.msrb.gmra.mxu1 %v2797_v2 }
 0x61f   : > { %1651 = vmatpush.msrb.mxu2 %v1509_v30  ;;  %1518 = vmatpush.msra.mxu3 %v1517_v45  ;;  %v1522_v49 = vsub.f32 %v1520_v39, %v1521_v48 }
 0x620   : > { %1568 = vmatmul.f32.vlgmr.msra.gmra.mxu0 %v2790_v55 }
 0x621   : > { %1655 = vmatpush.msrb.mxu2 %v1515_v17  ;;  %v1523_v50 = vand.u32 4294901760, %v1522_v49 }
 0x623   : > { %1659 = vmatpush.msrb.mxu2 %v1521_v48  ;;  %1524 = vmatpush.msra.mxu3 %v1523_v50 }
 0x624   : > { %1469 = vmatmul.f32.gmra.mxu2 %v2849_v41  ;;  %1526 = vmatmul.f32.vlgmr.msra.gmra.mxu3 %v2784_v52 }
 0x625   : > { %1690 = vmatpush.msrb.mxu3 %v1448_v27 }
 0x626   : > { %1616 = vmatmul.f32.gmra.mxu1 %v2827_v24 }
 0x627   : > { %1692 = vmatpush.msrb.mxu3 %v1450_v19 }
 0x628   : > { %1573 = vmatmul.f32.gmra.mxu0 %v2815_v14 }
 0x629   : > { %1694 = vmatpush.msrb.mxu3 %v1452_v22 }
 0x62b   : > { %1696 = vmatpush.msrb.mxu3 %v1454_v36 }
 0x62c   : > { %1477 = vmatmul.f32.gmra.mxu2 %v2868_v51  ;;  %1530 = vmatmul.f32.gmra.mxu3 %v2801_v6 }
 0x62e   : > { %1622 = vmatmul.f32.gmra.mxu1 %v2852_v43 }
 0x630   : > { %1578 = vmatmul.f32.gmra.mxu0 %v2842_v34 }
 0x634   : > { %1485 = vmatmul.f32.gmra.mxu2 %v2879_v59  ;;  %1534 = vmatmul.f32.gmra.mxu3 %v2829_v25 }
 0x636   : > { %1628 = vmatmul.f32.gmra.mxu1 %v2871_v53 }
 0x638   : > { %1583 = vmatmul.f32.gmra.mxu0 %v2861_v46 }
 0x63c   : > { %1538 = vmatmul.f32.gmra.mxu3 %v2854_v44  ;;  %1661 = vmatmul.f32.vlgmr.msrb.gmra.mxu2 %v2784_v52 }
 0x644   : > { %1665 = vmatmul.f32.gmra.mxu2 %v2801_v6  ;;  %1698 = vmatmul.f32.vlgmr.msrb.gmra.mxu3 %v2784_v52 }
 0x64c   : > { %1669 = vmatmul.f32.gmra.mxu2 %v2829_v25  ;;  %1702 = vmatmul.f32.gmra.mxu3 %v2801_v6 }
 0x654   : > { %1673 = vmatmul.f32.gmra.mxu2 %v2854_v44  ;;  %1706 = vmatmul.f32.gmra.mxu3 %v2829_v25 }
 0x65c   : > { %1710 = vmatmul.f32.gmra.mxu3 %v2854_v44 }
 0x69b   : > { %v1611_v4 = vpop.f32.mrf.mxu1 }
 0x69d   : > { %v1569_v62 = vpop.f32.mrf.mxu0 }
 0x69f   : > { %v1462_v54 = vpop.f32.mrf.mxu2 }
 0x6a3   : > { %v1617_v19 = vpop.f32.mrf.mxu1 }
 0x6a5   : > { %v1574_v60 = vpop.f32.mrf.mxu0 }
 0x6a7   : > { %v1470_v56 = vpop.f32.mrf.mxu2  ;;  %v1527_v58 = vpop.f32.mrf.mxu3 }
 0x6a8   : > { %v1528_v47 = vadd.f32 %v1527_v58, %v1462_v54 }
 0x6aa   : > { %v1570_v13 = vadd.f32 %v1569_v62, %v1528_v47 }
 0x6ab   : > { %v1623_v30 = vpop.f32.mrf.mxu1 }
 0x6ac   : > { %v1612_v18 = vadd.f32 %v1611_v4, %v1570_v13 }
 0x6ad   : > { %v1579_v16 = vpop.f32.mrf.mxu0 }
 0x6af   : > { %v1478_v61 = vpop.f32.mrf.mxu2  ;;  %v1531_v7 = vpop.f32.mrf.mxu3 }
 0x6b0   : > { %v1532_v5 = vadd.f32 %v1531_v7, %v1470_v56 }
 0x6b2   : > { %v1575_v12 = vadd.f32 %v1574_v60, %v1532_v5 }
 0x6b3   : > { %v1629_v48 = vpop.f32.mrf.mxu1 }
 0x6b4   : > { %v1618_v27 = vadd.f32 %v1617_v19, %v1575_v12 }
 0x6b5   : > { %v1584_v36 = vpop.f32.mrf.mxu0 }
 0x6b7   : > { %v1486_v63 = vpop.f32.mrf.mxu2  ;;  %v1535_v0 = vpop.f32.mrf.mxu3 }
 0x6b8   : > { %v1536_v26 = vadd.f32 %v1535_v0, %v1478_v61 }
 0x6ba   : > { %v1580_v17 = vadd.f32 %v1579_v16, %v1536_v26 }
 0x6bc   : > { %v1624_v35 = vadd.f32 %v1623_v30, %v1580_v17  ;;  %v1288_v30 = vadd.f32 %v2983_v1, %v2907_v57 }
 0x6bf   : > { %v1539_v9 = vpop.f32.mrf.mxu3  ;;  %v1662_v10 = vpop.f32.mrf.mxu2 }
 0x6c0   : > { %v1663_v21 = vadd.f32 %v1662_v10, %v1612_v18  ;;  %v1540_v28 = vadd.f32 %v1539_v9, %v1486_v63 }
 0x6c2   : > { %v1585_v39 = vadd.f32 %v1584_v36, %v1540_v28 }
 0x6c4   : > { %v1630_v54 = vadd.f32 %v1629_v48, %v1585_v39 }
 0x6c7   : > { %v1666_v42 = vpop.f32.mrf.mxu2  ;;  %v1699_v23 = vpop.f32.mrf.mxu3 }
 0x6c8   : > { %v1700_v22 = vadd.f32 %v1699_v23, %v1663_v21  ;;  %v1667_v29 = vadd.f32 %v1666_v42, %v1618_v27 }
 0x6ca   : > { %1742 = vperm.xlu1 %2477, %v1700_v22   ;;  %v1714_v40 = vmul.f32 %v1700_v22, %v1700_v22 }
 0x6cf   : > { %v1703_v31 = vpop.f32.mrf.mxu3  ;;  %v1670_v33 = vpop.f32.mrf.mxu2 }
 0x6d0   : > { %v1704_v32 = vadd.f32 %v1703_v31, %v1667_v29  ;;  %v1671_v37 = vadd.f32 %v1670_v33, %v1624_v35  ;;  %v1289_v35 = vadd.f32 %v2991_v11, %v2915_v3 }
 0x6d2   : > { %1747 = vperm.xlu2 %2466, %v1704_v32   ;;  %v1715_v7 = vmul.f32 %v1704_v32, %v1704_v32 }
 0x6d7   : > { %v1707_v38 = vpop.f32.mrf.mxu3  ;;  %v1674_v50 = vpop.f32.mrf.mxu2 }
 0x6d8   : > { %v1708_v45 = vadd.f32 %v1707_v38, %v1671_v37  ;;  %v1675_v58 = vadd.f32 %v1674_v50, %v1630_v54 }
 0x6da   : > { %v1716_v49 = vsub.f32 %v1708_v45, %v1714_v40 }
 0x6dc   : > { %v1718_v56 = vadd.f32 1e-05, %v1716_v49 }
 0x6de   : > { %2510 = vrsqrt.f32 %v1718_v56  ;;  %vm1726_vm6 = vweird.f32 %v1718_v56 }
 0x6df   : > { %v1711_v61 = vpop.f32.mrf.mxu3 }
 0x6e0   : > { %v1712_v62 = vadd.f32 %v1711_v61, %v1675_v58 }
 0x6e2   : > { %v1717_v0 = vsub.f32 %v1712_v62, %v1715_v7 }
 0x6e4   : > { %v2511_v4 = vpop.eup %2510  ;;  %v1719_v63 = vadd.f32 1e-05, %v1717_v0 }
 0x6e5   : > { %v1721_v47 = vmul.f32 %v2511_v4, %v1718_v56  ;;  %vm1727_vm3 = vweird.f32 %v2511_v4 }
 0x6e6   : > { %2512 = vrsqrt.f32 %v1719_v63  ;;  %vm1728_vm7 = vmor %vm1726_vm6, %vm1727_vm3  ;;  %vm1736_vm9 = vweird.f32 %v1719_v63 }
 0x6e7   : > { %v1722_v9 = vmul.f32 %v2511_v4, %v1721_v47 }
 0x6e9   : > { %v1723_v10 = vmul.f32 0.5, %v1722_v9 }
 0x6eb   : > { %v1724_v13 = vsub.f32 1.5, %v1723_v10 }
 0x6ec   : > { %v2513_v60 = vpop.eup %2512 }
 0x6ed   : > { %v1731_v5 = vmul.f32 %v2513_v60, %v1719_v63  ;;  %v1725_v18 = vmul.f32 %v2511_v4, %v1724_v13  ;;  %vm1737_vm8 = vweird.f32 %v2513_v60 }
 0x6ee   : > { %vm1738_vm10 = vmor %vm1736_vm9, %vm1737_vm8 }
 0x6ef   : > { %v1729_v19 = vsel %vm1728_vm7, %v2511_v4, %v1725_v18  ;;  %v1732_v21 = vmul.f32 %v2513_v60, %v1731_v5 }
 0x6f0   : > { %1754 = vperm.xlu2 %2466, %v1729_v19  }
 0x6f1   : > { %v1733_v42 = vmul.f32 0.5, %v1732_v21 }
 0x6f3   : > { %v1734_v23 = vsub.f32 1.5, %v1733_v42 }
 0x6f5   : > { %v1735_v12 = vmul.f32 %v2513_v60, %v1734_v23 }
 0x6f7   : > { %v1739_v22 = vsel %vm1738_vm10, %v2513_v60, %v1735_v12 }
 0x6f8   : > { %1759 = vperm.xlu0 %2465, %v1739_v22  }
 0x72c   : > { %v1748_v16 = vpop.permute.xlu2 %1747 }
 0x72d   : > { %v1751_v33 = vsub.f32 %v2994_v15, %v1748_v16 }
 0x73c   : > { %v1743_v26 = vpop.permute.xlu1 %1742 }
 0x73d   : > { %v1750_v27 = vsub.f32 %v2986_v8, %v1743_v26 }
 0x74a   : > { %v1755_v29 = vpop.permute.xlu2 %1754 }
 0x74b   : > { %v1762_v31 = vmul.f32 %v1755_v29, %v1750_v27 }
 0x74d   : > { %v3027_v17 = vadd.f32 %v1762_v31, %v1288_v30 }
 0x74f   : > { %v1770_v32 = vmul.f32 %v3027_v17, %v3027_v17 }
 0x751   : > { %1772 = vadd.xlane.f32.xlu1 %v1770_v32 }
 0x76a   : > { %v1760_v28 = vpop.permute.xlu0 %1759 }
 0x76b   : > { %v1763_v36 = vmul.f32 %v1760_v28, %v1751_v33 }
 0x76d   : > { %v3034_v37 = vadd.f32 %v1763_v36, %v1289_v35 }
 0x76f   : > { %1768 = vadd.xlane.f32.xlu2 %v3034_v37  ;;  %v1771_v57 = vmul.f32 %v3034_v37, %v3034_v37 }
 0x771   : > { %1774 = vadd.xlane.f32.xlu0 %v1771_v57 }
 0x779   : > { %1766 = vadd.xlane.f32.xlu0 %v3027_v17 }
 0x7c4   : > { %v1773_v1 = vpop.xlane.xlu1 %1772 }
 0x7c5   : > { %v1778_v8 = vmul.f32 0.0078125, %v1773_v1 }
 0x7c7   : > { %v1794_v38 = vand.u32 4294901760, %v1778_v8 }
 0x7c9   : > { %v1852_v45 = vsub.f32 %v1778_v8, %v1794_v38 }
 0x7cb   : > { %v1853_v54 = vand.u32 4294901760, %v1852_v45 }
 0x7cd   : > { %v1854_v0 = vsub.f32 %v1852_v45, %v1853_v54 }
 0x7cf   : > { %v1855_v10 = vand.u32 4294901760, %v1854_v0 }
 0x7e2   : > { %v1769_v39 = vpop.xlane.xlu2 %1768 }
 0x7e3   : > { %v1777_v15 = vmul.f32 0.0078125, %v1769_v39 }
 0x7e4   : > { %v1775_v40 = vpop.xlane.xlu0 %1774 }
 0x7e5   : > { %v1796_v48 = vand.u32 4294901760, %v1777_v15  ;;  %v1779_v3 = vmul.f32 0.0078125, %v1775_v40 }
 0x7e7   : > { %v1858_v11 = vsub.f32 %v1777_v15, %v1796_v48  ;;  %v1792_v49 = vand.u32 4294901760, %v1779_v3 }
 0x7e9   : > { %v1846_v50 = vsub.f32 %v1779_v3, %v1792_v49  ;;  %1793 = vmatpush.msrb.mxu0 %v1792_v49  ;;  %1944 = vmatpush.msra.mxu3 %v1792_v49  ;;  %v1859_v58 = vand.u32 4294901760, %v1858_v11 }
 0x7eb   : > { %v1847_v56 = vand.u32 4294901760, %v1846_v50  ;;  %1795 = vmatpush.msrb.mxu0 %v1794_v38  ;;  %1900 = vmatpush.msra.mxu2 %v1846_v50  ;;  %v1860_v47 = vsub.f32 %v1858_v11, %v1859_v58 }
 0x7ec   : > { %1946 = vmatpush.msra.mxu3 %v1794_v38  ;;  %v1767_v61 = vpop.xlane.xlu0 %1766 }
 0x7ed   : > { %v1848_v7 = vsub.f32 %v1846_v50, %v1847_v56  ;;  %v1776_v62 = vmul.f32 0.0078125, %v1767_v61  ;;  %1797 = vmatpush.msrb.mxu0 %v1796_v48  ;;  %1903 = vmatpush.msra.mxu2 %v1852_v45  ;;  %v1861_v13 = vand.u32 4294901760, %v1860_v47 }
 0x7ee   : > { %1948 = vmatpush.msra.mxu3 %v1796_v48 }
 0x7ef   : > { %v1798_v4 = vand.u32 4294901760, %v1776_v62  ;;  %1906 = vmatpush.msra.mxu2 %v1858_v11  ;;  %v1849_v63 = vand.u32 4294901760, %v1848_v7 }
 0x7f1   : > { %v1864_v9 = vsub.f32 %v1776_v62, %v1798_v4  ;;  %1799 = vmatpush.msrb.mxu0 %v1798_v4  ;;  %1850 = vmatpush.msra.mxu1 %v1849_v63 }
 0x7f2   : > { %1950 = vmatpush.msra.mxu3 %v1798_v4  ;;  %1805 = vmatmul.f32.vlgmr.msrb.gmra.mxu0 %v2821_v20 }
 0x7f3   : > { %1991 = vmatpush.msra.mxu0 %v1847_v56  ;;  %1856 = vmatpush.msra.mxu1 %v1855_v10  ;;  %v1865_v60 = vand.u32 4294901760, %v1864_v9 }
 0x7f4   : > { %1909 = vmatpush.msra.mxu2 %v1864_v9  ;;  %1954 = vmatmul.f32.vlgmr.msra.gmra.mxu3 %v2797_v2 }
 0x7f5   : > { %1995 = vmatpush.msra.mxu0 %v1853_v54  ;;  %1912 = vmatmul.f32.vlgmr.msra.gmra.mxu2 %v2790_v55  ;;  %v1866_v5 = vsub.f32 %v1864_v9, %v1865_v60 }
 0x7f6   : > { %1862 = vmatpush.msra.mxu1 %v1861_v13 }
 0x7f7   : > { %1999 = vmatpush.msra.mxu0 %v1859_v58  ;;  %v1867_v18 = vand.u32 4294901760, %v1866_v5 }
 0x7f9   : > { %2003 = vmatpush.msra.mxu0 %v1865_v60  ;;  %1868 = vmatpush.msra.mxu1 %v1867_v18 }
 0x7fa   : > { %1870 = vmatmul.f32.vlgmr.msra.gmra.mxu1 %v2784_v52  ;;  %1813 = vmatmul.f32.gmra.mxu0 %v2849_v41 }
 0x7fb   : > { %2034 = vmatpush.msrb.mxu1 %v1792_v49 }
 0x7fc   : > { %1960 = vmatmul.f32.gmra.mxu3 %v2827_v24 }
 0x7fd   : > { %1917 = vmatmul.f32.gmra.mxu2 %v2815_v14  ;;  %2036 = vmatpush.msrb.mxu1 %v1794_v38 }
 0x7ff   : > { %2038 = vmatpush.msrb.mxu1 %v1796_v48 }
 0x801   : > { %2040 = vmatpush.msrb.mxu1 %v1798_v4 }
 0x802   : > { %1874 = vmatmul.f32.gmra.mxu1 %v2801_v6  ;;  %1821 = vmatmul.f32.gmra.mxu0 %v2868_v51 }
 0x804   : > { %1966 = vmatmul.f32.gmra.mxu3 %v2852_v43 }
 0x805   : > { %1922 = vmatmul.f32.gmra.mxu2 %v2842_v34 }
 0x80a   : > { %1878 = vmatmul.f32.gmra.mxu1 %v2829_v25  ;;  %1829 = vmatmul.f32.gmra.mxu0 %v2879_v59 }
 0x80c   : > { %1972 = vmatmul.f32.gmra.mxu3 %v2871_v53 }
 0x80d   : > { %1927 = vmatmul.f32.gmra.mxu2 %v2861_v46 }
 0x812   : > { %1882 = vmatmul.f32.gmra.mxu1 %v2854_v44  ;;  %2005 = vmatmul.f32.vlgmr.msra.gmra.mxu0 %v2784_v52 }
 0x81a   : > { %2042 = vmatmul.f32.vlgmr.msrb.gmra.mxu1 %v2784_v52  ;;  %2009 = vmatmul.f32.gmra.mxu0 %v2801_v6 }
 0x822   : > { %2046 = vmatmul.f32.gmra.mxu1 %v2801_v6  ;;  %2013 = vmatmul.f32.gmra.mxu0 %v2829_v25 }
 0x82a   : > { %2050 = vmatmul.f32.gmra.mxu1 %v2829_v25  ;;  %2017 = vmatmul.f32.gmra.mxu0 %v2854_v44 }
 0x832   : > { %2054 = vmatmul.f32.gmra.mxu1 %v2854_v44 }
 0x86f   : > { %v1806_v55 = vpop.f32.mrf.mxu0 }
 0x877   : > { %v1871_v2 = vpop.f32.mrf.mxu1  ;;  %v1814_v14 = vpop.f32.mrf.mxu0 }
 0x878   : > { %v1913_v41 = vpop.f32.mrf.mxu2  ;;  %v1955_v43 = vpop.f32.mrf.mxu3  ;;  %v1872_v46 = vadd.f32 %v1871_v2, %v1806_v55 }
 0x87a   : > { %v1914_v6 = vadd.f32 %v1913_v41, %v1872_v46 }
 0x87c   : > { %v1956_v25 = vadd.f32 %v1955_v43, %v1914_v6 }
 0x87f   : > { %v1875_v20 = vpop.f32.mrf.mxu1  ;;  %v1822_v24 = vpop.f32.mrf.mxu0 }
 0x880   : > { %v1918_v53 = vpop.f32.mrf.mxu2  ;;  %v1876_v19 = vadd.f32 %v1875_v20, %v1814_v14  ;;  %v1961_v21 = vpop.f32.mrf.mxu3 }
 0x882   : > { %v1919_v12 = vadd.f32 %v1918_v53, %v1876_v19 }
 0x884   : > { %v1962_v27 = vadd.f32 %v1961_v21, %v1919_v12 }
 0x887   : > { %v1879_v34 = vpop.f32.mrf.mxu1  ;;  %v1830_v52 = vpop.f32.mrf.mxu0 }
 0x888   : > { %v1923_v16 = vpop.f32.mrf.mxu2  ;;  %v1880_v26 = vadd.f32 %v1879_v34, %v1822_v24  ;;  %v1967_v31 = vpop.f32.mrf.mxu3 }
 0x88a   : > { %v1924_v33 = vadd.f32 %v1923_v16, %v1880_v26 }
 0x88c   : > { %v1968_v36 = vadd.f32 %v1967_v31, %v1924_v33 }
 0x88f   : > { %v1883_v51 = vpop.f32.mrf.mxu1  ;;  %v2006_v59 = vpop.f32.mrf.mxu0 }
 0x890   : > { %v2007_v42 = vadd.f32 %v2006_v59, %v1956_v25  ;;  %v1884_v35 = vadd.f32 %v1883_v51, %v1830_v52  ;;  %v1928_v57 = vpop.f32.mrf.mxu2  ;;  %v1973_v40 = vpop.f32.mrf.mxu3 }
 0x892   : > { %v1929_v15 = vadd.f32 %v1928_v57, %v1884_v35 }
 0x894   : > { %v1974_v11 = vadd.f32 %v1973_v40, %v1929_v15 }
 0x897   : > { %v2043_v23 = vpop.f32.mrf.mxu1  ;;  %v2010_v22 = vpop.f32.mrf.mxu0 }
 0x898   : > { %v2044_v44 = vadd.f32 %v2043_v23, %v2007_v42  ;;  %v2011_v29 = vadd.f32 %v2010_v22, %v1962_v27 }
 0x89a   : > { %2086 = vperm.xlu1 %2477, %v2044_v44   ;;  %v2058_v38 = vmul.f32 %v2044_v44, %v2044_v44 }
 0x89f   : > { %v2047_v30 = vpop.f32.mrf.mxu1  ;;  %v2014_v28 = vpop.f32.mrf.mxu0 }
 0x8a0   : > { %v2048_v32 = vadd.f32 %v2047_v30, %v2011_v29  ;;  %v2015_v1 = vadd.f32 %v2014_v28, %v1968_v36 }
 0x8a2   : > { %2091 = vperm.xlu2 %2466, %v2048_v32   ;;  %v2059_v54 = vmul.f32 %v2048_v32, %v2048_v32 }
 0x8a7   : > { %v2051_v8 = vpop.f32.mrf.mxu1  ;;  %v2018_v48 = vpop.f32.mrf.mxu0 }
 0x8a8   : > { %v2052_v39 = vadd.f32 %v2051_v8, %v2015_v1  ;;  %v2019_v49 = vadd.f32 %v2018_v48, %v1974_v11 }
 0x8aa   : > { %v2060_v45 = vsub.f32 %v2052_v39, %v2058_v38 }
 0x8ac   : > { %v2062_v3 = vadd.f32 1e-05, %v2060_v45 }
 0x8ae   : > { %2514 = vrsqrt.f32 %v2062_v3  ;;  %vm2070_vm12 = vweird.f32 %v2062_v3 }
 0x8af   : > { %v2055_v50 = vpop.f32.mrf.mxu1 }
 0x8b0   : > { %v2056_v56 = vadd.f32 %v2055_v50, %v2019_v49 }
 0x8b2   : > { %v2061_v58 = vsub.f32 %v2056_v56, %v2059_v54 }
 0x8b4   : > { %v2515_v61 = vpop.eup %2514  ;;  %v2063_v7 = vadd.f32 1e-05, %v2061_v58 }
 0x8b5   : > { %v2065_v62 = vmul.f32 %v2515_v61, %v2062_v3  ;;  %vm2071_vm11 = vweird.f32 %v2515_v61 }
 0x8b6   : > { %2516 = vrsqrt.f32 %v2063_v7  ;;  %vm2072_vm13 = vmor %vm2070_vm12, %vm2071_vm11  ;;  %vm2080_vm15 = vweird.f32 %v2063_v7 }
 0x8b7   : > { %v2066_v0 = vmul.f32 %v2515_v61, %v2065_v62 }
 0x8b9   : > { %v2067_v4 = vmul.f32 0.5, %v2066_v0 }
 0x8bb   : > { %v2068_v63 = vsub.f32 1.5, %v2067_v4 }
 0x8bc   : > { %v2517_v47 = vpop.eup %2516 }
 0x8bd   : > { %v2075_v9 = vmul.f32 %v2517_v47, %v2063_v7  ;;  %v2069_v10 = vmul.f32 %v2515_v61, %v2068_v63  ;;  %vm2081_vm14 = vweird.f32 %v2517_v47 }
 0x8be   : > { %vm2082_vm0 = vmor %vm2080_vm15, %vm2081_vm14 }
 0x8bf   : > { %v2073_v13 = vsel %vm2072_vm13, %v2515_v61, %v2069_v10  ;;  %v2076_v60 = vmul.f32 %v2517_v47, %v2075_v9 }
 0x8c0   : > { %2098 = vperm.xlu0 %2465, %v2073_v13  }
 0x8c1   : > { %v2077_v5 = vmul.f32 0.5, %v2076_v60 }
 0x8c3   : > { %v2078_v18 = vsub.f32 1.5, %v2077_v5 }
 0x8c5   : > { %v2079_v55 = vmul.f32 %v2517_v47, %v2078_v18 }
 0x8c7   : > { %v2083_v2 = vsel %vm2082_vm0, %v2517_v47, %v2079_v55 }
 0x8c8   : > { %2103 = vperm.xlu0 %2465, %v2083_v2  }
 0x8fc   : > { %v2092_v41 = vpop.permute.xlu2 %2091 }
 0x8fd   : > { %v2095_v52 = vsub.f32 %v3034_v37, %v2092_v41 }
 0x90c   : > { %v2087_v14 = vpop.permute.xlu1 %2086 }
 0x90d   : > { %v2094_v20 = vsub.f32 %v3027_v17, %v2087_v14 }
 0x932   : > { %v2099_v24 = vpop.permute.xlu0 %2098 }
 0x933   : > { %v2106_v34 = vmul.f32 %v2099_v24, %v2094_v20 }
 0x935   : > { %2108 = vst [vmem:[%s303_s14] sm:$0xff] %v2106_v34 }
 0x93a   : > { %v2104_v43 = vpop.permute.xlu0 %2103 }
 0x93b   : > { %v2107_v46 = vmul.f32 %v2104_v43, %v2095_v52 }
 0x93d   : > { %2109 = vst [vmem:[%s303_s14 + $0x8] sm:$0xff] %v2107_v46 }
 0x93e   : > { %2575 = shalt.err (!%p2572_p9)
}
 0x93f   : > { %s2624_s27 = smov 128   ;;  %s2625_s12 = smov 256  }
 0x940   : > { %s2626_s13 = smov 8  }
 0x941   : > { %2389 = dma.vmem_to_hbm [thread:$0]  (%p2705_p6), %s2123_s18, 256, %s2125_s19, %s2111_s3, %s2624_s27, %s2625_s12, %s2626_s13  }
 0x942 PF: > { %s2139_s14 = sand.u32 1, %s2602_s21   ;;  %p2396_p11 = pnand %p2208_p1, %p2711_p10 }
 0x943   : > { %s2140_s15 = scalar_lea.sflag [#allocation5], %s2139_s14 }
 0x944   : > { %p2397_p12 = pneg %p2396_p11 }
 0x946   : > { %2597 = dma.done.wait (%p2397_p12), %s2140_s15, 256  }
 0x947   : > { %2599 = vsyncadd (%p2397_p12), %s2140_s15, 4294967040  ;;  %p17_p13 = scmp.ge.s32.totalorder %s2687_s26, 4   ;;  %s3112_s21 = smov %s2606_s22 }
 0x948   : > { %s3113_s22 = smov %s2610_s23  ;;  %s3114_s23 = smov %s2699_s29 }
 0x949   : > { %s3115_s24 = smov %s2687_s26  ;;  %19 = sbr.rel (!%p17_p13) target bundleno = 4 (0x4), region = 131 }
 0x94e   :  { %2146 = vsyncpa [#allocation4], 1 }
 0x94f   :  { %2148 = vsyncpa [#allocation4 + $0x1], 1 }
 0x950   :  { %2149 = vsyncpa [#allocation5], 1 }
 0x951   :  { %2151 = vsyncpa [#allocation5 + $0x1], 1 }

// kernel: tpu_custom_call.1
= control target key start
LH: loop header
LB: loop body
LE: loop exit
PB: predicated region body
PF: predicated region fallthrough
CT: control target
= control target key end

     0   :  { %11 = vsyncpa [#allocation4], 0  ;;  %s3101_s0 = inlined_call_operand.vmem [shape: bf16[3,32,48], index: 0, kind: input, shape index: {}]   ;;  %s3102_s1 = inlined_call_operand.vmem [shape: bf16[3,16,16], index: 1, kind: input, shape index: {}]   ;;  %s3103_s2 = inlined_call_operand.vmem [shape: f32[32,32], index: 2, kind: input, shape index: {}]   ;;  %s3104_s3 = inlined_call_operand.vmem [shape: f32[128,8], index: 3, kind: input, shape index: {}]   ;;  %s3105_s4 = inlined_call_operand.hbm [shape: f32[8,128], index: 4, kind: input, shape index: {}]   ;;  %s3106_s5 = inlined_call_operand.vmem [shape: f32[16,256], index: 5, kind: input, shape index: {}]   ;;  %s3107_s6 = inlined_call_operand.hbm [shape: f32[16,256], index: 6, kind: output, shape index: {}]  }
   0x1   :  { %12 = vsyncpa [#allocation5], 0 }
   0x2   :  { %14 = vsyncpa [#allocation5 + $0x1], 0  ;;  %s2662_s21 = smov 0   ;;  %s2664_s22 = smov 0  }
   0x3   :  { %s2666_s23 = smov 0   ;;  %s2668_s24 = smov 0  }
   0x4 LB: > { %s2683_s3 = sadd.s32 4294967295, %s2614_s24   ;;  %s2205_s25 = sadd.s32 4294967294, %s2614_s24   ;;  %s2614_s24 = sphi %s2668_s24, %s3115_s24   ;;  %s2610_s23 = sphi %s2666_s23, %s3114_s23   ;;  %s2606_s22 = sphi %s2664_s22, %s3113_s22   ;;  %s2602_s21 = sphi %s2662_s21, %s3112_s21  }
   0x5   : > { %s2687_s26 = sadd.s32 1, %s2614_s24   ;;  %s132_s27 = sadd.s32 1, %s2610_s23 }
   0x6   : > { %s129_s28 = ssub.s32 %s2614_s24, %s2687_s26  ;;  %p139_p0 = scmp.ne.s32.totalorder %s2610_s23, %s2606_s22 }
   0x7   : > { %p130_p1 = scmp.eq.s32.totalorder %s129_s28, 0  ;;  %p140_p2 = scmp.eq.s32.totalorder %s2614_s24, 0 }
   0x8   : > { %p169_p3 = scmp.eq.s32.totalorder %s2683_s3, 1  ;;  %p174_p4 = scmp.ne.s32.totalorder %s2606_s22, %s2602_s21 }
   0x9   : > { %s2699_s29 = scalar_select %p130_p1, %s2610_s23, %s132_s27  }
   0xa   : > { %p2701_p5 = por %p140_p2, %p139_p0  ;;  %p2705_p6 = por %p169_p3, %p139_p0 }
   0xb   : > { %p175_p7 = scmp.eq.s32.totalorder %s2205_s25, 1  ;;  %p2206_p8 = scmp.ge.s32.totalorder %s2614_s24, 1 }
   0xc   : > { %p182_p9 = scmp.lt.s32.totalorder %s2614_s24, 3  ;;  %p2399_p11 = scmp.eq.s32.totalorder %s2683_s3, 0 }
   0xd   : > { %p2711_p10 = por %p175_p7, %p174_p4  ;;  %s206_s12 = sshll.u32 %s3105_s4, 4  ;;  %s207_s12 = int_to_ptr.hbm [resolvable:$true] %s206_s12 }
   0xe   : > { %p2716_p12 = pnand %p2206_p8, %p182_p9  ;;  %s2616_s13 = smov [#allocation3]  }
   0xf   : > { %s208_s14 = sshll.u32 %s2616_s13, 4  ;;  %p2208_p1 = scmp.ge.s32.totalorder %s2614_s24, 2  ;;  %s209_s14 = int_to_ptr.vmem [resolvable:$true] %s208_s14 }
  0x10   : > { %p2391_p13 = pneg %p2716_p12 }
  0x11   : > { %215 = sbr.rel (%p2208_p1) target bundleno = 28 (0x1c), region = 36 }
  0x12   : > { %p2392_p0 = pnand %p2399_p11, %p2391_p13 }
  0x14   : > { %2394 = dma.hbm_to_vmem [thread:$0]  (!%p2392_p0), %s207_s12, 128, %s209_s14, [#allocation4]  }
  0x16   : > { %218 = sbr.rel (!%p2701_p5) target bundleno = 28 (0x1c), region = 40  ;;  %s220_s15 = sand.u32 (%p2701_p5), 1, %s2610_s23  }
  0x17   : > { %s2210_s16 = sshll.u32 (%p2701_p5), %s2614_s24, 3  ;;  %s2209_s17 = sshll.u32 (%p2701_p5), %s220_s15, 4 }
  0x18   : > { %s224_s20 = scalar_lea.vmem (%p2701_p5), %s3106_s5, %s2210_s16  ;;  %s222_s25 = scalar_lea.vmem (%p2701_p5), [#allocation6], %s2209_s17 }
  0x19   : > { %v255_v0 = vld [vmem:[%s224_s20] sm:$0xff] (%p2701_p5)  ;;  %v257_v1 = vld [vmem:[%s224_s20 + $0x10] sm:$0xff] (%p2701_p5) }
  0x1a   : > { %256 = vst [vmem:[%s222_s25] sm:$0xff] (%p2701_p5), %v255_v0 }
  0x1b   : > { %258 = vst [vmem:[%s222_s25 + $0x8] sm:$0xff] %v257_v1 }
  0x1c PF: > { %267 = sbr.rel (%p2716_p12) target bundleno = 2370 (0x942), region = 78 }
  0x21   : > { %2593 = dma.done.wait (%p2399_p11), [#allocation4], 128  }
  0x22   : > { %2595 = vsyncadd (%p2399_p11), [#allocation4], 4294967168  ;;  %s275_s27 = sand.u32 1, %s2606_s22   ;;  %s2617_s9 = smov 127   ;;  %v309_v6 = vlaneseq  ;;  %v2312_v23 = vld [vmem:[%s3101_s0] sm:$0xff]  ;;  %vm393_vm2 = vcmask 392192  }
  0x23   : > { %s2746_s28 = sshll.u32 %s275_s27, 4  ;;  %s2618_s10 = smov 1   ;;  %v2313_v24 = vld [vmem:[%s3101_s0 + $0x8] sm:$0xff]  ;;  %v2317_v40 = vld [vmem:[%s3102_s1] sm:$0xff]  ;;  %vm437_vm3 = vcmask 130048   ;;  %vm471_vm4 = vcmask 261120  }
  0x24   : > { %s277_s30 = scalar_lea.vmem [#allocation6], %s2746_s28  ;;  %v2753_v7 = vand.u32 127, %v309_v6  ;;  %s2619_s17 = smov 126   ;;  %v305_v49 = vld [vmem:[%s3103_s2] sm:$0xff]  ;;  %v306_v54 = vld [vmem:[%s3103_s2 + $0x8] sm:$0xff] }
  0x25   : > { %v323_v2 = vld [vmem:[%s277_s30] sm:$0xff]  ;;  %v2749_v3 = vld [vmem:[%s277_s30 + $0x8] sm:$0xff]  ;;  %s2620_s18 = smov 2   ;;  %v473_v50 = vsel %vm471_vm4, %v305_v49, 0  ;;  %v476_v61 = vsel %vm471_vm4, %v306_v54, 0  ;;  %s2622_s19 = smov 4  }
  0x26   : > { %v2445_v4 = vpack.i.bf16 %v2749_v3, %v323_v2  ;;  %v2338_v5 = vpack.c.bf16 %v2749_v3, %v323_v2  ;;  %vm346_vm0 = vcmp.lt.s32.totalorder %v2753_v7, 127  ;;  %vm335_vm1 = vcmp.ge.s32.totalorder %v2753_v7, 1  ;;  %s2623_s20 = smov 124   ;;  %s2309_s13 = sshll.u32 %s2683_s3, 3 }
  0x27   : > { %v2784_v52 = vand.u32 4294901760, %v473_v50  ;;  %vm835_vm5 = vcmp.lt.s32.totalorder %v2753_v7, 126  ;;  %v2801_v6 = vand.u32 4294901760, %v476_v61  ;;  %vm824_vm6 = vcmp.ge.s32.totalorder %v2753_v7, 2  ;;  %s303_s14 = scalar_lea.vmem [#allocation7], %s2746_s28  ;;  %s2111_s3 = scalar_lea.sflag [#allocation5], %s275_s27 }
  0x28   : > { %2446 = vrot.lane.b32.xlu0 %v2445_v4, %s2617_s9  ;;  %2375 = vst [vmem:[#allocation2] sm:$0xff] %v2338_v5   ;;  %vm1311_vm13 = vcmp.lt.s32.totalorder %v2753_v7, 124  ;;  %vm1300_vm14 = vcmp.ge.s32.totalorder %v2753_v7, 4  ;;  %s2568_s9 = scalar_lea.hbm %s3107_s6, 32 }
  0x29   : > { %v2790_v55 = vsub.f32 %v473_v50, %v2784_v52 }
  0x2f   : > { %v2315_v21 = vld [vmem:[#allocation2] sm:$0xff] }
  0x30   : > { %2451 = vrot.lane.b32.xlu0 %v2445_v4, %s2618_s10 }
  0x9a   : > { %v2447_v8 = vpop.permute.xlu0 %2446 }
  0x9b   : > { %v2449_v9 = vunpack.i.h.bf16 %v2447_v8  ;;  %v2448_v10 = vunpack.i.l.bf16 %v2447_v8 }
  0x9d   : > { %v350_v11 = vsel %vm346_vm0, %v2449_v9, 0.0  ;;  %v349_v12 = vsel %vm346_vm0, %v2448_v10, 0.0  ;;  %v307_v10 = vld [vmem:[%s3103_s2 + $0x10] sm:$0xff] }
  0x9e   : > { %v2343_v13 = vpack.c.bf16 %v350_v11, %v349_v12 }
  0xa0   : > { %2376 = vst [vmem:[#allocation2 + $0x8] sm:$0xff] %v2343_v13  }
  0xa2   : > { %v2452_v14 = vpop.permute.xlu0 %2451 }
  0xa3   : > { %v2454_v15 = vunpack.i.h.bf16 %v2452_v14  ;;  %v2453_v16 = vunpack.i.l.bf16 %v2452_v14  ;;  %v2815_v14 = vsub.f32 %v476_v61, %v2801_v6  ;;  %v2318_v61 = vld [vmem:[%s3101_s0 + $0x10] sm:$0xff] }
  0xa5   : > { %v339_v17 = vsel %vm335_vm1, %v2454_v15, 0.0  ;;  %v338_v18 = vsel %vm335_vm1, %v2453_v16, 0.0 }
  0xa6   : > { %v2333_v19 = vpack.c.bf16 %v339_v17, %v338_v18  ;;  %v479_v17 = vsel %vm471_vm4, %v307_v10, 0 }
  0xa7   : > { %v2316_v20 = vld [vmem:[#allocation2 + $0x8] sm:$0xff] }
  0xa8   : > { %2334 = vst [vmem:[#allocation2 + $0x10] sm:$0xff] %v2333_v19   ;;  %405 = vmatpush.bf16.msra.mxu0 %v2316_v20 }
  0xac   : > { %406 = vmatpush.bf16.msra.mxu0 %v2315_v21 }
  0xaf   : > { %v2314_v22 = vld [vmem:[#allocation2 + $0x10] sm:$0xff] }
  0xb0   : > { %407 = vmatpush.bf16.msra.mxu0 %v2314_v22 }
  0xb3   : > { %2235 = vmatmul.msk.bf16.vlgmr.msra.gmra.mxu0 %vm393_vm2, %v2312_v23 }
  0xc3   : > { %2236 = vmatmul.msk.bf16.gmra.mxu0 %vm393_vm2, %v2313_v24  ;;  %v2827_v24 = vand.u32 4294901760, %v2815_v14 }
 0x130   : > { %v409_v25 = vpop.f32.mrf.mxu0 }
 0x138   : > { %v411_v26 = vpop.f32.mrf.mxu0 }
 0x140   : > { %v414_v27 = vpop.f32.mrf.mxu0 }
 0x141   : > { %2478 = vtanh.f32 %v414_v27 }
 0x147   : > { %v2479_v29 = vpop.eup %2478 }
 0x148   : > { %v416_v28 = vpop.f32.mrf.mxu0  ;;  %v423_v30 = vmul.f32 0.5, %v2479_v29  ;;  %v308_v29 = vld [vmem:[%s3103_s2 + $0x18] sm:$0xff] }
 0x149   : > { %2480 = vtanh.f32 %v416_v28 }
 0x14a   : > { %2482 = vtanh.f32 %v409_v25  ;;  %v425_v33 = vadd.f32 0.5, %v423_v30  ;;  %v2829_v25 = vand.u32 4294901760, %v479_v17 }
 0x14b   : > { %2484 = vtanh.f32 %v411_v26 }
 0x14f   : > { %v2481_v31 = vpop.eup %2480 }
 0x150   : > { %v424_v32 = vmul.f32 0.5, %v2481_v31  ;;  %v2483_v34 = vpop.eup %2482 }
 0x151   : > { %v2485_v36 = vpop.eup %2484  ;;  %v427_v37 = vmul.f32 %v2483_v34, %v425_v33  ;;  %v515_v33 = vsub.f32 %v2815_v14, %v2827_v24  ;;  %v2842_v34 = vsub.f32 %v479_v17, %v2829_v25 }
 0x152   : > { %v426_v35 = vadd.f32 0.5, %v424_v32 }
 0x154   : > { %v428_v38 = vmul.f32 %v2485_v36, %v426_v35  ;;  %v482_v36 = vsel %vm471_vm4, %v308_v29, 0 }
 0x156   : > { %v431_v39 = vpack.c.bf16 %v428_v38, %v427_v37 }
 0x158   : > { %448 = vmatpush.bf16.msra.mxu1 %v431_v39 }
 0x15b   : > { %2241 = vmatmul.msk.bf16.vlgmr.msra.gmra.mxu1 %vm437_vm3, %v2317_v40 }
 0x1d8   : > { %v450_v41 = vpop.f32.mrf.mxu1 }
 0x1d9   : > { %v2769_v42 = vadd.f32 %v450_v41, %v323_v2  ;;  %v2797_v2 = vand.u32 4294901760, %v2790_v55 }
 0x1db   : > { %v461_v43 = vmul.f32 %v2769_v42, %v2769_v42  ;;  %v507_v12 = vsub.f32 %v2790_v55, %v2797_v2 }
 0x1dd   : > { %463 = vadd.xlane.f32.xlu1 %v461_v43  ;;  %v2821_v20 = vand.u32 4294901760, %v507_v12  ;;  %v2852_v43 = vand.u32 4294901760, %v2842_v34 }
 0x1e0   : > { %v452_v44 = vpop.f32.mrf.mxu1 }
 0x1e1   : > { %v2353_v45 = vpack.c.bf16 %v452_v44, %v450_v41  ;;  %v2455_v46 = vpack.i.bf16 %v452_v44, %v450_v41  ;;  %v2774_v47 = vadd.f32 %v452_v44, %v2749_v3  ;;  %v2849_v41 = vand.u32 4294901760, %v515_v33 }
 0x1e2   : > { %v2854_v44 = vand.u32 4294901760, %v482_v36 }
 0x1e3   : > { %2377 = vst [vmem:[#allocation2] sm:$0xff] %v2353_v45   ;;  %2456 = vrot.lane.b32.xlu0 %v2455_v46, %s2619_s17  ;;  %459 = vadd.xlane.f32.xlu2 %v2774_v47  ;;  %v462_v48 = vmul.f32 %v2774_v47, %v2774_v47  ;;  %v523_v45 = vsub.f32 %v2842_v34, %v2852_v43  ;;  %s2121_s17 = scalar_lea.hbm %s3107_s6, %s2309_s13 }
 0x1e5   : > { %465 = vadd.xlane.f32.xlu1 %v462_v48 }
 0x1ea   : > { %v2321_v39 = vld [vmem:[#allocation2] sm:$0xff] }
 0x1eb   : > { %457 = vadd.xlane.f32.xlu2 %v2769_v42 }
 0x1fe   : > { %2461 = vrot.lane.b32.xlu1 %v2455_v46, %s2620_s18  ;;  %v2861_v46 = vsub.f32 %v482_v36, %v2854_v44  ;;  %s2122_s18 = sshll.u32 %s303_s14, 4  ;;  %s2123_s18 = int_to_ptr.vmem [resolvable:$true] %s2122_s18 }
 0x250   : > { %v464_v51 = vpop.xlane.xlu1 %463 }
 0x251   : > { %v469_v53 = vmul.f32 0.0078125, %v464_v51  ;;  %v2868_v51 = vand.u32 4294901760, %v523_v45 }
 0x253   : > { %v2793_v57 = vand.u32 4294901760, %v469_v53 }
 0x255   : > { %v2457_v56 = vpop.permute.xlu0 %2456  ;;  %v2804_v8 = vsub.f32 %v469_v53, %v2793_v57  ;;  %v2871_v53 = vand.u32 4294901760, %v2861_v46 }
 0x256   : > { %v2459_v58 = vunpack.i.h.bf16 %v2457_v56  ;;  %v2458_v59 = vunpack.i.l.bf16 %v2457_v56  ;;  %v460_v60 = vpop.xlane.xlu2 %459 }
 0x257   : > { %v468_v62 = vmul.f32 0.0078125, %v460_v60  ;;  %v557_v16 = vand.u32 4294901760, %v2804_v8 }
 0x258   : > { %v839_v63 = vsel %vm835_vm5, %v2459_v58, 0.0  ;;  %v838_v0 = vsel %vm835_vm5, %v2458_v59, 0.0  ;;  %v466_v1 = vpop.xlane.xlu1 %465  ;;  %v531_v58 = vsub.f32 %v2861_v46, %v2871_v53 }
 0x259   : > { %v2358_v3 = vpack.c.bf16 %v839_v63, %v838_v0  ;;  %v2799_v4 = vand.u32 4294901760, %v468_v62  ;;  %v470_v5 = vmul.f32 0.0078125, %v466_v1  ;;  %v558_v26 = vsub.f32 %v2804_v8, %v557_v16 }
 0x25a   : > { %v2879_v59 = vand.u32 4294901760, %v531_v58 }
 0x25b   : > { %2378 = vst [vmem:[#allocation2 + $0x8] sm:$0xff] %v2358_v3   ;;  %v496_v9 = vand.u32 4294901760, %v470_v5  ;;  %v2810_v11 = vsub.f32 %v468_v62, %v2799_v4  ;;  %v559_v35 = vand.u32 4294901760, %v558_v26  ;;  %v2319_v62 = vld [vmem:[%s3101_s0 + $0x18] sm:$0xff] }
 0x25d   : > { %v550_v13 = vsub.f32 %v470_v5, %v496_v9  ;;  %497 = vmatpush.msra.mxu2 %v496_v9  ;;  %738 = vmatpush.msrb.mxu0 %v496_v9  ;;  %v563_v21 = vand.u32 4294901760, %v2810_v11 }
 0x25e   : > { %v458_v15 = vpop.xlane.xlu2 %457 }
 0x25f   : > { %v467_v18 = vmul.f32 0.0078125, %v458_v15  ;;  %499 = vmatpush.msra.mxu2 %v2793_v57  ;;  %604 = vmatpush.msrb.mxu1 %v550_v13  ;;  %v551_v19 = vand.u32 4294901760, %v550_v13  ;;  %v564_v30 = vsub.f32 %v2810_v11, %v563_v21 }
 0x260   : > { %740 = vmatpush.msrb.mxu0 %v2793_v57 }
 0x261   : > { %v502_v22 = vand.u32 4294901760, %v467_v18  ;;  %501 = vmatpush.msra.mxu2 %v2799_v4  ;;  %607 = vmatpush.msrb.mxu1 %v2804_v8  ;;  %v552_v23 = vsub.f32 %v550_v13, %v551_v19  ;;  %v565_v38 = vand.u32 4294901760, %v564_v30 }
 0x262   : > { %742 = vmatpush.msrb.mxu0 %v2799_v4  ;;  %v2322_v31 = vld [vmem:[#allocation2 + $0x8] sm:$0xff] }
 0x263   : > { %v568_v27 = vsub.f32 %v467_v18, %v502_v22  ;;  %503 = vmatpush.msra.mxu2 %v502_v22  ;;  %610 = vmatpush.msrb.mxu1 %v2810_v11  ;;  %v553_v28 = vand.u32 4294901760, %v552_v23 }
 0x264   : > { %744 = vmatpush.msrb.mxu0 %v502_v22  ;;  %509 = vmatmul.f32.vlgmr.msra.gmra.mxu2 %v2821_v20 }
 0x265   : > { %2381 = vmatpush.msrb.mxu2 %v550_v13  ;;  %554 = vmatpush.msra.mxu3 %v553_v28  ;;  %v569_v32 = vand.u32 4294901760, %v568_v27 }
 0x266   : > { %613 = vmatpush.msrb.mxu1 %v568_v27  ;;  %746 = vmatmul.f32.vlgmr.msrb.gmra.mxu0 %v2784_v52 }
 0x267   : > { %2382 = vmatpush.msrb.mxu2 %v2804_v8  ;;  %v570_v37 = vsub.f32 %v568_v27, %v569_v32  ;;  %560 = vmatpush.msra.mxu3 %v559_v35  ;;  %v2621_v8 = vmov 0  }
 0x268   : > { %894 = vmatpush.bf16.msra.mxu1 %v2322_v31  ;;  %2465 = vset.pattern.permute.xlu0 %v2621_v8 }
 0x269   : > { %616 = vmatmul.f32.vlgmr.msrb.gmra.mxu1 %v2790_v55  ;;  %2383 = vmatpush.msrb.mxu2 %v2810_v11  ;;  %v571_v40 = vand.u32 4294901760, %v570_v37 }
 0x26a   : > { %566 = vmatpush.msra.mxu3 %v565_v38  ;;  %2466 = vset.pattern.permute.xlu2 %v2621_v8 }
 0x26b   : > { %2384 = vmatpush.msrb.mxu2 %v568_v27  ;;  %2477 = vset.pattern.permute.xlu1 %v2621_v8 }
 0x26c   : > { %895 = vmatpush.bf16.msra.mxu1 %v2321_v39  ;;  %572 = vmatpush.msra.mxu3 %v571_v40 }
 0x26d   : > { %648 = vmatpush.msra.mxu2 %v496_v9  ;;  %574 = vmatmul.f32.vlgmr.msra.gmra.mxu3 %v2784_v52 }
 0x26e   : > { %517 = vmatmul.f32.gmra.mxu2 %v2849_v41  ;;  %695 = vmatpush.msrb.mxu3 %v551_v19 }
 0x26f   : > { %650 = vmatpush.msra.mxu2 %v2793_v57  ;;  %750 = vmatmul.f32.gmra.mxu0 %v2801_v6 }
 0x270   : > { %699 = vmatpush.msrb.mxu3 %v557_v16  ;;  %v2462_v48 = vpop.permute.xlu1 %2461 }
 0x271   : > { %652 = vmatpush.msra.mxu2 %v2799_v4  ;;  %v2464_v49 = vunpack.i.h.bf16 %v2462_v48  ;;  %v2463_v50 = vunpack.i.l.bf16 %v2462_v48  ;;  %621 = vmatmul.f32.gmra.mxu1 %v2815_v14 }
 0x272   : > { %703 = vmatpush.msrb.mxu3 %v563_v21 }
 0x273   : > { %654 = vmatpush.msra.mxu2 %v502_v22  ;;  %v828_v54 = vsel %vm824_vm6, %v2464_v49, 0.0  ;;  %v827_v56 = vsel %vm824_vm6, %v2463_v50, 0.0 }
 0x274   : > { %v2348_v57 = vpack.c.bf16 %v828_v54, %v827_v56  ;;  %707 = vmatpush.msrb.mxu3 %v569_v32 }
 0x275   : > { %578 = vmatmul.f32.gmra.mxu3 %v2801_v6 }
 0x276   : > { %525 = vmatmul.f32.gmra.mxu2 %v2868_v51  ;;  %2349 = vst [vmem:[#allocation2 + $0x10] sm:$0xff] %v2348_v57  }
 0x277   : > { %754 = vmatmul.f32.gmra.mxu0 %v2829_v25 }
 0x279   : > { %626 = vmatmul.f32.gmra.mxu1 %v2842_v34 }
 0x27d   : > { %582 = vmatmul.f32.gmra.mxu3 %v2829_v25  ;;  %v2320_v60 = vld [vmem:[#allocation2 + $0x10] sm:$0xff] }
 0x27e   : > { %533 = vmatmul.f32.gmra.mxu2 %v2879_v59  ;;  %896 = vmatpush.bf16.msra.mxu1 %v2320_v60 }
 0x27f   : > { %758 = vmatmul.f32.gmra.mxu0 %v2854_v44 }
 0x281   : > { %2266 = vmatmul.msk.bf16.vlgmr.msra.gmra.mxu1 %vm393_vm2, %v2318_v61 }
 0x285   : > { %586 = vmatmul.f32.gmra.mxu3 %v2854_v44 }
 0x286   : > { %631 = vmatmul.f32.vlgmr.msrb.gmra.mxu2 %v2861_v46 }
 0x28d   : > { %709 = vmatmul.f32.vlgmr.msrb.gmra.mxu3 %v2784_v52 }
 0x28e   : > { %658 = vmatmul.f32.vlgmr.msra.gmra.mxu2 %v2797_v2 }
 0x291   : > { %2267 = vmatmul.msk.bf16.gmra.mxu1 %vm393_vm2, %v2319_v62 }
 0x295   : > { %713 = vmatmul.f32.gmra.mxu3 %v2801_v6 }
 0x296   : > { %664 = vmatmul.f32.gmra.mxu2 %v2827_v24 }
 0x29d   : > { %717 = vmatmul.f32.gmra.mxu3 %v2829_v25 }
 0x29e   : > { %670 = vmatmul.f32.gmra.mxu2 %v2852_v43 }
 0x2a5   : > { %721 = vmatmul.f32.gmra.mxu3 %v2854_v44 }
 0x2a6   : > { %676 = vmatmul.f32.gmra.mxu2 %v2871_v53 }
 0x2e3   : > { %v747_v19 = vpop.f32.mrf.mxu0 }
 0x2e6   : > { %v617_v63 = vpop.f32.mrf.mxu1 }
 0x2e7   : > { %v510_v0 = vpop.f32.mrf.mxu2 }
 0x2ec   : > { %v751_v31 = vpop.f32.mrf.mxu0 }
 0x2ee   : > { %v622_v1 = vpop.f32.mrf.mxu1 }
 0x2f0   : > { %v575_v4 = vpop.f32.mrf.mxu3 }
 0x2f1   : > { %v518_v3 = vpop.f32.mrf.mxu2  ;;  %v576_v18 = vadd.f32 %v575_v4, %v510_v0 }
 0x2f3   : > { %v618_v21 = vadd.f32 %v617_v63, %v576_v18 }
 0x2f4   : > { %v755_v57 = vpop.f32.mrf.mxu0 }
 0x2f6   : > { %v627_v5 = vpop.f32.mrf.mxu1 }
 0x2f8   : > { %v579_v10 = vpop.f32.mrf.mxu3 }
 0x2f9   : > { %v526_v9 = vpop.f32.mrf.mxu2  ;;  %v580_v28 = vadd.f32 %v579_v10, %v518_v3 }
 0x2fb   : > { %v623_v32 = vadd.f32 %v622_v1, %v580_v28 }
 0x2fe   : > { %v898_v11 = vpop.f32.mrf.mxu1 }
 0x300   : > { %v583_v13 = vpop.f32.mrf.mxu3 }
 0x301   : > { %v534_v12 = vpop.f32.mrf.mxu2  ;;  %v584_v39 = vadd.f32 %v583_v13, %v526_v9  ;;  %v2323_v13 = vld [vmem:[%s3102_s1 + $0x8] sm:$0xff] }
 0x303   : > { %v628_v56 = vadd.f32 %v627_v5, %v584_v39 }
 0x306   : > { %v900_v15 = vpop.f32.mrf.mxu1 }
 0x308   : > { %v587_v16 = vpop.f32.mrf.mxu3 }
 0x309   : > { %v632_v17 = vpop.f32.mrf.mxu2  ;;  %v588_v1 = vadd.f32 %v587_v16, %v534_v12 }
 0x30e   : > { %v903_v22 = vpop.f32.mrf.mxu1 }
 0x30f   : > { %2486 = vtanh.f32 %v903_v22 }
 0x310   : > { %v710_v26 = vpop.f32.mrf.mxu3 }
 0x311   : > { %v659_v23 = vpop.f32.mrf.mxu2 }
 0x312   : > { %v660_v27 = vadd.f32 %v659_v23, %v618_v21  ;;  %v759_v23 = vpop.f32.mrf.mxu0 }
 0x314   : > { %v711_v29 = vadd.f32 %v710_v26, %v660_v27 }
 0x315   : > { %v2487_v35 = vpop.eup %2486 }
 0x316   : > { %v748_v30 = vadd.f32 %v747_v19, %v711_v29  ;;  %v905_v33 = vpop.f32.mrf.mxu1  ;;  %v912_v40 = vmul.f32 0.5, %v2487_v35 }
 0x317   : > { %2488 = vtanh.f32 %v905_v33 }
 0x318   : > { %790 = vperm.xlu0 %2465, %v748_v30   ;;  %v714_v37 = vpop.f32.mrf.mxu3  ;;  %2490 = vtanh.f32 %v898_v11  ;;  %v914_v50 = vadd.f32 0.5, %v912_v40  ;;  %v762_v9 = vmul.f32 %v748_v30, %v748_v30 }
 0x319   : > { %v665_v36 = vpop.f32.mrf.mxu2  ;;  %2492 = vtanh.f32 %v900_v15  ;;  %v633_v15 = vadd.f32 %v632_v17, %v588_v1 }
 0x31a   : > { %v666_v38 = vadd.f32 %v665_v36, %v623_v32 }
 0x31c   : > { %v715_v45 = vadd.f32 %v714_v37, %v666_v38 }
 0x31d   : > { %v2489_v49 = vpop.eup %2488 }
 0x31e   : > { %v752_v48 = vadd.f32 %v751_v31, %v715_v45  ;;  %v913_v54 = vmul.f32 0.5, %v2489_v49  ;;  %v2491_v61 = vpop.eup %2490 }
 0x31f   : > { %v2493_v0 = vpop.eup %2492  ;;  %v916_v3 = vmul.f32 %v2491_v61, %v914_v50 }
 0x320   : > { %795 = vperm.xlu2 %2466, %v752_v48   ;;  %v718_v60 = vpop.f32.mrf.mxu3  ;;  %v915_v62 = vadd.f32 0.5, %v913_v54  ;;  %v763_v16 = vmul.f32 %v752_v48, %v752_v48 }
 0x321   : > { %v671_v58 = vpop.f32.mrf.mxu2 }
 0x322   : > { %v672_v63 = vadd.f32 %v671_v58, %v628_v56  ;;  %v917_v4 = vmul.f32 %v2493_v0, %v915_v62 }
 0x324   : > { %v719_v8 = vadd.f32 %v718_v60, %v672_v63  ;;  %v921_v10 = vpack.c.bf16 %v917_v4, %v916_v3 }
 0x326   : > { %v756_v11 = vadd.f32 %v755_v57, %v719_v8  ;;  %937 = vmatpush.bf16.msrb.mxu2 %v921_v10 }
 0x328   : > { %v764_v5 = vsub.f32 %v756_v11, %v762_v9  ;;  %v722_v19 = vpop.f32.mrf.mxu3 }
 0x329   : > { %v677_v18 = vpop.f32.mrf.mxu2  ;;  %2274 = vmatmul.msk.bf16.vlgmr.msrb.gmra.mxu2 %vm437_vm3, %v2323_v13 }
 0x32a   : > { %v766_v21 = vadd.f32 1e-05, %v764_v5  ;;  %v678_v22 = vadd.f32 %v677_v18, %v633_v15 }
 0x32c   : > { %2494 = vrsqrt.f32 %v766_v21  ;;  %v723_v12 = vadd.f32 %v722_v19, %v678_v22  ;;  %vm774_vm8 = vweird.f32 %v766_v21 }
 0x32e   : > { %v760_v26 = vadd.f32 %v759_v23, %v723_v12 }
 0x330   : > { %v765_v27 = vsub.f32 %v760_v26, %v763_v16 }
 0x332   : > { %v2495_v28 = vpop.eup %2494  ;;  %v767_v29 = vadd.f32 1e-05, %v765_v27 }
 0x333   : > { %v769_v30 = vmul.f32 %v2495_v28, %v766_v21  ;;  %vm775_vm7 = vweird.f32 %v2495_v28 }
 0x334   : > { %2496 = vrsqrt.f32 %v767_v29  ;;  %vm776_vm9 = vmor %vm774_vm8, %vm775_vm7  ;;  %vm784_vm11 = vweird.f32 %v767_v29 }
 0x335   : > { %v770_v31 = vmul.f32 %v2495_v28, %v769_v30 }
 0x337   : > { %v771_v17 = vmul.f32 0.5, %v770_v31 }
 0x339   : > { %v772_v32 = vsub.f32 1.5, %v771_v17 }
 0x33a   : > { %v2497_v33 = vpop.eup %2496 }
 0x33b   : > { %v779_v35 = vmul.f32 %v2497_v33, %v767_v29  ;;  %v773_v36 = vmul.f32 %v2495_v28, %v772_v32  ;;  %vm785_vm10 = vweird.f32 %v2497_v33 }
 0x33c   : > { %vm786_vm12 = vmor %vm784_vm11, %vm785_vm10 }
 0x33d   : > { %v777_v37 = vsel %vm776_vm9, %v2495_v28, %v773_v36  ;;  %v780_v38 = vmul.f32 %v2497_v33, %v779_v35 }
 0x33e   : > { %802 = vperm.xlu2 %2466, %v777_v37  }
 0x33f   : > { %v781_v39 = vmul.f32 0.5, %v780_v38 }
 0x341   : > { %v782_v40 = vsub.f32 1.5, %v781_v39 }
 0x343   : > { %v783_v45 = vmul.f32 %v2497_v33, %v782_v40 }
 0x345   : > { %v787_v48 = vsel %vm786_vm12, %v2497_v33, %v783_v45 }
 0x346   : > { %807 = vperm.xlu0 %2465, %v787_v48  }
 0x37a   : > { %v796_v49 = vpop.permute.xlu2 %795 }
 0x37b   : > { %v799_v63 = vsub.f32 %v2774_v47, %v796_v49 }
 0x38a   : > { %v791_v50 = vpop.permute.xlu0 %790 }
 0x38b   : > { %v798_v56 = vsub.f32 %v2769_v42, %v791_v50 }
 0x398   : > { %v803_v54 = vpop.permute.xlu2 %802 }
 0x399   : > { %v2907_v57 = vmul.f32 %v803_v54, %v798_v56 }
 0x3ac   : > { %v939_v58 = vpop.f32.mrf.mxu2 }
 0x3ad   : > { %v2910_v60 = vadd.f32 %v939_v58, %v2907_v57 }
 0x3af   : > { %v950_v61 = vmul.f32 %v2910_v60, %v2910_v60 }
 0x3b1   : > { %952 = vadd.xlane.f32.xlu0 %v950_v61 }
 0x3b4   : > { %v941_v62 = vpop.f32.mrf.mxu2 }
 0x3b5   : > { %v2368_v0 = vpack.c.bf16 %v941_v62, %v939_v58  ;;  %v2472_v8 = vpack.i.bf16 %v941_v62, %v939_v58 }
 0x3b7   : > { %2379 = vst [vmem:[#allocation2] sm:$0xff] %v2368_v0  }
 0x3b8   : > { %v808_v1 = vpop.permute.xlu0 %807 }
 0x3b9   : > { %v2915_v3 = vmul.f32 %v808_v1, %v799_v63 }
 0x3bb   : > { %v2918_v42 = vadd.f32 %v941_v62, %v2915_v3 }
 0x3bd   : > { %948 = vadd.xlane.f32.xlu2 %v2918_v42  ;;  %v951_v4 = vmul.f32 %v2918_v42, %v2918_v42 }
 0x3be   : > { %v2327_v1 = vld [vmem:[#allocation2] sm:$0xff] }
 0x3bf   : > { %954 = vadd.xlane.f32.xlu1 %v951_v4 }
 0x3c5   : > { %2473 = vrot.lane.b32.xlu0 %v2472_v8, %s2622_s19  ;;  %s2124_s19 = sshll.u32 %s2121_s17, 4  ;;  %s2125_s19 = int_to_ptr.hbm [resolvable:$true] %s2124_s19 }
 0x3c7   : > { %946 = vadd.xlane.f32.xlu1 %v2910_v60 }
 0x3d5   : > { %2468 = vrot.lane.b32.xlu2 %v2472_v8, %s2623_s20  ;;  %v2324_v8 = vld [vmem:[%s3101_s0 + $0x20] sm:$0xff]  ;;  %s2562_s20 = sshra.s32 %s2125_s19, 4  ;;  %s2563_s20 = int_to_ptr.hbm [resolvable:$true] %s2562_s20 }
 0x3d6   : > { %s2564_s28 = scalar_lea.hbm %s2563_s20, 16  ;;  %p2569_p5 = scmp.lt.s32.totalorder %s2563_s20, %s3107_s6 }
 0x3d7   : > { %p2565_p2 = scmp.ne.s32.totalorder %s2563_s20, %s2564_s28  ;;  %p2570_p7 = scmp.lt.s32.totalorder %s2568_s9, %s2564_s28 }
 0x3d9   : > { %p2566_p3 = pnand %p2565_p2, %p2705_p6  ;;  %p2571_p8 = por %p2570_p7, %p2569_p5 }
 0x3db   : > { %p2567_p4 = pneg %p2566_p3 }
 0x3dd   : > { %p2572_p9 = pnand %p2571_p8, %p2567_p4 }
 0x424   : > { %v953_v47 = vpop.xlane.xlu0 %952 }
 0x425   : > { %v958_v9 = vmul.f32 0.0078125, %v953_v47  ;;  %v2325_v47 = vld [vmem:[%s3101_s0 + $0x28] sm:$0xff] }
 0x427   : > { %v2924_v10 = vand.u32 4294901760, %v958_v9 }
 0x429   : > { %v1032_v15 = vsub.f32 %v958_v9, %v2924_v10 }
 0x42b   : > { %v1033_v23 = vand.u32 4294901760, %v1032_v15 }
 0x42d   : > { %v1034_v32 = vsub.f32 %v1032_v15, %v1033_v23 }
 0x42f   : > { %v1035_v58 = vand.u32 4294901760, %v1034_v32 }
 0x430   : > { %v949_v11 = vpop.xlane.xlu2 %948 }
 0x431   : > { %v957_v13 = vmul.f32 0.0078125, %v949_v11 }
 0x432   : > { %v955_v5 = vpop.xlane.xlu1 %954 }
 0x433   : > { %v2927_v18 = vand.u32 4294901760, %v957_v13  ;;  %v959_v19 = vmul.f32 0.0078125, %v955_v5 }
 0x435   : > { %v972_v21 = vand.u32 4294901760, %v959_v19  ;;  %v1038_v22 = vsub.f32 %v957_v13, %v2927_v18 }
 0x437   : > { %v1026_v12 = vsub.f32 %v959_v19, %v972_v21  ;;  %973 = vmatpush.msra.mxu3 %v972_v21  ;;  %1124 = vmatpush.msra.mxu2 %v972_v21  ;;  %v2474_v29 = vpop.permute.xlu0 %2473  ;;  %v1039_v33 = vand.u32 4294901760, %v1038_v22 }
 0x438   : > { %v2469_v16 = vpop.permute.xlu2 %2468  ;;  %v2476_v31 = vunpack.i.h.bf16 %v2474_v29  ;;  %v2475_v17 = vunpack.i.l.bf16 %v2474_v29 }
 0x439   : > { %v1027_v26 = vand.u32 4294901760, %v1026_v12  ;;  %v2471_v27 = vunpack.i.h.bf16 %v2469_v16  ;;  %v2470_v28 = vunpack.i.l.bf16 %v2469_v16  ;;  %975 = vmatpush.msra.mxu3 %v2924_v10  ;;  %1080 = vmatpush.msrb.mxu1 %v1026_v12  ;;  %v1040_v54 = vsub.f32 %v1038_v22, %v1039_v33 }
 0x43a   : > { %1126 = vmatpush.msra.mxu2 %v2924_v10  ;;  %v947_v30 = vpop.xlane.xlu1 %946  ;;  %v1304_v40 = vsel %vm1300_vm14, %v2476_v31, 0.0  ;;  %v1303_v45 = vsel %vm1300_vm14, %v2475_v17, 0.0 }
 0x43b   : > { %v1028_v35 = vsub.f32 %v1026_v12, %v1027_v26  ;;  %v1315_v36 = vsel %vm1311_vm13, %v2471_v27, 0.0  ;;  %v1314_v37 = vsel %vm1311_vm13, %v2470_v28, 0.0  ;;  %v956_v38 = vmul.f32 0.0078125, %v947_v30  ;;  %977 = vmatpush.msra.mxu3 %v2927_v18  ;;  %1083 = vmatpush.msrb.mxu1 %v1032_v15 }
 0x43c   : > { %v2373_v39 = vpack.c.bf16 %v1315_v36, %v1314_v37  ;;  %1128 = vmatpush.msra.mxu2 %v2927_v18  ;;  %v2363_v49 = vpack.c.bf16 %v1304_v40, %v1303_v45  ;;  %v1041_v7 = vand.u32 4294901760, %v1040_v54 }
 0x43d   : > { %v978_v48 = vand.u32 4294901760, %v956_v38  ;;  %1086 = vmatpush.msrb.mxu1 %v1038_v22  ;;  %v1029_v50 = vand.u32 4294901760, %v1028_v35 }
 0x43e   : > { %2380 = vst [vmem:[#allocation2 + $0x8] sm:$0xff] %v2373_v39  }
 0x43f   : > { %v1044_v56 = vsub.f32 %v956_v38, %v978_v48  ;;  %2364 = vst [vmem:[#allocation2 + $0x10] sm:$0xff] %v2363_v49   ;;  %979 = vmatpush.msra.mxu3 %v978_v48  ;;  %1030 = vmatpush.msra.mxu0 %v1029_v50 }
 0x440   : > { %1130 = vmatpush.msra.mxu2 %v978_v48  ;;  %985 = vmatmul.f32.vlgmr.msra.gmra.mxu3 %v2821_v20 }
 0x441   : > { %1171 = vmatpush.msrb.mxu3 %v1027_v26  ;;  %1036 = vmatpush.msra.mxu0 %v1035_v58  ;;  %v1045_v61 = vand.u32 4294901760, %v1044_v56 }
 0x442   : > { %1089 = vmatpush.msrb.mxu1 %v1044_v56  ;;  %1134 = vmatmul.f32.vlgmr.msra.gmra.mxu2 %v2797_v2 }
 0x443   : > { %1092 = vmatmul.f32.vlgmr.msrb.gmra.mxu1 %v2790_v55  ;;  %1175 = vmatpush.msrb.mxu3 %v1033_v23  ;;  %v1046_v62 = vsub.f32 %v1044_v56, %v1045_v61 }
 0x444   : > { %1042 = vmatpush.msra.mxu0 %v1041_v7 }
 0x445   : > { %1179 = vmatpush.msrb.mxu3 %v1039_v33  ;;  %v1047_v63 = vand.u32 4294901760, %v1046_v62  ;;  %v2328_v0 = vld [vmem:[#allocation2 + $0x8] sm:$0xff] }
 0x446   : > { %1370 = vmatpush.bf16.msra.mxu1 %v2328_v0  ;;  %v2326_v4 = vld [vmem:[#allocation2 + $0x10] sm:$0xff] }
 0x447   : > { %1183 = vmatpush.msrb.mxu3 %v1045_v61  ;;  %1048 = vmatpush.msra.mxu0 %v1047_v63 }
 0x448   : > { %993 = vmatmul.f32.gmra.mxu3 %v2849_v41  ;;  %1050 = vmatmul.f32.vlgmr.msra.gmra.mxu0 %v2784_v52 }
 0x449   : > { %1214 = vmatpush.msrb.mxu0 %v972_v21 }
 0x44a   : > { %1140 = vmatmul.f32.gmra.mxu2 %v2827_v24  ;;  %1371 = vmatpush.bf16.msra.mxu1 %v2327_v1 }
 0x44b   : > { %1097 = vmatmul.f32.gmra.mxu1 %v2815_v14  ;;  %1216 = vmatpush.msrb.mxu0 %v2924_v10 }
 0x44d   : > { %1218 = vmatpush.msrb.mxu0 %v2927_v18 }
 0x44e   : > { %1372 = vmatpush.bf16.msra.mxu1 %v2326_v4 }
 0x44f   : > { %1220 = vmatpush.msrb.mxu0 %v978_v48 }
 0x450   : > { %1001 = vmatmul.f32.gmra.mxu3 %v2868_v51  ;;  %1054 = vmatmul.f32.gmra.mxu0 %v2801_v6 }
 0x452   : > { %1146 = vmatmul.f32.gmra.mxu2 %v2852_v43 }
 0x453   : > { %1102 = vmatmul.f32.gmra.mxu1 %v2842_v34 }
 0x458   : > { %1009 = vmatmul.f32.gmra.mxu3 %v2879_v59  ;;  %1058 = vmatmul.f32.gmra.mxu0 %v2829_v25 }
 0x45a   : > { %1152 = vmatmul.f32.gmra.mxu2 %v2871_v53 }
 0x45b   : > { %1107 = vmatmul.f32.gmra.mxu1 %v2861_v46 }
 0x460   : > { %1062 = vmatmul.f32.gmra.mxu0 %v2854_v44  ;;  %1185 = vmatmul.f32.vlgmr.msrb.gmra.mxu3 %v2784_v52 }
 0x463   : > { %2299 = vmatmul.msk.bf16.vlgmr.msra.gmra.mxu1 %vm393_vm2, %v2324_v8 }
 0x468   : > { %1189 = vmatmul.f32.gmra.mxu3 %v2801_v6  ;;  %1222 = vmatmul.f32.vlgmr.msrb.gmra.mxu0 %v2784_v52 }
 0x470   : > { %1193 = vmatmul.f32.gmra.mxu3 %v2829_v25  ;;  %1226 = vmatmul.f32.gmra.mxu0 %v2801_v6 }
 0x473   : > { %2300 = vmatmul.msk.bf16.gmra.mxu1 %vm393_vm2, %v2325_v47 }
 0x478   : > { %1197 = vmatmul.f32.gmra.mxu3 %v2854_v44  ;;  %1230 = vmatmul.f32.gmra.mxu0 %v2829_v25 }
 0x480   : > { %1234 = vmatmul.f32.gmra.mxu0 %v2854_v44 }
 0x4c0   : > { %v1093_v9 = vpop.f32.mrf.mxu1 }
 0x4c3   : > { %v986_v10 = vpop.f32.mrf.mxu3 }
 0x4c5   : > { %v1051_v11 = vpop.f32.mrf.mxu0  ;;  %v1135_v23 = vpop.f32.mrf.mxu2 }
 0x4c6   : > { %v1052_v12 = vadd.f32 %v1051_v11, %v986_v10 }
 0x4c8   : > { %v1098_v13 = vpop.f32.mrf.mxu1  ;;  %v1094_v27 = vadd.f32 %v1093_v9, %v1052_v12 }
 0x4ca   : > { %v1136_v29 = vadd.f32 %v1135_v23, %v1094_v27 }
 0x4cb   : > { %v994_v15 = vpop.f32.mrf.mxu3 }
 0x4cd   : > { %v1055_v5 = vpop.f32.mrf.mxu0  ;;  %v1141_v31 = vpop.f32.mrf.mxu2 }
 0x4ce   : > { %v1056_v30 = vadd.f32 %v1055_v5, %v994_v15 }
 0x4d0   : > { %v1103_v18 = vpop.f32.mrf.mxu1  ;;  %v1099_v35 = vadd.f32 %v1098_v13, %v1056_v30 }
 0x4d2   : > { %v1142_v38 = vadd.f32 %v1141_v31, %v1099_v35 }
 0x4d3   : > { %v1002_v19 = vpop.f32.mrf.mxu3 }
 0x4d5   : > { %v1059_v21 = vpop.f32.mrf.mxu0  ;;  %v1147_v48 = vpop.f32.mrf.mxu2 }
 0x4d6   : > { %v1060_v39 = vadd.f32 %v1059_v21, %v1002_v19 }
 0x4d8   : > { %v1108_v22 = vpop.f32.mrf.mxu1  ;;  %v1104_v50 = vadd.f32 %v1103_v18, %v1060_v39 }
 0x4da   : > { %v1148_v58 = vadd.f32 %v1147_v48, %v1104_v50 }
 0x4db   : > { %v1010_v16 = vpop.f32.mrf.mxu3 }
 0x4dd   : > { %v1063_v26 = vpop.f32.mrf.mxu0  ;;  %v1153_v8 = vpop.f32.mrf.mxu2 }
 0x4de   : > { %v1064_v61 = vadd.f32 %v1063_v26, %v1010_v16 }
 0x4e0   : > { %v1374_v28 = vpop.f32.mrf.mxu1  ;;  %v1109_v0 = vadd.f32 %v1108_v22, %v1064_v61 }
 0x4e2   : > { %v1154_v11 = vadd.f32 %v1153_v8, %v1109_v0 }
 0x4e3   : > { %v1186_v17 = vpop.f32.mrf.mxu3 }
 0x4e4   : > { %v1187_v32 = vadd.f32 %v1186_v17, %v1136_v29 }
 0x4e5   : > { %v1223_v33 = vpop.f32.mrf.mxu0 }
 0x4e6   : > { %v1224_v36 = vadd.f32 %v1223_v33, %v1187_v32 }
 0x4e8   : > { %v1376_v37 = vpop.f32.mrf.mxu1  ;;  %1266 = vperm.xlu0 %2465, %v1224_v36   ;;  %v1238_v1 = vmul.f32 %v1224_v36, %v1224_v36 }
 0x4eb   : > { %v1190_v40 = vpop.f32.mrf.mxu3 }
 0x4ec   : > { %v1191_v45 = vadd.f32 %v1190_v40, %v1142_v38 }
 0x4ed   : > { %v1227_v49 = vpop.f32.mrf.mxu0 }
 0x4ee   : > { %v1228_v54 = vadd.f32 %v1227_v49, %v1191_v45 }
 0x4f0   : > { %v1379_v56 = vpop.f32.mrf.mxu1  ;;  %1271 = vperm.xlu1 %2477, %v1228_v54   ;;  %v1239_v21 = vmul.f32 %v1228_v54, %v1228_v54 }
 0x4f1   : > { %2498 = vtanh.f32 %v1379_v56 }
 0x4f3   : > { %v1194_v7 = vpop.f32.mrf.mxu3 }
 0x4f4   : > { %v1195_v62 = vadd.f32 %v1194_v7, %v1148_v58 }
 0x4f5   : > { %v1231_v63 = vpop.f32.mrf.mxu0 }
 0x4f6   : > { %v1232_v4 = vadd.f32 %v1231_v63, %v1195_v62 }
 0x4f7   : > { %v2499_v10 = vpop.eup %2498 }
 0x4f8   : > { %v1240_v47 = vsub.f32 %v1232_v4, %v1238_v1  ;;  %v1381_v9 = vpop.f32.mrf.mxu1  ;;  %v1388_v5 = vmul.f32 0.5, %v2499_v10 }
 0x4f9   : > { %2500 = vtanh.f32 %v1381_v9 }
 0x4fa   : > { %v1242_v13 = vadd.f32 1e-05, %v1240_v47  ;;  %2502 = vtanh.f32 %v1374_v28  ;;  %v1390_v22 = vadd.f32 0.5, %v1388_v5 }
 0x4fb   : > { %v1198_v15 = vpop.f32.mrf.mxu3 }
 0x4fc   : > { %2504 = vrsqrt.f32 %v1242_v13  ;;  %v1199_v18 = vadd.f32 %v1198_v15, %v1154_v11  ;;  %vm1250_vm0 = vweird.f32 %v1242_v13 }
 0x4fd   : > { %2506 = vtanh.f32 %v1376_v37  ;;  %v1235_v19 = vpop.f32.mrf.mxu0  ;;  %v2329_v37 = vld [vmem:[%s3102_s1 + $0x10] sm:$0xff] }
 0x4fe   : > { %v1236_v23 = vadd.f32 %v1235_v19, %v1199_v18 }
 0x4ff   : > { %v2501_v12 = vpop.eup %2500 }
 0x500   : > { %v1389_v16 = vmul.f32 0.5, %v2501_v12  ;;  %v1241_v26 = vsub.f32 %v1236_v23, %v1239_v21  ;;  %v2503_v27 = vpop.eup %2502 }
 0x501   : > { %v1392_v33 = vmul.f32 %v2503_v27, %v1390_v22 }
 0x502   : > { %v2505_v29 = vpop.eup %2504  ;;  %v1391_v30 = vadd.f32 0.5, %v1389_v16  ;;  %v1243_v31 = vadd.f32 1e-05, %v1241_v26 }
 0x503   : > { %v2507_v17 = vpop.eup %2506  ;;  %v1245_v32 = vmul.f32 %v2505_v29, %v1242_v13  ;;  %vm1251_vm15 = vweird.f32 %v2505_v29 }
 0x504   : > { %v1393_v28 = vmul.f32 %v2507_v17, %v1391_v30  ;;  %2508 = vrsqrt.f32 %v1243_v31  ;;  %vm1252_vm1 = vmor %vm1250_vm0, %vm1251_vm15  ;;  %vm1260_vm4 = vweird.f32 %v1243_v31 }
 0x505   : > { %v1246_v35 = vmul.f32 %v2505_v29, %v1245_v32 }
 0x506   : > { %v1397_v36 = vpack.c.bf16 %v1393_v28, %v1392_v33 }
 0x507   : > { %v1247_v38 = vmul.f32 0.5, %v1246_v35 }
 0x508   : > { %1413 = vmatpush.bf16.msrb.mxu2 %v1397_v36 }
 0x509   : > { %v1248_v39 = vsub.f32 1.5, %v1247_v38 }
 0x50a   : > { %v2509_v40 = vpop.eup %2508 }
 0x50b   : > { %v1255_v45 = vmul.f32 %v2509_v40, %v1243_v31  ;;  %2307 = vmatmul.msk.bf16.vlgmr.msrb.gmra.mxu2 %vm437_vm3, %v2329_v37  ;;  %v1249_v48 = vmul.f32 %v2505_v29, %v1248_v39  ;;  %vm1261_vm2 = vweird.f32 %v2509_v40 }
 0x50c   : > { %vm1262_vm5 = vmor %vm1260_vm4, %vm1261_vm2 }
 0x50d   : > { %v1253_v49 = vsel %vm1252_vm1, %v2505_v29, %v1249_v48  ;;  %v1256_v50 = vmul.f32 %v2509_v40, %v1255_v45 }
 0x50e   : > { %1278 = vperm.xlu1 %2477, %v1253_v49  }
 0x50f   : > { %v1257_v54 = vmul.f32 0.5, %v1256_v50 }
 0x511   : > { %v1258_v56 = vsub.f32 1.5, %v1257_v54 }
 0x513   : > { %v1259_v58 = vmul.f32 %v2509_v40, %v1258_v56 }
 0x515   : > { %v1263_v61 = vsel %vm1262_vm5, %v2509_v40, %v1259_v58 }
 0x516   : > { %1283 = vperm.xlu2 %2466, %v1263_v61  }
 0x55a   : > { %v1267_v62 = vpop.permute.xlu0 %1266 }
 0x55b   : > { %v1274_v0 = vsub.f32 %v2910_v60, %v1267_v62 }
 0x562   : > { %v1272_v7 = vpop.permute.xlu1 %1271 }
 0x563   : > { %v1275_v10 = vsub.f32 %v2918_v42, %v1272_v7 }
 0x570   : > { %v1284_v9 = vpop.permute.xlu2 %1283 }
 0x571   : > { %v2991_v11 = vmul.f32 %v1284_v9, %v1275_v10 }
 0x580   : > { %v1279_v63 = vpop.permute.xlu1 %1278 }
 0x581   : > { %v2983_v1 = vmul.f32 %v1279_v63, %v1274_v0 }
 0x58e   : > { %v1415_v4 = vpop.f32.mrf.mxu2 }
 0x58f   : > { %v2986_v8 = vadd.f32 %v1415_v4, %v2983_v1 }
 0x591   : > { %v1426_v47 = vmul.f32 %v2986_v8, %v2986_v8 }
 0x593   : > { %1428 = vadd.xlane.f32.xlu2 %v1426_v47 }
 0x596   : > { %v1417_v13 = vpop.f32.mrf.mxu2 }
 0x597   : > { %v2994_v15 = vadd.f32 %v1417_v13, %v2991_v11 }
 0x599   : > { %1424 = vadd.xlane.f32.xlu1 %v2994_v15  ;;  %v1427_v60 = vmul.f32 %v2994_v15, %v2994_v15 }
 0x59b   : > { %1430 = vadd.xlane.f32.xlu0 %v1427_v60 }
 0x5a3   : > { %1422 = vadd.xlane.f32.xlu0 %v2986_v8 }
 0x606   : > { %v1429_v5 = vpop.xlane.xlu2 %1428 }
 0x607   : > { %v1434_v18 = vmul.f32 0.0078125, %v1429_v5 }
 0x609   : > { %v1450_v19 = vand.u32 4294901760, %v1434_v18 }
 0x60b   : > { %v1508_v12 = vsub.f32 %v1434_v18, %v1450_v19 }
 0x60c   : > { %v1425_v21 = vpop.xlane.xlu1 %1424 }
 0x60d   : > { %v1433_v42 = vmul.f32 0.0078125, %v1425_v21  ;;  %v1509_v30 = vand.u32 4294901760, %v1508_v12 }
 0x60e   : > { %v1431_v23 = vpop.xlane.xlu0 %1430 }
 0x60f   : > { %v1452_v22 = vand.u32 4294901760, %v1433_v42  ;;  %v1435_v16 = vmul.f32 0.0078125, %v1431_v23  ;;  %v1510_v35 = vsub.f32 %v1508_v12, %v1509_v30 }
 0x611   : > { %v1514_v26 = vsub.f32 %v1433_v42, %v1452_v22  ;;  %v1448_v27 = vand.u32 4294901760, %v1435_v16  ;;  %v1511_v40 = vand.u32 4294901760, %v1510_v35 }
 0x613   : > { %v1502_v29 = vsub.f32 %v1435_v16, %v1448_v27  ;;  %1449 = vmatpush.msra.mxu2 %v1448_v27  ;;  %1600 = vmatpush.msrb.mxu1 %v1448_v27  ;;  %v1515_v17 = vand.u32 4294901760, %v1514_v26 }
 0x615   : > { %v1503_v31 = vand.u32 4294901760, %v1502_v29  ;;  %1451 = vmatpush.msra.mxu2 %v1450_v19  ;;  %1556 = vmatpush.msra.mxu0 %v1502_v29  ;;  %v1516_v38 = vsub.f32 %v1514_v26, %v1515_v17 }
 0x616   : > { %1602 = vmatpush.msrb.mxu1 %v1450_v19  ;;  %v1423_v32 = vpop.xlane.xlu0 %1422 }
 0x617   : > { %v1504_v33 = vsub.f32 %v1502_v29, %v1503_v31  ;;  %v1432_v28 = vmul.f32 0.0078125, %v1423_v32  ;;  %1453 = vmatpush.msra.mxu2 %v1452_v22  ;;  %1559 = vmatpush.msra.mxu0 %v1508_v12  ;;  %v1517_v45 = vand.u32 4294901760, %v1516_v38 }
 0x618   : > { %1604 = vmatpush.msrb.mxu1 %v1452_v22 }
 0x619   : > { %v1454_v36 = vand.u32 4294901760, %v1432_v28  ;;  %1562 = vmatpush.msra.mxu0 %v1514_v26  ;;  %v1505_v37 = vand.u32 4294901760, %v1504_v33 }
 0x61b   : > { %v1520_v39 = vsub.f32 %v1432_v28, %v1454_v36  ;;  %1455 = vmatpush.msra.mxu2 %v1454_v36  ;;  %1506 = vmatpush.msra.mxu3 %v1505_v37 }
 0x61c   : > { %1606 = vmatpush.msrb.mxu1 %v1454_v36  ;;  %1461 = vmatmul.f32.vlgmr.msra.gmra.mxu2 %v2821_v20 }
 0x61d   : > { %1647 = vmatpush.msrb.mxu2 %v1503_v31  ;;  %1512 = vmatpush.msra.mxu3 %v1511_v40  ;;  %v1521_v48 = vand.u32 4294901760, %v1520_v39 }
 0x61e   : > { %1565 = vmatpush.msra.mxu0 %v1520_v39  ;;  %1610 = vmatmul.f32.vlgmr.msrb.gmra.mxu1 %v2797_v2 }
 0x61f   : > { %1651 = vmatpush.msrb.mxu2 %v1509_v30  ;;  %1518 = vmatpush.msra.mxu3 %v1517_v45  ;;  %v1522_v49 = vsub.f32 %v1520_v39, %v1521_v48 }
 0x620   : > { %1568 = vmatmul.f32.vlgmr.msra.gmra.mxu0 %v2790_v55 }
 0x621   : > { %1655 = vmatpush.msrb.mxu2 %v1515_v17  ;;  %v1523_v50 = vand.u32 4294901760, %v1522_v49 }
 0x623   : > { %1659 = vmatpush.msrb.mxu2 %v1521_v48  ;;  %1524 = vmatpush.msra.mxu3 %v1523_v50 }
 0x624   : > { %1469 = vmatmul.f32.gmra.mxu2 %v2849_v41  ;;  %1526 = vmatmul.f32.vlgmr.msra.gmra.mxu3 %v2784_v52 }
 0x625   : > { %1690 = vmatpush.msrb.mxu3 %v1448_v27 }
 0x626   : > { %1616 = vmatmul.f32.gmra.mxu1 %v2827_v24 }
 0x627   : > { %1692 = vmatpush.msrb.mxu3 %v1450_v19 }
 0x628   : > { %1573 = vmatmul.f32.gmra.mxu0 %v2815_v14 }
 0x629   : > { %1694 = vmatpush.msrb.mxu3 %v1452_v22 }
 0x62b   : > { %1696 = vmatpush.msrb.mxu3 %v1454_v36 }
 0x62c   : > { %1477 = vmatmul.f32.gmra.mxu2 %v2868_v51  ;;  %1530 = vmatmul.f32.gmra.mxu3 %v2801_v6 }
 0x62e   : > { %1622 = vmatmul.f32.gmra.mxu1 %v2852_v43 }
 0x630   : > { %1578 = vmatmul.f32.gmra.mxu0 %v2842_v34 }
 0x634   : > { %1485 = vmatmul.f32.gmra.mxu2 %v2879_v59  ;;  %1534 = vmatmul.f32.gmra.mxu3 %v2829_v25 }
 0x636   : > { %1628 = vmatmul.f32.gmra.mxu1 %v2871_v53 }
 0x638   : > { %1583 = vmatmul.f32.gmra.mxu0 %v2861_v46 }
 0x63c   : > { %1538 = vmatmul.f32.gmra.mxu3 %v2854_v44  ;;  %1661 = vmatmul.f32.vlgmr.msrb.gmra.mxu2 %v2784_v52 }
 0x644   : > { %1665 = vmatmul.f32.gmra.mxu2 %v2801_v6  ;;  %1698 = vmatmul.f32.vlgmr.msrb.gmra.mxu3 %v2784_v52 }
 0x64c   : > { %1669 = vmatmul.f32.gmra.mxu2 %v2829_v25  ;;  %1702 = vmatmul.f32.gmra.mxu3 %v2801_v6 }
 0x654   : > { %1673 = vmatmul.f32.gmra.mxu2 %v2854_v44  ;;  %1706 = vmatmul.f32.gmra.mxu3 %v2829_v25 }
 0x65c   : > { %1710 = vmatmul.f32.gmra.mxu3 %v2854_v44 }
 0x69b   : > { %v1611_v4 = vpop.f32.mrf.mxu1 }
 0x69d   : > { %v1569_v62 = vpop.f32.mrf.mxu0 }
 0x69f   : > { %v1462_v54 = vpop.f32.mrf.mxu2 }
 0x6a3   : > { %v1617_v19 = vpop.f32.mrf.mxu1 }
 0x6a5   : > { %v1574_v60 = vpop.f32.mrf.mxu0 }
 0x6a7   : > { %v1470_v56 = vpop.f32.mrf.mxu2  ;;  %v1527_v58 = vpop.f32.mrf.mxu3 }
 0x6a8   : > { %v1528_v47 = vadd.f32 %v1527_v58, %v1462_v54 }
 0x6aa   : > { %v1570_v13 = vadd.f32 %v1569_v62, %v1528_v47 }
 0x6ab   : > { %v1623_v30 = vpop.f32.mrf.mxu1 }
 0x6ac   : > { %v1612_v18 = vadd.f32 %v1611_v4, %v1570_v13 }
 0x6ad   : > { %v1579_v16 = vpop.f32.mrf.mxu0 }
 0x6af   : > { %v1478_v61 = vpop.f32.mrf.mxu2  ;;  %v1531_v7 = vpop.f32.mrf.mxu3 }
 0x6b0   : > { %v1532_v5 = vadd.f32 %v1531_v7, %v1470_v56 }
 0x6b2   : > { %v1575_v12 = vadd.f32 %v1574_v60, %v1532_v5 }
 0x6b3   : > { %v1629_v48 = vpop.f32.mrf.mxu1 }
 0x6b4   : > { %v1618_v27 = vadd.f32 %v1617_v19, %v1575_v12 }
 0x6b5   : > { %v1584_v36 = vpop.f32.mrf.mxu0 }
 0x6b7   : > { %v1486_v63 = vpop.f32.mrf.mxu2  ;;  %v1535_v0 = vpop.f32.mrf.mxu3 }
 0x6b8   : > { %v1536_v26 = vadd.f32 %v1535_v0, %v1478_v61 }
 0x6ba   : > { %v1580_v17 = vadd.f32 %v1579_v16, %v1536_v26 }
 0x6bc   : > { %v1624_v35 = vadd.f32 %v1623_v30, %v1580_v17  ;;  %v1288_v30 = vadd.f32 %v2983_v1, %v2907_v57 }
 0x6bf   : > { %v1539_v9 = vpop.f32.mrf.mxu3  ;;  %v1662_v10 = vpop.f32.mrf.mxu2 }
 0x6c0   : > { %v1663_v21 = vadd.f32 %v1662_v10, %v1612_v18  ;;  %v1540_v28 = vadd.f32 %v1539_v9, %v1486_v63 }
 0x6c2   : > { %v1585_v39 = vadd.f32 %v1584_v36, %v1540_v28 }
 0x6c4   : > { %v1630_v54 = vadd.f32 %v1629_v48, %v1585_v39 }
 0x6c7   : > { %v1666_v42 = vpop.f32.mrf.mxu2  ;;  %v1699_v23 = vpop.f32.mrf.mxu3 }
 0x6c8   : > { %v1700_v22 = vadd.f32 %v1699_v23, %v1663_v21  ;;  %v1667_v29 = vadd.f32 %v1666_v42, %v1618_v27 }
 0x6ca   : > { %1742 = vperm.xlu1 %2477, %v1700_v22   ;;  %v1714_v40 = vmul.f32 %v1700_v22, %v1700_v22 }
 0x6cf   : > { %v1703_v31 = vpop.f32.mrf.mxu3  ;;  %v1670_v33 = vpop.f32.mrf.mxu2 }
 0x6d0   : > { %v1704_v32 = vadd.f32 %v1703_v31, %v1667_v29  ;;  %v1671_v37 = vadd.f32 %v1670_v33, %v1624_v35  ;;  %v1289_v35 = vadd.f32 %v2991_v11, %v2915_v3 }
 0x6d2   : > { %1747 = vperm.xlu2 %2466, %v1704_v32   ;;  %v1715_v7 = vmul.f32 %v1704_v32, %v1704_v32 }
 0x6d7   : > { %v1707_v38 = vpop.f32.mrf.mxu3  ;;  %v1674_v50 = vpop.f32.mrf.mxu2 }
 0x6d8   : > { %v1708_v45 = vadd.f32 %v1707_v38, %v1671_v37  ;;  %v1675_v58 = vadd.f32 %v1674_v50, %v1630_v54 }
 0x6da   : > { %v1716_v49 = vsub.f32 %v1708_v45, %v1714_v40 }
 0x6dc   : > { %v1718_v56 = vadd.f32 1e-05, %v1716_v49 }
 0x6de   : > { %2510 = vrsqrt.f32 %v1718_v56  ;;  %vm1726_vm6 = vweird.f32 %v1718_v56 }
 0x6df   : > { %v1711_v61 = vpop.f32.mrf.mxu3 }
 0x6e0   : > { %v1712_v62 = vadd.f32 %v1711_v61, %v1675_v58 }
 0x6e2   : > { %v1717_v0 = vsub.f32 %v1712_v62, %v1715_v7 }
 0x6e4   : > { %v2511_v4 = vpop.eup %2510  ;;  %v1719_v63 = vadd.f32 1e-05, %v1717_v0 }
 0x6e5   : > { %v1721_v47 = vmul.f32 %v2511_v4, %v1718_v56  ;;  %vm1727_vm3 = vweird.f32 %v2511_v4 }
 0x6e6   : > { %2512 = vrsqrt.f32 %v1719_v63  ;;  %vm1728_vm7 = vmor %vm1726_vm6, %vm1727_vm3  ;;  %vm1736_vm9 = vweird.f32 %v1719_v63 }
 0x6e7   : > { %v1722_v9 = vmul.f32 %v2511_v4, %v1721_v47 }
 0x6e9   : > { %v1723_v10 = vmul.f32 0.5, %v1722_v9 }
 0x6eb   : > { %v1724_v13 = vsub.f32 1.5, %v1723_v10 }
 0x6ec   : > { %v2513_v60 = vpop.eup %2512 }
 0x6ed   : > { %v1731_v5 = vmul.f32 %v2513_v60, %v1719_v63  ;;  %v1725_v18 = vmul.f32 %v2511_v4, %v1724_v13  ;;  %vm1737_vm8 = vweird.f32 %v2513_v60 }
 0x6ee   : > { %vm1738_vm10 = vmor %vm1736_vm9, %vm1737_vm8 }
 0x6ef   : > { %v1729_v19 = vsel %vm1728_vm7, %v2511_v4, %v1725_v18  ;;  %v1732_v21 = vmul.f32 %v2513_v60, %v1731_v5 }
 0x6f0   : > { %1754 = vperm.xlu2 %2466, %v1729_v19  }
 0x6f1   : > { %v1733_v42 = vmul.f32 0.5, %v1732_v21 }
 0x6f3   : > { %v1734_v23 = vsub.f32 1.5, %v1733_v42 }
 0x6f5   : > { %v1735_v12 = vmul.f32 %v2513_v60, %v1734_v23 }
 0x6f7   : > { %v1739_v22 = vsel %vm1738_vm10, %v2513_v60, %v1735_v12 }
 0x6f8   : > { %1759 = vperm.xlu0 %2465, %v1739_v22  }
 0x72c   : > { %v1748_v16 = vpop.permute.xlu2 %1747 }
 0x72d   : > { %v1751_v33 = vsub.f32 %v2994_v15, %v1748_v16 }
 0x73c   : > { %v1743_v26 = vpop.permute.xlu1 %1742 }
 0x73d   : > { %v1750_v27 = vsub.f32 %v2986_v8, %v1743_v26 }
 0x74a   : > { %v1755_v29 = vpop.permute.xlu2 %1754 }
 0x74b   : > { %v1762_v31 = vmul.f32 %v1755_v29, %v1750_v27 }
 0x74d   : > { %v3027_v17 = vadd.f32 %v1762_v31, %v1288_v30 }
 0x74f   : > { %v1770_v32 = vmul.f32 %v3027_v17, %v3027_v17 }
 0x751   : > { %1772 = vadd.xlane.f32.xlu1 %v1770_v32 }
 0x76a   : > { %v1760_v28 = vpop.permute.xlu0 %1759 }
 0x76b   : > { %v1763_v36 = vmul.f32 %v1760_v28, %v1751_v33 }
 0x76d   : > { %v3034_v37 = vadd.f32 %v1763_v36, %v1289_v35 }
 0x76f   : > { %1768 = vadd.xlane.f32.xlu2 %v3034_v37  ;;  %v1771_v57 = vmul.f32 %v3034_v37, %v3034_v37 }
 0x771   : > { %1774 = vadd.xlane.f32.xlu0 %v1771_v57 }
 0x779   : > { %1766 = vadd.xlane.f32.xlu0 %v3027_v17 }
 0x7c4   : > { %v1773_v1 = vpop.xlane.xlu1 %1772 }
 0x7c5   : > { %v1778_v8 = vmul.f32 0.0078125, %v1773_v1 }
 0x7c7   : > { %v1794_v38 = vand.u32 4294901760, %v1778_v8 }
 0x7c9   : > { %v1852_v45 = vsub.f32 %v1778_v8, %v1794_v38 }
 0x7cb   : > { %v1853_v54 = vand.u32 4294901760, %v1852_v45 }
 0x7cd   : > { %v1854_v0 = vsub.f32 %v1852_v45, %v1853_v54 }
 0x7cf   : > { %v1855_v10 = vand.u32 4294901760, %v1854_v0 }
 0x7e2   : > { %v1769_v39 = vpop.xlane.xlu2 %1768 }
 0x7e3   : > { %v1777_v15 = vmul.f32 0.0078125, %v1769_v39 }
 0x7e4   : > { %v1775_v40 = vpop.xlane.xlu0 %1774 }
 0x7e5   : > { %v1796_v48 = vand.u32 4294901760, %v1777_v15  ;;  %v1779_v3 = vmul.f32 0.0078125, %v1775_v40 }
 0x7e7   : > { %v1858_v11 = vsub.f32 %v1777_v15, %v1796_v48  ;;  %v1792_v49 = vand.u32 4294901760, %v1779_v3 }
 0x7e9   : > { %v1846_v50 = vsub.f32 %v1779_v3, %v1792_v49  ;;  %1793 = vmatpush.msrb.mxu0 %v1792_v49  ;;  %1944 = vmatpush.msra.mxu3 %v1792_v49  ;;  %v1859_v58 = vand.u32 4294901760, %v1858_v11 }
 0x7eb   : > { %v1847_v56 = vand.u32 4294901760, %v1846_v50  ;;  %1795 = vmatpush.msrb.mxu0 %v1794_v38  ;;  %1900 = vmatpush.msra.mxu2 %v1846_v50  ;;  %v1860_v47 = vsub.f32 %v1858_v11, %v1859_v58 }
 0x7ec   : > { %1946 = vmatpush.msra.mxu3 %v1794_v38  ;;  %v1767_v61 = vpop.xlane.xlu0 %1766 }
 0x7ed   : > { %v1848_v7 = vsub.f32 %v1846_v50, %v1847_v56  ;;  %v1776_v62 = vmul.f32 0.0078125, %v1767_v61  ;;  %1797 = vmatpush.msrb.mxu0 %v1796_v48  ;;  %1903 = vmatpush.msra.mxu2 %v1852_v45  ;;  %v1861_v13 = vand.u32 4294901760, %v1860_v47 }
 0x7ee   : > { %1948 = vmatpush.msra.mxu3 %v1796_v48 }
 0x7ef   : > { %v1798_v4 = vand.u32 4294901760, %v1776_v62  ;;  %1906 = vmatpush.msra.mxu2 %v1858_v11  ;;  %v1849_v63 = vand.u32 4294901760, %v1848_v7 }
 0x7f1   : > { %v1864_v9 = vsub.f32 %v1776_v62, %v1798_v4  ;;  %1799 = vmatpush.msrb.mxu0 %v1798_v4  ;;  %1850 = vmatpush.msra.mxu1 %v1849_v63 }
 0x7f2   : > { %1950 = vmatpush.msra.mxu3 %v1798_v4  ;;  %1805 = vmatmul.f32.vlgmr.msrb.gmra.mxu0 %v2821_v20 }
 0x7f3   : > { %1991 = vmatpush.msra.mxu0 %v1847_v56  ;;  %1856 = vmatpush.msra.mxu1 %v1855_v10  ;;  %v1865_v60 = vand.u32 4294901760, %v1864_v9 }
 0x7f4   : > { %1909 = vmatpush.msra.mxu2 %v1864_v9  ;;  %1954 = vmatmul.f32.vlgmr.msra.gmra.mxu3 %v2797_v2 }
 0x7f5   : > { %1995 = vmatpush.msra.mxu0 %v1853_v54  ;;  %1912 = vmatmul.f32.vlgmr.msra.gmra.mxu2 %v2790_v55  ;;  %v1866_v5 = vsub.f32 %v1864_v9, %v1865_v60 }
 0x7f6   : > { %1862 = vmatpush.msra.mxu1 %v1861_v13 }
 0x7f7   : > { %1999 = vmatpush.msra.mxu0 %v1859_v58  ;;  %v1867_v18 = vand.u32 4294901760, %v1866_v5 }
 0x7f9   : > { %2003 = vmatpush.msra.mxu0 %v1865_v60  ;;  %1868 = vmatpush.msra.mxu1 %v1867_v18 }
 0x7fa   : > { %1870 = vmatmul.f32.vlgmr.msra.gmra.mxu1 %v2784_v52  ;;  %1813 = vmatmul.f32.gmra.mxu0 %v2849_v41 }
 0x7fb   : > { %2034 = vmatpush.msrb.mxu1 %v1792_v49 }
 0x7fc   : > { %1960 = vmatmul.f32.gmra.mxu3 %v2827_v24 }
 0x7fd   : > { %1917 = vmatmul.f32.gmra.mxu2 %v2815_v14  ;;  %2036 = vmatpush.msrb.mxu1 %v1794_v38 }
 0x7ff   : > { %2038 = vmatpush.msrb.mxu1 %v1796_v48 }
 0x801   : > { %2040 = vmatpush.msrb.mxu1 %v1798_v4 }
 0x802   : > { %1874 = vmatmul.f32.gmra.mxu1 %v2801_v6  ;;  %1821 = vmatmul.f32.gmra.mxu0 %v2868_v51 }
 0x804   : > { %1966 = vmatmul.f32.gmra.mxu3 %v2852_v43 }
 0x805   : > { %1922 = vmatmul.f32.gmra.mxu2 %v2842_v34 }
 0x80a   : > { %1878 = vmatmul.f32.gmra.mxu1 %v2829_v25  ;;  %1829 = vmatmul.f32.gmra.mxu0 %v2879_v59 }
 0x80c   : > { %1972 = vmatmul.f32.gmra.mxu3 %v2871_v53 }
 0x80d   : > { %1927 = vmatmul.f32.gmra.mxu2 %v2861_v46 }
 0x812   : > { %1882 = vmatmul.f32.gmra.mxu1 %v2854_v44  ;;  %2005 = vmatmul.f32.vlgmr.msra.gmra.mxu0 %v2784_v52 }
 0x81a   : > { %2042 = vmatmul.f32.vlgmr.msrb.gmra.mxu1 %v2784_v52  ;;  %2009 = vmatmul.f32.gmra.mxu0 %v2801_v6 }
 0x822   : > { %2046 = vmatmul.f32.gmra.mxu1 %v2801_v6  ;;  %2013 = vmatmul.f32.gmra.mxu0 %v2829_v25 }
 0x82a   : > { %2050 = vmatmul.f32.gmra.mxu1 %v2829_v25  ;;  %2017 = vmatmul.f32.gmra.mxu0 %v2854_v44 }
 0x832   : > { %2054 = vmatmul.f32.gmra.mxu1 %v2854_v44 }
 0x86f   : > { %v1806_v55 = vpop.f32.mrf.mxu0 }
 0x877   : > { %v1871_v2 = vpop.f32.mrf.mxu1  ;;  %v1814_v14 = vpop.f32.mrf.mxu0 }
 0x878   : > { %v1913_v41 = vpop.f32.mrf.mxu2  ;;  %v1955_v43 = vpop.f32.mrf.mxu3  ;;  %v1872_v46 = vadd.f32 %v1871_v2, %v1806_v55 }
 0x87a   : > { %v1914_v6 = vadd.f32 %v1913_v41, %v1872_v46 }
 0x87c   : > { %v1956_v25 = vadd.f32 %v1955_v43, %v1914_v6 }
 0x87f   : > { %v1875_v20 = vpop.f32.mrf.mxu1  ;;  %v1822_v24 = vpop.f32.mrf.mxu0 }
 0x880   : > { %v1918_v53 = vpop.f32.mrf.mxu2  ;;  %v1876_v19 = vadd.f32 %v1875_v20, %v1814_v14  ;;  %v1961_v21 = vpop.f32.mrf.mxu3 }
 0x882   : > { %v1919_v12 = vadd.f32 %v1918_v53, %v1876_v19 }
 0x884   : > { %v1962_v27 = vadd.f32 %v1961_v21, %v1919_v12 }
 0x887   : > { %v1879_v34 = vpop.f32.mrf.mxu1  ;;  %v1830_v52 = vpop.f32.mrf.mxu0 }
 0x888   : > { %v1923_v16 = vpop.f32.mrf.mxu2  ;;  %v1880_v26 = vadd.f32 %v1879_v34, %v1822_v24  ;;  %v1967_v31 = vpop.f32.mrf.mxu3 }
 0x88a   : > { %v1924_v33 = vadd.f32 %v1923_v16, %v1880_v26 }
 0x88c   : > { %v1968_v36 = vadd.f32 %v1967_v31, %v1924_v33 }
 0x88f   : > { %v1883_v51 = vpop.f32.mrf.mxu1  ;;  %v2006_v59 = vpop.f32.mrf.mxu0 }
 0x890   : > { %v2007_v42 = vadd.f32 %v2006_v59, %v1956_v25  ;;  %v1884_v35 = vadd.f32 %v1883_v51, %v1830_v52  ;;  %v1928_v57 = vpop.f32.mrf.mxu2  ;;  %v1973_v40 = vpop.f32.mrf.mxu3 }
 0x892   : > { %v1929_v15 = vadd.f32 %v1928_v57, %v1884_v35 }
 0x894   : > { %v1974_v11 = vadd.f32 %v1973_v40, %v1929_v15 }
 0x897   : > { %v2043_v23 = vpop.f32.mrf.mxu1  ;;  %v2010_v22 = vpop.f32.mrf.mxu0 }
 0x898   : > { %v2044_v44 = vadd.f32 %v2043_v23, %v2007_v42  ;;  %v2011_v29 = vadd.f32 %v2010_v22, %v1962_v27 }
 0x89a   : > { %2086 = vperm.xlu1 %2477, %v2044_v44   ;;  %v2058_v38 = vmul.f32 %v2044_v44, %v2044_v44 }
 0x89f   : > { %v2047_v30 = vpop.f32.mrf.mxu1  ;;  %v2014_v28 = vpop.f32.mrf.mxu0 }
 0x8a0   : > { %v2048_v32 = vadd.f32 %v2047_v30, %v2011_v29  ;;  %v2015_v1 = vadd.f32 %v2014_v28, %v1968_v36 }
 0x8a2   : > { %2091 = vperm.xlu2 %2466, %v2048_v32   ;;  %v2059_v54 = vmul.f32 %v2048_v32, %v2048_v32 }
 0x8a7   : > { %v2051_v8 = vpop.f32.mrf.mxu1  ;;  %v2018_v48 = vpop.f32.mrf.mxu0 }
 0x8a8   : > { %v2052_v39 = vadd.f32 %v2051_v8, %v2015_v1  ;;  %v2019_v49 = vadd.f32 %v2018_v48, %v1974_v11 }
 0x8aa   : > { %v2060_v45 = vsub.f32 %v2052_v39, %v2058_v38 }
 0x8ac   : > { %v2062_v3 = vadd.f32 1e-05, %v2060_v45 }
 0x8ae   : > { %2514 = vrsqrt.f32 %v2062_v3  ;;  %vm2070_vm12 = vweird.f32 %v2062_v3 }
 0x8af   : > { %v2055_v50 = vpop.f32.mrf.mxu1 }
 0x8b0   : > { %v2056_v56 = vadd.f32 %v2055_v50, %v2019_v49 }
 0x8b2   : > { %v2061_v58 = vsub.f32 %v2056_v56, %v2059_v54 }
 0x8b4   : > { %v2515_v61 = vpop.eup %2514  ;;  %v2063_v7 = vadd.f32 1e-05, %v2061_v58 }
 0x8b5   : > { %v2065_v62 = vmul.f32 %v2515_v61, %v2062_v3  ;;  %vm2071_vm11 = vweird.f32 %v2515_v61 }
 0x8b6   : > { %2516 = vrsqrt.f32 %v2063_v7  ;;  %vm2072_vm13 = vmor %vm2070_vm12, %vm2071_vm11  ;;  %vm2080_vm15 = vweird.f32 %v2063_v7 }
 0x8b7   : > { %v2066_v0 = vmul.f32 %v2515_v61, %v2065_v62 }
 0x8b9   : > { %v2067_v4 = vmul.f32 0.5, %v2066_v0 }
 0x8bb   : > { %v2068_v63 = vsub.f32 1.5, %v2067_v4 }
 0x8bc   : > { %v2517_v47 = vpop.eup %2516 }
 0x8bd   : > { %v2075_v9 = vmul.f32 %v2517_v47, %v2063_v7  ;;  %v2069_v10 = vmul.f32 %v2515_v61, %v2068_v63  ;;  %vm2081_vm14 = vweird.f32 %v2517_v47 }
 0x8be   : > { %vm2082_vm0 = vmor %vm2080_vm15, %vm2081_vm14 }
 0x8bf   : > { %v2073_v13 = vsel %vm2072_vm13, %v2515_v61, %v2069_v10  ;;  %v2076_v60 = vmul.f32 %v2517_v47, %v2075_v9 }
 0x8c0   : > { %2098 = vperm.xlu0 %2465, %v2073_v13  }
 0x8c1   : > { %v2077_v5 = vmul.f32 0.5, %v2076_v60 }
 0x8c3   : > { %v2078_v18 = vsub.f32 1.5, %v2077_v5 }
 0x8c5   : > { %v2079_v55 = vmul.f32 %v2517_v47, %v2078_v18 }
 0x8c7   : > { %v2083_v2 = vsel %vm2082_vm0, %v2517_v47, %v2079_v55 }
 0x8c8   : > { %2103 = vperm.xlu0 %2465, %v2083_v2  }
 0x8fc   : > { %v2092_v41 = vpop.permute.xlu2 %2091 }
 0x8fd   : > { %v2095_v52 = vsub.f32 %v3034_v37, %v2092_v41 }
 0x90c   : > { %v2087_v14 = vpop.permute.xlu1 %2086 }
 0x90d   : > { %v2094_v20 = vsub.f32 %v3027_v17, %v2087_v14 }
 0x932   : > { %v2099_v24 = vpop.permute.xlu0 %2098 }
 0x933   : > { %v2106_v34 = vmul.f32 %v2099_v24, %v2094_v20 }
 0x935   : > { %2108 = vst [vmem:[%s303_s14] sm:$0xff] %v2106_v34 }
 0x93a   : > { %v2104_v43 = vpop.permute.xlu0 %2103 }
 0x93b   : > { %v2107_v46 = vmul.f32 %v2104_v43, %v2095_v52 }
 0x93d   : > { %2109 = vst [vmem:[%s303_s14 + $0x8] sm:$0xff] %v2107_v46 }
 0x93e   : > { %2575 = shalt.err (!%p2572_p9)
}
 0x93f   : > { %s2624_s27 = smov 128   ;;  %s2625_s12 = smov 256  }
 0x940   : > { %s2626_s13 = smov 8  }
 0x941   : > { %2389 = dma.vmem_to_hbm [thread:$0]  (%p2705_p6), %s2123_s18, 256, %s2125_s19, %s2111_s3, %s2624_s27, %s2625_s12, %s2626_s13  }
 0x942 PF: > { %s2139_s14 = sand.u32 1, %s2602_s21   ;;  %p2396_p11 = pnand %p2208_p1, %p2711_p10 }
 0x943   : > { %s2140_s15 = scalar_lea.sflag [#allocation5], %s2139_s14 }
 0x944   : > { %p2397_p12 = pneg %p2396_p11 }
 0x946   : > { %2597 = dma.done.wait (%p2397_p12), %s2140_s15, 256  }
 0x947   : > { %2599 = vsyncadd (%p2397_p12), %s2140_s15, 4294967040  ;;  %p17_p13 = scmp.ge.s32.totalorder %s2687_s26, 4   ;;  %s3112_s21 = smov %s2606_s22 }
 0x948   : > { %s3113_s22 = smov %s2610_s23  ;;  %s3114_s23 = smov %s2699_s29 }
 0x949   : > { %s3115_s24 = smov %s2687_s26  ;;  %19 = sbr.rel (!%p17_p13) target bundleno = 4 (0x4), region = 131 }
 0x94e   :  { %2146 = vsyncpa [#allocation4], 1 }
 0x94f   :  { %2148 = vsyncpa [#allocation4 + $0x1], 1 }
 0x950   :  { %2149 = vsyncpa [#allocation5], 1 }
 0x951   :  { %2151 = vsyncpa [#allocation5 + $0x1], 1 }

</bundles_post_ra>
